<compile_context>
chip_gen: v6e
topology: v6e:2x2x1
jax: 0.10.0
libtpu: 0.0.40
codegen_flags: <defaults>
</compile_context>

<pallas_src>
import functools

import jax
import jax.numpy as jnp
from jax import lax
from jax.experimental import pallas as pl
from jax.experimental.pallas import tpu as pltpu


def _router_kernel(x_ref, w_ref, probs_ref, mask_t_ref, *, k: int):
    n_exp = w_ref.shape[-1]

    # scores: (TN, E) on the MXU, accumulate in f32
    scores = jnp.dot(x_ref[...], w_ref[...], preferred_element_type=jnp.float32)

    # softmax over experts (last axis); normalization via EUP approx reciprocal
    scores = scores - jnp.max(scores, axis=-1, keepdims=True)
    e = jnp.exp(scores)
    denom = jnp.sum(e, axis=-1, keepdims=True)
    probs = e * pl.reciprocal(denom, approx=True)
    probs_ref[...] = probs.astype(probs_ref.dtype)

    # top-k mask via k iterative "select leftmost argmax, then knock out" passes
    # (matches torch.topk + scatter: keep the k largest softmax probs per row).
    # Leftmost tie-break via iota + masked min-reduce (single XLU reduce/pass).
    col = lax.broadcasted_iota(jnp.int32, probs.shape, 1)
    work = probs
    mask = jnp.zeros_like(probs)
    for _ in range(k):
        row_max = jnp.max(work, axis=-1, keepdims=True)
        is_max = work == row_max
        idx = jnp.min(jnp.where(is_max, col, n_exp), axis=-1, keepdims=True)
        first = col == idx
        mask = jnp.where(first, probs, mask)
        work = jnp.where(first, -jnp.inf, work)

    # store transposed: lane axis = tokens (lane-dense, unmasked vst)
    mask_t_ref[...] = mask.T.astype(mask_t_ref.dtype)


def topk_router_forward(x, expert_embs, k: int, *, tile_n: int = 256,
                        use_bf16: bool = False):
    """x: (b, s, d) float32; expert_embs: (d, E) float32.

    Returns (experts_masks (E, b, s, 1), aux_loss scalar, routing_matrix (b*s, E)).
    """
    b, s, d = x.shape
    d_w, n_exp = expert_embs.shape
    assert d == d_w
    assert k < n_exp, "top-k router requires k < num_experts (expert_choice=False)"
    n_tok = b * s

    tokens = x.reshape(n_tok, d)
    if use_bf16:
        # halves the dominant HBM token stream; may flip near-tie selections
        tokens = tokens.astype(jnp.bfloat16)
        expert_embs = expert_embs.astype(jnp.bfloat16)

    n_blocks = pl.cdiv(n_tok, tile_n)
    n_pad = n_blocks * tile_n
    if n_pad != n_tok:
        tokens = jnp.pad(tokens, ((0, n_pad - n_tok), (0, 0)))

    in_bytes = tokens.dtype.itemsize
    cost = pl.CostEstimate(
        flops=2 * n_pad * d * n_exp,
        transcendentals=n_pad * n_exp,
        bytes_accessed=(n_pad * d * in_bytes
                        + d * n_exp * in_bytes
                        + 2 * n_pad * n_exp * 4),
    )

    kernel = functools.partial(_router_kernel, k=k)
    probs, mask_t = pl.pallas_call(
        kernel,
        out_shape=(
            jax.ShapeDtypeStruct((n_pad, n_exp), jnp.float32),   # routing matrix
            jax.ShapeDtypeStruct((n_exp, n_pad), jnp.float32),   # mask, transposed
        ),
        grid_spec=pltpu.PrefetchScalarGridSpec(
            num_scalar_prefetch=0,
            grid=(n_blocks,),
            in_specs=[
                pl.BlockSpec((tile_n, d), lambda i: (i, 0)),
                pl.BlockSpec((d, n_exp), lambda i: (0, 0)),
            ],
            out_specs=[
                pl.BlockSpec((tile_n, n_exp), lambda i: (i, 0)),
                pl.BlockSpec((n_exp, tile_n), lambda i: (0, i)),
            ],
        ),
        compiler_params=pltpu.CompilerParams(
            dimension_semantics=("parallel",),
        ),
        cost_estimate=cost,
    )(tokens, expert_embs)

    # drop padded tail rows
    probs = probs[:n_tok]
    mask_t = mask_t[:, :n_tok]

    # glue: mask is already (E, N); '(b s)' -> 'b s ()' is a pure reshape
    experts_masks = mask_t.reshape(n_exp, b, s, 1)
    aux_loss = jnp.float32(0.0)
    return experts_masks, aux_loss, probs


def _orthogonal_init(key, shape, dtype=jnp.float32):
    # deterministic orthogonal columns, mirrors torch.nn.init.orthogonal_ intent
    a = jax.random.normal(key, shape, dtype=jnp.float32)
    q, r = jnp.linalg.qr(a)
    q = q * jnp.sign(jnp.diagonal(r))[None, :]
    return q.astype(dtype)


def _reference(x, expert_embs, k):
    b, s, d = x.shape
    n_exp = expert_embs.shape[1]
    tokens = x.reshape(b * s, d)
    scores = tokens @ expert_embs
    probs = jax.nn.softmax(scores, axis=-1)
    _, top_idx = lax.top_k(probs, k)
    mask = jnp.zeros_like(probs)
    rows = jnp.arange(b * s)[:, None]
    mask = mask.at[rows, top_idx].set(jnp.take_along_axis(probs, top_idx, axis=-1))
    experts_masks = mask.T.reshape(n_exp, b, s, 1)
    return experts_masks, probs


if __name__ == "__main__":
    # small shapes: batch=2, seq=8, input_dim=32, num_experts=8, k=2
    b, s, d = 2, 8, 32
    num_experts, k = 8, 2

    key = jax.random.PRNGKey(0)
    kx, kw = jax.random.split(key)
    x = jax.random.normal(kx, (b, s, d), dtype=jnp.float32)
    expert_embs = _orthogonal_init(kw, (d, num_experts))

    experts_masks, aux_loss, routing_matrix = topk_router_forward(
        x, expert_embs, k
    )
    jax.block_until_ready((experts_masks, aux_loss, routing_matrix))

    # sanity: shapes, top-k sparsity, numeric parity with pure-JAX reference
    assert experts_masks.shape == (num_experts, b, s, 1)
    assert routing_matrix.shape == (b * s, num_experts)
    nnz_per_token = (experts_masks.reshape(num_experts, b * s) > 0).sum(axis=0)
    assert int(nnz_per_token.max()) <= k

    ref_masks, ref_probs = _reference(x, expert_embs, k)
    assert jnp.allclose(routing_matrix, ref_probs, rtol=2e-3, atol=2e-3)
    assert jnp.allclose(experts_masks, ref_masks, rtol=2e-3, atol=2e-3)

    print("KERNEL_OK")
</pallas_src>

<mosaic_0001>
module attributes {stable_mosaic.version = 11 : i64} {
  func.func @_router_kernel(%arg0: i32, %arg1: memref<256x32xf32, #tpu.memory_space<vmem>>, %arg2: memref<32x8xf32, #tpu.memory_space<vmem>>, %arg3: memref<256x8xf32, #tpu.memory_space<vmem>>, %arg4: memref<8x256xf32, #tpu.memory_space<vmem>>) attributes {dimension_semantics = [#tpu.dimension_semantics<parallel>], iteration_bounds = array<i64: 1>, scalar_prefetch = 0 : i64, scratch_operands = 0 : i64, tpu.core_type = #tpu.core_type<tc>, window_params = [{transform_indices = @transform_0, window_bounds = array<i64: 256, 32>}, {pipeline_mode = #tpu.pipeline_mode<synchronous>, transform_indices = @transform_1, window_bounds = array<i64: 32, 8>}, {transform_indices = @transform_2, window_bounds = array<i64: 256, 8>}, {transform_indices = @transform_3, window_bounds = array<i64: 8, 256>}]} {
    %c0 = arith.constant 0 : index
    %c0_0 = arith.constant 0 : index
    %0 = vector.load %arg1[%c0, %c0_0] : memref<256x32xf32, #tpu.memory_space<vmem>>, vector<256x32xf32>
    %c0_1 = arith.constant 0 : index
    %c0_2 = arith.constant 0 : index
    %1 = vector.load %arg2[%c0_1, %c0_2] : memref<32x8xf32, #tpu.memory_space<vmem>>, vector<32x8xf32>
    %cst = arith.constant dense<0.000000e+00> : vector<256x8xf32>
    %2 = tpu.matmul %0, %1, %cst {dimension_numbers = #tpu.dot_dimension_numbers<[1], [0], [0], [1], [0, 0, 1, 1], [], []>} : vector<256x32xf32>, vector<32x8xf32>, vector<256x8xf32> -> vector<256x8xf32>
    %cst_3 = arith.constant dense<0xFF800000> : vector<256xf32>
    %3 = vector.multi_reduction <maximumf>, %2, %cst_3 [1] : vector<256x8xf32> to vector<256xf32>
    %4 = vector.shape_cast %3 : vector<256xf32> to vector<256x1xf32>
    %5 = vector.broadcast %4 : vector<256x1xf32> to vector<256x8xf32>
    %6 = arith.subf %2, %5 : vector<256x8xf32>
    %7 = math.exp %6 : vector<256x8xf32>
    %cst_4 = arith.constant dense<0.000000e+00> : vector<256xf32>
    %8 = vector.multi_reduction <add>, %7, %cst_4 [1] : vector<256x8xf32> to vector<256xf32>
    %9 = vector.shape_cast %8 : vector<256xf32> to vector<256x1xf32>
    %10 = tpu.reciprocal %9 {approx = true} : vector<256x1xf32> -> vector<256x1xf32>
    %11 = vector.broadcast %10 : vector<256x1xf32> to vector<256x8xf32>
    %12 = arith.mulf %7, %11 : vector<256x8xf32>
    %c0_5 = arith.constant 0 : index
    %c0_6 = arith.constant 0 : index
    %13 = vector.load %arg3[%c0_5, %c0_6] : memref<256x8xf32, #tpu.memory_space<vmem>>, vector<256x8xf32>
    tpu.vector_store %arg3[%c0_5, %c0_6], %12 {strides = array<i32>} : memref<256x8xf32, #tpu.memory_space<vmem>>, vector<256x8xf32>,
    %14 = tpu.iota {dimensions = array<i32: 1>} : vector<256x8xi32>
    %cst_7 = arith.constant 0.000000e+00 : f32
    %15 = vector.broadcast %cst_7 : f32 to vector<256x8xf32>
    %cst_8 = arith.constant dense<0xFF800000> : vector<256xf32>
    %16 = vector.multi_reduction <maximumf>, %12, %cst_8 [1] : vector<256x8xf32> to vector<256xf32>
    %17 = vector.shape_cast %16 : vector<256xf32> to vector<256x1xf32>
    %18 = vector.broadcast %17 : vector<256x1xf32> to vector<256x8xf32>
    %19 = arith.cmpf oeq, %12, %18 : vector<256x8xf32>
    %c8_i32 = arith.constant 8 : i32
    %20 = vector.broadcast %c8_i32 : i32 to vector<256x8xi32>
    %21 = arith.select %19, %14, %20 : vector<256x8xi1>, vector<256x8xi32>
    %cst_9 = arith.constant dense<2147483647> : vector<256xi32>
    %22 = vector.multi_reduction <minsi>, %21, %cst_9 [1] : vector<256x8xi32> to vector<256xi32>
    %23 = vector.shape_cast %22 : vector<256xi32> to vector<256x1xi32>
    %24 = vector.broadcast %23 : vector<256x1xi32> to vector<256x8xi32>
    %25 = arith.cmpi eq, %14, %24 : vector<256x8xi32>
    %26 = arith.select %25, %12, %15 : vector<256x8xi1>, vector<256x8xf32>
    %cst_10 = arith.constant 0xFF800000 : f32
    %27 = vector.broadcast %cst_10 : f32 to vector<256x8xf32>
    %28 = arith.select %25, %27, %12 : vector<256x8xi1>, vector<256x8xf32>
    %cst_11 = arith.constant dense<0xFF800000> : vector<256xf32>
    %29 = vector.multi_reduction <maximumf>, %28, %cst_11 [1] : vector<256x8xf32> to vector<256xf32>
    %30 = vector.shape_cast %29 : vector<256xf32> to vector<256x1xf32>
    %31 = vector.broadcast %30 : vector<256x1xf32> to vector<256x8xf32>
    %32 = arith.cmpf oeq, %28, %31 : vector<256x8xf32>
    %c8_i32_12 = arith.constant 8 : i32
    %33 = vector.broadcast %c8_i32_12 : i32 to vector<256x8xi32>
    %34 = arith.select %32, %14, %33 : vector<256x8xi1>, vector<256x8xi32>
    %cst_13 = arith.constant dense<2147483647> : vector<256xi32>
    %35 = vector.multi_reduction <minsi>, %34, %cst_13 [1] : vector<256x8xi32> to vector<256xi32>
    %36 = vector.shape_cast %35 : vector<256xi32> to vector<256x1xi32>
    %37 = vector.broadcast %36 : vector<256x1xi32> to vector<256x8xi32>
    %38 = arith.cmpi eq, %14, %37 : vector<256x8xi32>
    %39 = arith.select %38, %12, %26 : vector<256x8xi1>, vector<256x8xf32>
    %40 = tpu.transpose %39, [1, 0] : vector<256x8xf32> -> vector<8x256xf32>
    %c0_14 = arith.constant 0 : index
    %c0_15 = arith.constant 0 : index
    %41 = vector.load %arg4[%c0_14, %c0_15] : memref<8x256xf32, #tpu.memory_space<vmem>>, vector<8x256xf32>
    tpu.vector_store %arg4[%c0_14, %c0_15], %40 {strides = array<i32>} : memref<8x256xf32, #tpu.memory_space<vmem>>, vector<8x256xf32>,
    return
  }
  func.func @transform_0(%arg0: i32) -> (i32, i32) {
    %c0_i32 = arith.constant 0 : i32
    %c0_i32_0 = arith.constant 0 : i32
    return %arg0, %c0_i32 : i32, i32
  }
  func.func @transform_1(%arg0: i32) -> (i32, i32) {
    %c0_i32 = arith.constant 0 : i32
    %c0_i32_0 = arith.constant 0 : i32
    %c0_i32_1 = arith.constant 0 : i32
    return %c0_i32, %c0_i32_0 : i32, i32
  }
  func.func @transform_2(%arg0: i32) -> (i32, i32) {
    %c0_i32 = arith.constant 0 : i32
    %c0_i32_0 = arith.constant 0 : i32
    return %arg0, %c0_i32 : i32, i32
  }
  func.func @transform_3(%arg0: i32) -> (i32, i32) {
    %c0_i32 = arith.constant 0 : i32
    %c0_i32_0 = arith.constant 0 : i32
    return %c0_i32, %arg0 : i32, i32
  }
}

</mosaic_0001>

<bundles_post_ra>
// kernel: tpu_custom_call.1
= control target key start
LH: loop header
LB: loop body
LE: loop exit
PB: predicated region body
PF: predicated region fallthrough
CT: control target
= control target key end

     0   :  { %vm50_vm0 = vcmask 261120   ;;  %s4876_s0 = inlined_call_operand.vmem [shape: f32[256,32], index: 0, kind: input, shape index: {}]   ;;  %s4877_s1 = inlined_call_operand.vmem [shape: f32[32,8], index: 1, kind: input, shape index: {}]   ;;  %s4878_s2 = inlined_call_operand.vmem [shape: f32[256,8], index: 2, kind: output, shape index: {0}]   ;;  %s4879_s3 = inlined_call_operand.hbm [shape: f32[8,256], index: 3, kind: output, shape index: {1}]  }
   0x1   :  { %v49_v0 = vld [vmem:[%s4877_s1 + $0x18] sm:$0xff]  ;;  %v48_v1 = vld [vmem:[%s4877_s1 + $0x10] sm:$0xff]  ;;  %v47_v2 = vld [vmem:[%s4877_s1 + $0x8] sm:$0xff] }
   0x2   :  { %2351 = vmatprep.subr.mxu0 %v49_v0  ;;  %2407 = vmatprep.subr.mxu1 %v49_v0  ;;  %v46_v3 = vld [vmem:[%s4877_s1] sm:$0xff]  ;;  %v15_v5 = vld [vmem:[%s4876_s0 + $0x8] sm:$0xff]  ;;  %v16_v7 = vld [vmem:[%s4876_s0 + $0x10] sm:$0xff] }
   0x3   :  { %2352 = vmatpush3.msra.mxu0 %v49_v0  ;;  %2411 = vmatpush3.msra.mxu1 %v49_v0  ;;  %v14_v4 = vld [vmem:[%s4876_s0] sm:$0xff]  ;;  %v31_v8 = vld [vmem:[%s4876_s0 + $0x88] sm:$0xff]  ;;  %v32_v9 = vld [vmem:[%s4876_s0 + $0x90] sm:$0xff] }
   0x4   :  { %2353 = vmatprep.subr.mxu0 %v48_v1  ;;  %2408 = vmatprep.subr.mxu1 %v48_v1  ;;  %v30_v6 = vld [vmem:[%s4876_s0 + $0x80] sm:$0xff]  ;;  %v17_v10 = vld [vmem:[%s4876_s0 + $0x18] sm:$0xff] }
   0x5   :  { %2354 = vmatpush3.msra.mxu0 %v48_v1  ;;  %2412 = vmatpush3.msra.mxu1 %v48_v1  ;;  %v18_v11 = vld [vmem:[%s4876_s0 + $0x20] sm:$0xff]  ;;  %v33_v12 = vld [vmem:[%s4876_s0 + $0x98] sm:$0xff] }
   0x6   :  { %2355 = vmatprep.subr.mxu0 %v47_v2  ;;  %2409 = vmatprep.subr.mxu1 %v47_v2 }
   0x7   :  { %2356 = vmatpush3.msra.mxu0 %v47_v2  ;;  %2413 = vmatpush3.msra.mxu1 %v47_v2 }
   0x8   :  { %2357 = vmatprep.subr.mxu0 %v46_v3  ;;  %2359 = vmatprep.mubr.msk.f32.mxu0 %vm50_vm0, %v14_v4 }
   0x9   :  { %2358 = vmatpush3.msra.mxu0 %v46_v3  ;;  %2410 = vmatprep.subr.mxu1 %v46_v3 }
   0xa   :  { %2360 = vmatmul.mubr.msk.f32.vlgmr.msra.gmra.mxu0 %vm50_vm0, %v15_v5  ;;  %2414 = vmatpush3.msra.mxu1 %v46_v3 }
   0xb   :  { %2383 = vmatprep.mubr.msk.f32.mxu1 %vm50_vm0, %v30_v6  ;;  %2362 = vmatprep.mubr.msk.f32.mxu0 %vm50_vm0, %v16_v7 }
   0xc   :  { %2384 = vmatmul.mubr.msk.f32.vlgmr.msra.gmra.mxu1 %vm50_vm0, %v31_v8 }
   0xd   :  { %2386 = vmatprep.mubr.msk.f32.mxu1 %vm50_vm0, %v32_v9 }
   0xe   :  { %9 = vsyncpa [#allocation3], 0  ;;  %2363 = vmatmul.mubr.msk.f32.gmra.mxu0 %vm50_vm0, %v17_v10  ;;  %v34_v13 = vld [vmem:[%s4876_s0 + $0xa0] sm:$0xff]  ;;  %v19_v14 = vld [vmem:[%s4876_s0 + $0x28] sm:$0xff]  ;;  %vm372_vm1 = vcmask 64512  }
   0xf   :  { %2365 = vmatprep.mubr.msk.f32.mxu0 %vm50_vm0, %v18_v11  ;;  %v20_v15 = vld [vmem:[%s4876_s0 + $0x30] sm:$0xff]  ;;  %v35_v16 = vld [vmem:[%s4876_s0 + $0xa8] sm:$0xff]  ;;  %v21_v18 = vld [vmem:[%s4876_s0 + $0x38] sm:$0xff] }
  0x10   :  { %2387 = vmatmul.mubr.msk.f32.gmra.mxu1 %vm50_vm0, %v33_v12  ;;  %v36_v17 = vld [vmem:[%s4876_s0 + $0xb0] sm:$0xff]  ;;  %v22_v19 = vld [vmem:[%s4876_s0 + $0x40] sm:$0xff]  ;;  %v37_v20 = vld [vmem:[%s4876_s0 + $0xb8] sm:$0xff] }
  0x11   :  { %2389 = vmatprep.mubr.msk.f32.mxu1 %vm50_vm0, %v34_v13  ;;  %v38_v21 = vld [vmem:[%s4876_s0 + $0xc0] sm:$0xff]  ;;  %v23_v22 = vld [vmem:[%s4876_s0 + $0x48] sm:$0xff]  ;;  %v24_v23 = vld [vmem:[%s4876_s0 + $0x50] sm:$0xff] }
  0x12   :  { %2366 = vmatmul.mubr.msk.f32.gmra.mxu0 %vm50_vm0, %v19_v14  ;;  %v39_v24 = vld [vmem:[%s4876_s0 + $0xc8] sm:$0xff]  ;;  %v40_v25 = vld [vmem:[%s4876_s0 + $0xd0] sm:$0xff]  ;;  %v25_v26 = vld [vmem:[%s4876_s0 + $0x58] sm:$0xff] }
  0x13   :  { %2368 = vmatprep.mubr.msk.f32.mxu0 %vm50_vm0, %v20_v15  ;;  %v26_v27 = vld [vmem:[%s4876_s0 + $0x60] sm:$0xff]  ;;  %v41_v28 = vld [vmem:[%s4876_s0 + $0xd8] sm:$0xff]  ;;  %v27_v30 = vld [vmem:[%s4876_s0 + $0x68] sm:$0xff] }
  0x14   :  { %2390 = vmatmul.mubr.msk.f32.gmra.mxu1 %vm50_vm0, %v35_v16  ;;  %v42_v29 = vld [vmem:[%s4876_s0 + $0xe0] sm:$0xff]  ;;  %v28_v31 = vld [vmem:[%s4876_s0 + $0x70] sm:$0xff]  ;;  %v43_v32 = vld [vmem:[%s4876_s0 + $0xe8] sm:$0xff] }
  0x15   :  { %2392 = vmatprep.mubr.msk.f32.mxu1 %vm50_vm0, %v36_v17  ;;  %v44_v33 = vld [vmem:[%s4876_s0 + $0xf0] sm:$0xff]  ;;  %v29_v34 = vld [vmem:[%s4876_s0 + $0x78] sm:$0xff] }
  0x16   :  { %2369 = vmatmul.mubr.msk.f32.gmra.mxu0 %vm50_vm0, %v21_v18  ;;  %v45_v35 = vld [vmem:[%s4876_s0 + $0xf8] sm:$0xff] }
  0x17   :  { %2371 = vmatprep.mubr.msk.f32.mxu0 %vm50_vm0, %v22_v19 }
  0x18   :  { %2393 = vmatmul.mubr.msk.f32.gmra.mxu1 %vm50_vm0, %v37_v20 }
  0x19   :  { %2395 = vmatprep.mubr.msk.f32.mxu1 %vm50_vm0, %v38_v21 }
  0x1a   :  { %2372 = vmatmul.mubr.msk.f32.gmra.mxu0 %vm50_vm0, %v23_v22 }
  0x1b   :  { %2374 = vmatprep.mubr.msk.f32.mxu0 %vm50_vm0, %v24_v23 }
  0x1c   :  { %2396 = vmatmul.mubr.msk.f32.gmra.mxu1 %vm50_vm0, %v39_v24 }
  0x1d   :  { %2398 = vmatprep.mubr.msk.f32.mxu1 %vm50_vm0, %v40_v25 }
  0x1e   :  { %2375 = vmatmul.mubr.msk.f32.gmra.mxu0 %vm50_vm0, %v25_v26 }
  0x1f   :  { %2377 = vmatprep.mubr.msk.f32.mxu0 %vm50_vm0, %v26_v27 }
  0x20   :  { %2399 = vmatmul.mubr.msk.f32.gmra.mxu1 %vm50_vm0, %v41_v28 }
  0x21   :  { %2401 = vmatprep.mubr.msk.f32.mxu1 %vm50_vm0, %v42_v29 }
  0x22   :  { %2378 = vmatmul.mubr.msk.f32.gmra.mxu0 %vm50_vm0, %v27_v30 }
  0x23   :  { %2380 = vmatprep.mubr.msk.f32.mxu0 %vm50_vm0, %v28_v31 }
  0x24   :  { %2402 = vmatmul.mubr.msk.f32.gmra.mxu1 %vm50_vm0, %v43_v32 }
  0x25   :  { %2404 = vmatprep.mubr.msk.f32.mxu1 %vm50_vm0, %v44_v33 }
  0x26   :  { %2381 = vmatmul.mubr.msk.f32.gmra.mxu0 %vm50_vm0, %v29_v34 }
  0x28   :  { %2405 = vmatmul.mubr.msk.f32.gmra.mxu1 %vm50_vm0, %v45_v35 }
  0xca   :  { %v2727_v36 = vpop.f32.mrf.mxu0 }
  0xcb   :  { %v376_v37 = vsel %vm372_vm1, %v2727_v36, -inf }
  0xcc   :  { %v2731_v38 = vpop.f32.mrf.mxu1  ;;  %377 = vmax.xlane.f32.xlu1 %v376_v37  ;;  %v2733_v39 = vpop.f32.mrf.mxu0 }
  0xcd   :  { %v373_v40 = vsel %vm372_vm1, %v2733_v39, -inf  ;;  %v424_v41 = vsel %vm372_vm1, %v2731_v38, -inf }
  0xce   :  { %v2739_v42 = vpop.f32.mrf.mxu1  ;;  %374 = vmax.xlane.f32.xlu0 %v373_v40  ;;  %v2743_v44 = vpop.f32.mrf.mxu0 }
  0xcf   :  { %v421_v45 = vsel %vm372_vm1, %v2739_v42, -inf  ;;  %v382_v48 = vsel %vm372_vm1, %v2743_v44, -inf }
  0xd0   :  { %425 = vmax.xlane.f32.xlu1 %v424_v41  ;;  %v2741_v43 = vpop.f32.mrf.mxu1  ;;  %v2755_v50 = vpop.f32.mrf.mxu0 }
  0xd1   :  { %v430_v46 = vsel %vm372_vm1, %v2741_v43, -inf  ;;  %v379_v53 = vsel %vm372_vm1, %v2755_v50, -inf }
  0xd2   :  { %422 = vmax.xlane.f32.xlu0 %v421_v45  ;;  %v2749_v47 = vpop.f32.mrf.mxu1  ;;  %v2759_v52 = vpop.f32.mrf.mxu0 }
  0xd3   :  { %v427_v49 = vsel %vm372_vm1, %v2749_v47, -inf  ;;  %v388_v56 = vsel %vm372_vm1, %v2759_v52, -inf }
  0xd4   :  { %431 = vmax.xlane.f32.xlu1 %v430_v46  ;;  %v2757_v51 = vpop.f32.mrf.mxu1  ;;  %v2771_v58 = vpop.f32.mrf.mxu0 }
  0xd5   :  { %v436_v54 = vsel %vm372_vm1, %v2757_v51, -inf  ;;  %v385_v61 = vsel %vm372_vm1, %v2771_v58, -inf }
  0xd6   :  { %383 = vmax.xlane.f32.xlu0 %v382_v48  ;;  %v2765_v55 = vpop.f32.mrf.mxu1  ;;  %v2775_v60 = vpop.f32.mrf.mxu0 }
  0xd7   :  { %v433_v57 = vsel %vm372_vm1, %v2765_v55, -inf  ;;  %v394_v0 = vsel %vm372_vm1, %v2775_v60, -inf }
  0xd8   :  { %428 = vmax.xlane.f32.xlu1 %v427_v49  ;;  %v2773_v59 = vpop.f32.mrf.mxu1  ;;  %v2787_v2 = vpop.f32.mrf.mxu0 }
  0xd9   :  { %v442_v62 = vsel %vm372_vm1, %v2773_v59, -inf  ;;  %v391_v5 = vsel %vm372_vm1, %v2787_v2, -inf }
  0xda   :  { %380 = vmax.xlane.f32.xlu0 %v379_v53  ;;  %v2781_v63 = vpop.f32.mrf.mxu1  ;;  %v2791_v4 = vpop.f32.mrf.mxu0 }
  0xdb   :  { %v439_v1 = vsel %vm372_vm1, %v2781_v63, -inf  ;;  %v400_v8 = vsel %vm372_vm1, %v2791_v4, -inf }
  0xdc   :  { %437 = vmax.xlane.f32.xlu1 %v436_v54  ;;  %v2789_v3 = vpop.f32.mrf.mxu1  ;;  %v2803_v10 = vpop.f32.mrf.mxu0 }
  0xdd   :  { %v448_v6 = vsel %vm372_vm1, %v2789_v3, -inf  ;;  %v397_v13 = vsel %vm372_vm1, %v2803_v10, -inf }
  0xde   :  { %389 = vmax.xlane.f32.xlu0 %v388_v56  ;;  %v2797_v7 = vpop.f32.mrf.mxu1  ;;  %v2807_v12 = vpop.f32.mrf.mxu0 }
  0xdf   :  { %v445_v9 = vsel %vm372_vm1, %v2797_v7, -inf  ;;  %v406_v16 = vsel %vm372_vm1, %v2807_v12, -inf }
  0xe0   :  { %434 = vmax.xlane.f32.xlu1 %v433_v57  ;;  %v2805_v11 = vpop.f32.mrf.mxu1  ;;  %v2817_v17 = vpop.f32.mrf.mxu0 }
  0xe1   :  { %v454_v14 = vsel %vm372_vm1, %v2805_v11, -inf  ;;  %v403_v22 = vsel %vm372_vm1, %v2817_v17, -inf }
  0xe2   :  { %386 = vmax.xlane.f32.xlu0 %v385_v61  ;;  %v2813_v15 = vpop.f32.mrf.mxu1  ;;  %v2823_v20 = vpop.f32.mrf.mxu0 }
  0xe3   :  { %v451_v19 = vsel %vm372_vm1, %v2813_v15, -inf  ;;  %v412_v26 = vsel %vm372_vm1, %v2823_v20, -inf }
  0xe4   :  { %443 = vmax.xlane.f32.xlu1 %v442_v62  ;;  %v2819_v18 = vpop.f32.mrf.mxu1  ;;  %v2831_v24 = vpop.f32.mrf.mxu0 }
  0xe5   :  { %v460_v23 = vsel %vm372_vm1, %v2819_v18, -inf  ;;  %v409_v31 = vsel %vm372_vm1, %v2831_v24, -inf }
  0xe6   :  { %395 = vmax.xlane.f32.xlu0 %v394_v0  ;;  %v2825_v21 = vpop.f32.mrf.mxu1  ;;  %v2837_v27 = vpop.f32.mrf.mxu0 }
  0xe7   :  { %v457_v28 = vsel %vm372_vm1, %v2825_v21, -inf  ;;  %v418_v35 = vsel %vm372_vm1, %v2837_v27, -inf }
  0xe8   :  { %440 = vmax.xlane.f32.xlu1 %v439_v1  ;;  %v2833_v25 = vpop.f32.mrf.mxu1  ;;  %v2843_v30 = vpop.f32.mrf.mxu0 }
  0xe9   :  { %v415_v33 = vsel %vm372_vm1, %v2843_v30, -inf  ;;  %v466_v34 = vsel %vm372_vm1, %v2833_v25, -inf }
  0xea   :  { %392 = vmax.xlane.f32.xlu0 %v391_v5  ;;  %v2841_v29 = vpop.f32.mrf.mxu1 }
  0xeb   :  { %v463_v32 = vsel %vm372_vm1, %v2841_v29, -inf }
  0xec   :  { %449 = vmax.xlane.f32.xlu1 %v448_v6 }
  0xee   :  { %401 = vmax.xlane.f32.xlu0 %v400_v8 }
  0xf0   :  { %446 = vmax.xlane.f32.xlu1 %v445_v9 }
  0xf2   :  { %398 = vmax.xlane.f32.xlu0 %v397_v13 }
  0xf4   :  { %455 = vmax.xlane.f32.xlu1 %v454_v14 }
  0xf6   :  { %407 = vmax.xlane.f32.xlu0 %v406_v16 }
  0xf8   :  { %452 = vmax.xlane.f32.xlu1 %v451_v19 }
  0xfa   :  { %404 = vmax.xlane.f32.xlu0 %v403_v22 }
  0xfc   :  { %461 = vmax.xlane.f32.xlu1 %v460_v23 }
  0xfe   :  { %413 = vmax.xlane.f32.xlu0 %v412_v26 }
 0x100   :  { %458 = vmax.xlane.f32.xlu1 %v457_v28 }
 0x102   :  { %410 = vmax.xlane.f32.xlu0 %v409_v31 }
 0x104   :  { %464 = vmax.xlane.f32.xlu1 %v463_v32 }
 0x106   :  { %416 = vmax.xlane.f32.xlu0 %v415_v33 }
 0x108   :  { %467 = vmax.xlane.f32.xlu1 %v466_v34 }
 0x10a   :  { %419 = vmax.xlane.f32.xlu0 %v418_v35 }
 0x155   :  { %v378_v37 = vpop.xlane.xlu1 %377 }
 0x156   :  { %v470_v40 = vsub.f32 %v2727_v36, %v378_v37 }
 0x157   :  { %v375_v41 = vpop.xlane.xlu0 %374 }
 0x158   :  { %v503_v45 = vmul.f32 1.442695, %v470_v40  ;;  %v469_v46 = vsub.f32 %v2733_v39, %v375_v41 }
 0x159   :  { %v426_v48 = vpop.xlane.xlu1 %425 }
 0x15a   :  { %2416 = vpow2.f32 %v503_v45  ;;  %v501_v49 = vmul.f32 1.442695, %v469_v46  ;;  %v486_v53 = vsub.f32 %v2731_v38, %v426_v48 }
 0x15b   :  { %v423_v54 = vpop.xlane.xlu0 %422 }
 0x15c   :  { %2418 = vpow2.f32 %v501_v49  ;;  %v535_v56 = vmul.f32 1.442695, %v486_v53  ;;  %v485_v57 = vsub.f32 %v2739_v42, %v423_v54 }
 0x15d   :  { %v432_v61 = vpop.xlane.xlu1 %431 }
 0x15e   :  { %2420 = vpow2.f32 %v535_v56  ;;  %v533_v62 = vmul.f32 1.442695, %v485_v57  ;;  %v488_v0 = vsub.f32 %v2741_v43, %v432_v61 }
 0x15f   :  { %v384_v36 = vpop.xlane.xlu0 %383 }
 0x160   :  { %2422 = vpow2.f32 %v533_v62  ;;  %v539_v1 = vmul.f32 1.442695, %v488_v0  ;;  %v472_v39 = vsub.f32 %v2743_v44, %v384_v36 }
 0x161   :  { %v429_v5 = vpop.xlane.xlu1 %428 }
 0x162   :  { %v507_v6 = vmul.f32 1.442695, %v472_v39  ;;  %v487_v8 = vsub.f32 %v2749_v47, %v429_v5  ;;  %2424 = vpow2.f32 %v539_v1 }
 0x163   :  { %v381_v38 = vpop.xlane.xlu0 %380 }
 0x164   :  { %2426 = vpow2.f32 %v507_v6  ;;  %v537_v9 = vmul.f32 1.442695, %v487_v8  ;;  %v471_v42 = vsub.f32 %v2755_v50, %v381_v38 }
 0x165   :  { %v438_v13 = vpop.xlane.xlu1 %437 }
 0x166   :  { %v505_v14 = vmul.f32 1.442695, %v471_v42  ;;  %v490_v16 = vsub.f32 %v2757_v51, %v438_v13  ;;  %2428 = vpow2.f32 %v537_v9 }
 0x167   :  { %v2864_v43 = vpop.eup %2416  ;;  %v390_v19 = vpop.xlane.xlu0 %389 }
 0x168   :  { %2430 = vpow2.f32 %v505_v14  ;;  %v543_v44 = vmul.f32 1.442695, %v490_v16  ;;  %v474_v22 = vsub.f32 %v2759_v52, %v390_v19  ;;  %v568_v47 = vsel %vm372_vm1, %v2864_v43, 0.0 }
 0x169   :  { %v2869_v23 = vpop.eup %2418  ;;  %v435_v26 = vpop.xlane.xlu1 %434  ;;  %569 = vadd.xlane.f32.xlu0 %v568_v47 }
 0x16a   :  { %v511_v50 = vmul.f32 1.442695, %v474_v22  ;;  %v489_v28 = vsub.f32 %v2765_v55, %v435_v26  ;;  %2432 = vpow2.f32 %v543_v44  ;;  %v565_v32 = vsel %vm372_vm1, %v2869_v23, 0.0 }
 0x16b   :  { %v2872_v31 = vpop.eup %2420  ;;  %v387_v51 = vpop.xlane.xlu0 %386 }
 0x16c   :  { %2434 = vpow2.f32 %v511_v50  ;;  %v541_v33 = vmul.f32 1.442695, %v489_v28  ;;  %v473_v52 = vsub.f32 %v2771_v58, %v387_v51  ;;  %v616_v34 = vsel %vm372_vm1, %v2872_v31, 0.0 }
 0x16d   :  { %v2879_v35 = vpop.eup %2422  ;;  %617 = vadd.xlane.f32.xlu1 %v616_v34  ;;  %v444_v37 = vpop.xlane.xlu1 %443  ;;  %566 = vadd.xlane.f32.xlu0 %v565_v32 }
 0x16e   :  { %v509_v55 = vmul.f32 1.442695, %v473_v52  ;;  %v492_v40 = vsub.f32 %v2773_v59, %v444_v37  ;;  %2436 = vpow2.f32 %v541_v33  ;;  %v613_v58 = vsel %vm372_vm1, %v2879_v35, 0.0 }
 0x16f   :  { %v396_v41 = vpop.xlane.xlu0 %395  ;;  %v2882_v45 = vpop.eup %2424 }
 0x170   :  { %2438 = vpow2.f32 %v509_v55  ;;  %v547_v46 = vmul.f32 1.442695, %v492_v40  ;;  %v476_v48 = vsub.f32 %v2775_v60, %v396_v41  ;;  %v622_v0 = vsel %vm372_vm1, %v2882_v45, 0.0 }
 0x171   :  { %v2887_v49 = vpop.eup %2426  ;;  %v441_v53 = vpop.xlane.xlu1 %440  ;;  %614 = vadd.xlane.f32.xlu1 %v613_v58 }
 0x172   :  { %v515_v54 = vmul.f32 1.442695, %v476_v48  ;;  %v491_v56 = vsub.f32 %v2781_v63, %v441_v53  ;;  %v574_v59 = vsel %vm372_vm1, %v2887_v49, 0.0  ;;  %2440 = vpow2.f32 %v547_v46 }
 0x173   :  { %v393_v57 = vpop.xlane.xlu0 %392  ;;  %575 = vadd.xlane.f32.xlu0 %v574_v59  ;;  %v2892_v61 = vpop.eup %2428 }
 0x174   :  { %2442 = vpow2.f32 %v515_v54  ;;  %v545_v60 = vmul.f32 1.442695, %v491_v56  ;;  %v475_v62 = vsub.f32 %v2787_v2, %v393_v57  ;;  %v619_v9 = vsel %vm372_vm1, %v2892_v61, 0.0 }
 0x175   :  { %v2897_v36 = vpop.eup %2430  ;;  %v450_v1 = vpop.xlane.xlu1 %449  ;;  %623 = vadd.xlane.f32.xlu1 %v622_v0 }
 0x176   :  { %v513_v63 = vmul.f32 1.442695, %v475_v62  ;;  %v494_v39 = vsub.f32 %v2789_v3, %v450_v1  ;;  %v571_v5 = vsel %vm372_vm1, %v2897_v36, 0.0  ;;  %2444 = vpow2.f32 %v545_v60 }
 0x177   :  { %v402_v6 = vpop.xlane.xlu0 %401  ;;  %572 = vadd.xlane.f32.xlu0 %v571_v5  ;;  %v2902_v8 = vpop.eup %2432 }
 0x178   :  { %2446 = vpow2.f32 %v513_v63  ;;  %v551_v2 = vmul.f32 1.442695, %v494_v39  ;;  %v478_v38 = vsub.f32 %v2791_v4, %v402_v6  ;;  %v628_v47 = vsel %vm372_vm1, %v2902_v8, 0.0 }
 0x179   :  { %v2907_v42 = vpop.eup %2434  ;;  %v447_v13 = vpop.xlane.xlu1 %446  ;;  %620 = vadd.xlane.f32.xlu1 %v619_v9 }
 0x17a   :  { %v519_v3 = vmul.f32 1.442695, %v478_v38  ;;  %v493_v14 = vsub.f32 %v2797_v7, %v447_v13  ;;  %v580_v16 = vsel %vm372_vm1, %v2907_v42, 0.0  ;;  %2448 = vpow2.f32 %v551_v2 }
 0x17b   :  { %v399_v19 = vpop.xlane.xlu0 %398  ;;  %581 = vadd.xlane.f32.xlu0 %v580_v16  ;;  %v2912_v44 = vpop.eup %2436 }
 0x17c   :  { %2450 = vpow2.f32 %v519_v3  ;;  %v549_v4 = vmul.f32 1.442695, %v493_v14  ;;  %v477_v22 = vsub.f32 %v2803_v10, %v399_v19  ;;  %v625_v34 = vsel %vm372_vm1, %v2912_v44, 0.0 }
 0x17d   :  { %v2917_v26 = vpop.eup %2438  ;;  %v456_v50 = vpop.xlane.xlu1 %455  ;;  %629 = vadd.xlane.f32.xlu1 %v628_v47 }
 0x17e   :  { %v517_v7 = vmul.f32 1.442695, %v477_v22  ;;  %v496_v28 = vsub.f32 %v2805_v11, %v456_v50  ;;  %v577_v51 = vsel %vm372_vm1, %v2917_v26, 0.0  ;;  %2452 = vpow2.f32 %v549_v4 }
 0x17f   :  { %v408_v32 = vpop.xlane.xlu0 %407  ;;  %578 = vadd.xlane.f32.xlu0 %v577_v51  ;;  %v2922_v33 = vpop.eup %2440 }
 0x180   :  { %2454 = vpow2.f32 %v517_v7  ;;  %v555_v10 = vmul.f32 1.442695, %v496_v28  ;;  %v480_v52 = vsub.f32 %v2807_v12, %v408_v32  ;;  %v634_v53 = vsel %vm372_vm1, %v2922_v33, 0.0 }
 0x181   :  { %v2927_v37 = vpop.eup %2442  ;;  %v453_v55 = vpop.xlane.xlu1 %452  ;;  %626 = vadd.xlane.f32.xlu1 %v625_v34 }
 0x182   :  { %v523_v11 = vmul.f32 1.442695, %v480_v52  ;;  %v495_v40 = vsub.f32 %v2813_v15, %v453_v55  ;;  %v586_v41 = vsel %vm372_vm1, %v2927_v37, 0.0  ;;  %2456 = vpow2.f32 %v555_v10 }
 0x183   :  { %v405_v46 = vpop.xlane.xlu0 %404  ;;  %587 = vadd.xlane.f32.xlu0 %v586_v41  ;;  %v2932_v48 = vpop.eup %2444 }
 0x184   :  { %2458 = vpow2.f32 %v523_v11  ;;  %v553_v12 = vmul.f32 1.442695, %v495_v40  ;;  %v479_v58 = vsub.f32 %v2817_v17, %v405_v46  ;;  %v631_v1 = vsel %vm372_vm1, %v2932_v48, 0.0 }
 0x185   :  { %v2937_v54 = vpop.eup %2446  ;;  %v462_v56 = vpop.xlane.xlu1 %461  ;;  %635 = vadd.xlane.f32.xlu1 %v634_v53 }
 0x186   :  { %v521_v15 = vmul.f32 1.442695, %v479_v58  ;;  %v498_v59 = vsub.f32 %v2819_v18, %v462_v56  ;;  %v583_v57 = vsel %vm372_vm1, %v2937_v54, 0.0  ;;  %2460 = vpow2.f32 %v553_v12 }
 0x187   :  { %v414_v60 = vpop.xlane.xlu0 %413  ;;  %584 = vadd.xlane.f32.xlu0 %v583_v57  ;;  %v2942_v62 = vpop.eup %2448 }
 0x188   :  { %2462 = vpow2.f32 %v521_v15  ;;  %v559_v17 = vmul.f32 1.442695, %v498_v59  ;;  %v482_v0 = vsub.f32 %v2823_v20, %v414_v60  ;;  %v640_v13 = vsel %vm372_vm1, %v2942_v62, 0.0 }
 0x189   :  { %v2947_v63 = vpop.eup %2450  ;;  %v459_v39 = vpop.xlane.xlu1 %458  ;;  %632 = vadd.xlane.f32.xlu1 %v631_v1 }
 0x18a   :  { %v527_v18 = vmul.f32 1.442695, %v482_v0  ;;  %v497_v5 = vsub.f32 %v2825_v21, %v459_v39  ;;  %v592_v6 = vsel %vm372_vm1, %v2947_v63, 0.0  ;;  %2464 = vpow2.f32 %v559_v17 }
 0x18b   :  { %v411_v2 = vpop.xlane.xlu0 %410  ;;  %593 = vadd.xlane.f32.xlu0 %v592_v6  ;;  %v2952_v38 = vpop.eup %2452 }
 0x18c   :  { %2466 = vpow2.f32 %v527_v18  ;;  %v557_v20 = vmul.f32 1.442695, %v497_v5  ;;  %v481_v9 = vsub.f32 %v2831_v24, %v411_v2  ;;  %v637_v50 = vsel %vm372_vm1, %v2952_v38, 0.0 }
 0x18d   :  { %v2957_v3 = vpop.eup %2454  ;;  %v465_v14 = vpop.xlane.xlu1 %464  ;;  %641 = vadd.xlane.f32.xlu1 %v640_v13 }
 0x18e   :  { %v525_v21 = vmul.f32 1.442695, %v481_v9  ;;  %v499_v16 = vsub.f32 %v2841_v29, %v465_v14  ;;  %v589_v19 = vsel %vm372_vm1, %v2957_v3, 0.0  ;;  %2468 = vpow2.f32 %v557_v20 }
 0x18f   :  { %590 = vadd.xlane.f32.xlu0 %v589_v19  ;;  %v417_v4 = vpop.xlane.xlu0 %416  ;;  %v2962_v22 = vpop.eup %2456 }
 0x190   :  { %2470 = vpow2.f32 %v525_v21  ;;  %v561_v24 = vmul.f32 1.442695, %v499_v16  ;;  %v483_v47 = vsub.f32 %v2843_v30, %v417_v4  ;;  %v646_v55 = vsel %vm372_vm1, %v2962_v22, 0.0 }
 0x191   :  { %v2967_v7 = vpop.eup %2458  ;;  %v468_v28 = vpop.xlane.xlu1 %467  ;;  %638 = vadd.xlane.f32.xlu1 %v637_v50 }
 0x192   :  { %v529_v29 = vmul.f32 1.442695, %v483_v47  ;;  %v500_v51 = vsub.f32 %v2833_v25, %v468_v28  ;;  %v598_v32 = vsel %vm372_vm1, %v2967_v7, 0.0  ;;  %2472 = vpow2.f32 %v561_v24 }
 0x193   :  { %599 = vadd.xlane.f32.xlu0 %v598_v32  ;;  %v420_v10 = vpop.xlane.xlu0 %419  ;;  %v2972_v52 = vpop.eup %2460 }
 0x194   :  { %2474 = vpow2.f32 %v529_v29  ;;  %v563_v30 = vmul.f32 1.442695, %v500_v51  ;;  %v484_v34 = vsub.f32 %v2837_v27, %v420_v10  ;;  %v643_v46 = vsel %vm372_vm1, %v2972_v52, 0.0 }
 0x195   :  { %v2977_v11 = vpop.eup %2462  ;;  %647 = vadd.xlane.f32.xlu1 %v646_v55 }
 0x196   :  { %v531_v40 = vmul.f32 1.442695, %v484_v34  ;;  %v595_v25 = vsel %vm372_vm1, %v2977_v11, 0.0  ;;  %2476 = vpow2.f32 %v563_v30 }
 0x197   :  { %596 = vadd.xlane.f32.xlu0 %v595_v25  ;;  %v2981_v41 = vpop.eup %2464 }
 0x198   :  { %2478 = vpow2.f32 %v531_v40  ;;  %v652_v53 = vsel %vm372_vm1, %v2981_v41, 0.0 }
 0x199   :  { %v2985_v12 = vpop.eup %2466  ;;  %644 = vadd.xlane.f32.xlu1 %v643_v46 }
 0x19a   :  { %v604_v27 = vsel %vm372_vm1, %v2985_v12, 0.0 }
 0x19b   :  { %605 = vadd.xlane.f32.xlu0 %v604_v27  ;;  %v2989_v58 = vpop.eup %2468 }
 0x19c   :  { %v649_v57 = vsel %vm372_vm1, %v2989_v58, 0.0 }
 0x19d   :  { %v2993_v56 = vpop.eup %2470  ;;  %653 = vadd.xlane.f32.xlu1 %v652_v53 }
 0x19e   :  { %v601_v15 = vsel %vm372_vm1, %v2993_v56, 0.0 }
 0x19f   :  { %602 = vadd.xlane.f32.xlu0 %v601_v15  ;;  %v2997_v59 = vpop.eup %2472 }
 0x1a0   :  { %v655_v1 = vsel %vm372_vm1, %v2997_v59, 0.0 }
 0x1a1   :  { %v3001_v60 = vpop.eup %2474  ;;  %650 = vadd.xlane.f32.xlu1 %v649_v57 }
 0x1a2   :  { %v607_v17 = vsel %vm372_vm1, %v3001_v60, 0.0 }
 0x1a3   :  { %608 = vadd.xlane.f32.xlu0 %v607_v17  ;;  %v3005_v0 = vpop.eup %2476 }
 0x1a4   :  { %v658_v5 = vsel %vm372_vm1, %v3005_v0, 0.0 }
 0x1a5   :  { %v3009_v39 = vpop.eup %2478  ;;  %656 = vadd.xlane.f32.xlu1 %v655_v1 }
 0x1a6   :  { %v610_v18 = vsel %vm372_vm1, %v3009_v39, 0.0 }
 0x1a7   :  { %611 = vadd.xlane.f32.xlu0 %v610_v18 }
 0x1a9   :  { %659 = vadd.xlane.f32.xlu1 %v658_v5 }
 0x1f2   :  { %v570_v6 = vpop.xlane.xlu0 %569 }
 0x1f3   :  { %2480 = vrcp.f32 %v570_v6 }
 0x1f6   :  { %v618_v2 = vpop.xlane.xlu1 %617  ;;  %v567_v20 = vpop.xlane.xlu0 %566 }
 0x1f7   :  { %2482 = vrcp.f32 %v618_v2 }
 0x1f8   :  { %2484 = vrcp.f32 %v567_v20 }
 0x1fa   :  { %v615_v9 = vpop.xlane.xlu1 %614 }
 0x1fb   :  { %2486 = vrcp.f32 %v615_v9 }
 0x1fc   :  { %v576_v13 = vpop.xlane.xlu0 %575 }
 0x1fd   :  { %2488 = vrcp.f32 %v576_v13 }
 0x1fe   :  { %v624_v14 = vpop.xlane.xlu1 %623 }
 0x1ff   :  { %2490 = vrcp.f32 %v624_v14 }
 0x200   :  { %v2481_v21 = vpop.eup %2480  ;;  %v573_v16 = vpop.xlane.xlu0 %572 }
 0x201   :  { %v3016_v19 = vmul.f32 %v2481_v21, %v2864_v43  ;;  %2492 = vrcp.f32 %v573_v16 }
 0x202   :  { %v621_v4 = vpop.xlane.xlu1 %620 }
 0x203   :  { %5018 = vst [vmem:[#allocation5_spill] sm:$0xff] %v3016_v19  ;;  %726 = vst.msk [vmem:[%s4878_s2 + $0x8] sm:$0xff] %vm372_vm1, %v3016_v19  ;;  %2494 = vrcp.f32 %v621_v4  ;;  %v762_v24 = vsel %vm372_vm1, %v3016_v19, -inf }
 0x204   :  { %v2483_v47 = vpop.eup %2482  ;;  %763 = vmax.xlane.f32.xlu0 %v762_v24  ;;  %v582_v50 = vpop.xlane.xlu0 %581 }
 0x205   :  { %v2485_v28 = vpop.eup %2484  ;;  %v3026_v29 = vmul.f32 %v2483_v47, %v2872_v31  ;;  %2496 = vrcp.f32 %v582_v50 }
 0x206   :  { %v3029_v43 = vmul.f32 %v2485_v28, %v2869_v23  ;;  %v630_v51 = vpop.xlane.xlu1 %629 }
 0x207   :  { %5019 = vst [vmem:[#allocation6_spill] sm:$0xff] %v3026_v29  ;;  %742 = vst.msk [vmem:[%s4878_s2 + $0x88] sm:$0xff] %vm372_vm1, %v3026_v29  ;;  %2498 = vrcp.f32 %v630_v51  ;;  %v810_v32 = vsel %vm372_vm1, %v3026_v29, -inf }
 0x208   :  { %5020 = vst [vmem:[#allocation7_spill] sm:$0xff] %v3029_v43  ;;  %v2487_v10 = vpop.eup %2486  ;;  %725 = vst.msk [vmem:[%s4878_s2] sm:$0xff] %vm372_vm1, %v3029_v43  ;;  %811 = vmax.xlane.f32.xlu1 %v810_v32  ;;  %v759_v23 = vsel %vm372_vm1, %v3029_v43, -inf  ;;  %v579_v31 = vpop.xlane.xlu0 %578 }
 0x209   :  { %v3046_v30 = vmul.f32 %v2487_v10, %v2879_v35  ;;  %760 = vmax.xlane.f32.xlu0 %v759_v23  ;;  %2500 = vrcp.f32 %v579_v31 }
 0x20a   :  { %v2489_v34 = vpop.eup %2488  ;;  %v627_v55 = vpop.xlane.xlu1 %626 }
 0x20b   :  { %5021 = vst [vmem:[#allocation8_spill] sm:$0xff] %v3046_v30  ;;  %741 = vst.msk [vmem:[%s4878_s2 + $0x80] sm:$0xff] %vm372_vm1, %v3046_v30  ;;  %v3054_v40 = vmul.f32 %v2489_v34, %v2887_v49  ;;  %2502 = vrcp.f32 %v627_v55  ;;  %v807_v25 = vsel %vm372_vm1, %v3046_v30, -inf }
 0x20c   :  { %v2491_v46 = vpop.eup %2490  ;;  %808 = vmax.xlane.f32.xlu1 %v807_v25  ;;  %v588_v35 = vpop.xlane.xlu0 %587 }
 0x20d   :  { %5022 = vst [vmem:[#allocation9_spill] sm:$0xff] %v3054_v40  ;;  %728 = vst.msk [vmem:[%s4878_s2 + $0x18] sm:$0xff] %vm372_vm1, %v3054_v40  ;;  %v3064_v27 = vmul.f32 %v2491_v46, %v2882_v45  ;;  %2504 = vrcp.f32 %v588_v35  ;;  %v768_v49 = vsel %vm372_vm1, %v3054_v40, -inf }
 0x20e   :  { %v2493_v53 = vpop.eup %2492  ;;  %v636_v15 = vpop.xlane.xlu1 %635  ;;  %769 = vmax.xlane.f32.xlu0 %v768_v49 }
 0x20f   :  { %5023 = vst [vmem:[#allocation10_spill] sm:$0xff] %v3064_v27  ;;  %744 = vst.msk [vmem:[%s4878_s2 + $0x98] sm:$0xff] %vm372_vm1, %v3064_v27  ;;  %v3074_v57 = vmul.f32 %v2493_v53, %v2897_v36  ;;  %2506 = vrcp.f32 %v636_v15  ;;  %v816_v45 = vsel %vm372_vm1, %v3064_v27, -inf }
 0x210   :  { %v2495_v17 = vpop.eup %2494  ;;  %817 = vmax.xlane.f32.xlu1 %v816_v45  ;;  %v585_v1 = vpop.xlane.xlu0 %584 }
 0x211   :  { %5024 = vst [vmem:[#allocation11_spill] sm:$0xff] %v3074_v57  ;;  %727 = vst.msk [vmem:[%s4878_s2 + $0x10] sm:$0xff] %vm372_vm1, %v3074_v57  ;;  %v3084_v18 = vmul.f32 %v2495_v17, %v2892_v61  ;;  %2508 = vrcp.f32 %v585_v1  ;;  %v765_v36 = vsel %vm372_vm1, %v3074_v57, -inf }
 0x212   :  { %v2497_v5 = vpop.eup %2496  ;;  %v633_v6 = vpop.xlane.xlu1 %632  ;;  %766 = vmax.xlane.f32.xlu0 %v765_v36 }
 0x213   :  { %5025 = vst [vmem:[#allocation12_spill] sm:$0xff] %v3084_v18  ;;  %743 = vst.msk [vmem:[%s4878_s2 + $0x90] sm:$0xff] %vm372_vm1, %v3084_v18  ;;  %v3094_v2 = vmul.f32 %v2497_v5, %v2907_v42  ;;  %2510 = vrcp.f32 %v633_v6  ;;  %v813_v61 = vsel %vm372_vm1, %v3084_v18, -inf }
 0x214   :  { %v2499_v20 = vpop.eup %2498  ;;  %814 = vmax.xlane.f32.xlu1 %v813_v61  ;;  %v594_v9 = vpop.xlane.xlu0 %593 }
 0x215   :  { %5026 = vst [vmem:[#allocation13_spill] sm:$0xff] %v3094_v2  ;;  %730 = vst.msk [vmem:[%s4878_s2 + $0x28] sm:$0xff] %vm372_vm1, %v3094_v2  ;;  %v3104_v13 = vmul.f32 %v2499_v20, %v2902_v8  ;;  %2512 = vrcp.f32 %v594_v9  ;;  %v774_v42 = vsel %vm372_vm1, %v3094_v2, -inf }
 0x216   :  { %v2501_v14 = vpop.eup %2500  ;;  %v642_v21 = vpop.xlane.xlu1 %641  ;;  %775 = vmax.xlane.f32.xlu0 %v774_v42 }
 0x217   :  { %5027 = vst [vmem:[#allocation14_spill] sm:$0xff] %v3104_v13  ;;  %746 = vst.msk [vmem:[%s4878_s2 + $0xa8] sm:$0xff] %vm372_vm1, %v3104_v13  ;;  %v3114_v16 = vmul.f32 %v2501_v14, %v2917_v26  ;;  %2514 = vrcp.f32 %v642_v21  ;;  %v822_v8 = vsel %vm372_vm1, %v3104_v13, -inf }
 0x218   :  { %v2503_v4 = vpop.eup %2502  ;;  %823 = vmax.xlane.f32.xlu1 %v822_v8  ;;  %v591_v24 = vpop.xlane.xlu0 %590 }
 0x219   :  { %5028 = vst [vmem:[#allocation15_spill] sm:$0xff] %v3114_v16  ;;  %729 = vst.msk [vmem:[%s4878_s2 + $0x20] sm:$0xff] %vm372_vm1, %v3114_v16  ;;  %v3124_v47 = vmul.f32 %v2503_v4, %v2912_v44  ;;  %2516 = vrcp.f32 %v591_v24  ;;  %v771_v26 = vsel %vm372_vm1, %v3114_v16, -inf }
 0x21a   :  { %v2505_v50 = vpop.eup %2504  ;;  %v639_v28 = vpop.xlane.xlu1 %638  ;;  %772 = vmax.xlane.f32.xlu0 %v771_v26 }
 0x21b   :  { %5029 = vst [vmem:[#allocation16_spill] sm:$0xff] %v3124_v47  ;;  %745 = vst.msk [vmem:[%s4878_s2 + $0xa0] sm:$0xff] %vm372_vm1, %v3124_v47  ;;  %v3134_v51 = vmul.f32 %v2505_v50, %v2927_v37  ;;  %2518 = vrcp.f32 %v639_v28  ;;  %v819_v44 = vsel %vm372_vm1, %v3124_v47, -inf }
 0x21c   :  { %v2507_v32 = vpop.eup %2506  ;;  %820 = vmax.xlane.f32.xlu1 %v819_v44  ;;  %v600_v10 = vpop.xlane.xlu0 %599 }
 0x21d   :  { %5030 = vst [vmem:[#allocation17_spill] sm:$0xff] %v3134_v51  ;;  %732 = vst.msk [vmem:[%s4878_s2 + $0x38] sm:$0xff] %vm372_vm1, %v3134_v51  ;;  %v3144_v23 = vmul.f32 %v2507_v32, %v2922_v33  ;;  %2520 = vrcp.f32 %v600_v10  ;;  %v780_v37 = vsel %vm372_vm1, %v3134_v51, -inf }
 0x21e   :  { %v2509_v31 = vpop.eup %2508  ;;  %v648_v34 = vpop.xlane.xlu1 %647  ;;  %781 = vmax.xlane.f32.xlu0 %v780_v37 }
 0x21f   :  { %5031 = vst [vmem:[#allocation18_spill] sm:$0xff] %v3144_v23  ;;  %748 = vst.msk [vmem:[%s4878_s2 + $0xb8] sm:$0xff] %vm372_vm1, %v3144_v23  ;;  %v3154_v55 = vmul.f32 %v2509_v31, %v2937_v54  ;;  %2522 = vrcp.f32 %v648_v34  ;;  %v828_v33 = vsel %vm372_vm1, %v3144_v23, -inf }
 0x220   :  { %v2511_v25 = vpop.eup %2510  ;;  %829 = vmax.xlane.f32.xlu1 %v828_v33  ;;  %v597_v46 = vpop.xlane.xlu0 %596 }
 0x221   :  { %5032 = vst [vmem:[#allocation19_spill] sm:$0xff] %v3154_v55  ;;  %731 = vst.msk [vmem:[%s4878_s2 + $0x30] sm:$0xff] %vm372_vm1, %v3154_v55  ;;  %v3164_v35 = vmul.f32 %v2511_v25, %v2932_v48  ;;  %2524 = vrcp.f32 %v597_v46  ;;  %v777_v54 = vsel %vm372_vm1, %v3154_v55, -inf }
 0x222   :  { %v2513_v49 = vpop.eup %2512  ;;  %v645_v53 = vpop.xlane.xlu1 %644  ;;  %778 = vmax.xlane.f32.xlu0 %v777_v54 }
 0x223   :  { %5033 = vst [vmem:[#allocation20_spill] sm:$0xff] %v3164_v35  ;;  %747 = vst.msk [vmem:[%s4878_s2 + $0xb0] sm:$0xff] %vm372_vm1, %v3164_v35  ;;  %v3174_v15 = vmul.f32 %v2513_v49, %v2947_v63  ;;  %2526 = vrcp.f32 %v645_v53  ;;  %v825_v48 = vsel %vm372_vm1, %v3164_v35, -inf }
 0x224   :  { %v2515_v45 = vpop.eup %2514  ;;  %826 = vmax.xlane.f32.xlu1 %v825_v48  ;;  %v606_v17 = vpop.xlane.xlu0 %605 }
 0x225   :  { %5034 = vst [vmem:[#allocation21_spill] sm:$0xff] %v3174_v15  ;;  %734 = vst.msk [vmem:[%s4878_s2 + $0x48] sm:$0xff] %vm372_vm1, %v3174_v15  ;;  %v3184_v1 = vmul.f32 %v2515_v45, %v2942_v62  ;;  %2528 = vrcp.f32 %v606_v17  ;;  %v786_v63 = vsel %vm372_vm1, %v3174_v15, -inf }
 0x226   :  { %v2517_v36 = vpop.eup %2516  ;;  %v654_v5 = vpop.xlane.xlu1 %653  ;;  %787 = vmax.xlane.f32.xlu0 %v786_v63 }
 0x227   :  { %5035 = vst [vmem:[#allocation22_spill] sm:$0xff] %v3184_v1  ;;  %750 = vst.msk [vmem:[%s4878_s2 + $0xc8] sm:$0xff] %vm372_vm1, %v3184_v1  ;;  %v3194_v6 = vmul.f32 %v2517_v36, %v2957_v3  ;;  %2530 = vrcp.f32 %v654_v5  ;;  %v834_v62 = vsel %vm372_vm1, %v3184_v1, -inf }
 0x228   :  { %v2519_v61 = vpop.eup %2518  ;;  %835 = vmax.xlane.f32.xlu1 %v834_v62  ;;  %v603_v20 = vpop.xlane.xlu0 %602 }
 0x229   :  { %5036 = vst [vmem:[#allocation23_spill] sm:$0xff] %v3194_v6  ;;  %733 = vst.msk [vmem:[%s4878_s2 + $0x40] sm:$0xff] %vm372_vm1, %v3194_v6  ;;  %v3204_v9 = vmul.f32 %v2519_v61, %v2952_v38  ;;  %2532 = vrcp.f32 %v603_v20  ;;  %v783_v3 = vsel %vm372_vm1, %v3194_v6, -inf }
 0x22a   :  { %v2521_v42 = vpop.eup %2520  ;;  %v651_v14 = vpop.xlane.xlu1 %650  ;;  %784 = vmax.xlane.f32.xlu0 %v783_v3  ;;  %v757_v3 = vlaneseq }
 0x22b   :  { %5037 = vst [vmem:[#allocation24_spill] sm:$0xff] %v3204_v9  ;;  %749 = vst.msk [vmem:[%s4878_s2 + $0xc0] sm:$0xff] %vm372_vm1, %v3204_v9  ;;  %v3214_v21 = vmul.f32 %v2521_v42, %v2967_v7  ;;  %2534 = vrcp.f32 %v651_v14  ;;  %v831_v38 = vsel %vm372_vm1, %v3204_v9, -inf }
 0x22c   :  { %v2523_v8 = vpop.eup %2522  ;;  %832 = vmax.xlane.f32.xlu1 %v831_v38  ;;  %v609_v4 = vpop.xlane.xlu0 %608  ;;  %v3335_v42 = vand.u32 127, %v757_v3 }
 0x22d   :  { %5038 = vst [vmem:[#allocation25_spill] sm:$0xff] %v3214_v21  ;;  %736 = vst.msk [vmem:[%s4878_s2 + $0x58] sm:$0xff] %vm372_vm1, %v3214_v21  ;;  %v3224_v24 = vmul.f32 %v2523_v8, %v2962_v22  ;;  %2536 = vrcp.f32 %v609_v4  ;;  %v792_v7 = vsel %vm372_vm1, %v3214_v21, -inf }
 0x22e   :  { %v2525_v26 = vpop.eup %2524  ;;  %v657_v50 = vpop.xlane.xlu1 %656  ;;  %793 = vmax.xlane.f32.xlu0 %v792_v7  ;;  %5050 = vst [vmem:[#allocation37_spill] sm:$0xff] %v3335_v42 }
 0x22f   :  { %5039 = vst [vmem:[#allocation26_spill] sm:$0xff] %v3224_v24  ;;  %752 = vst.msk [vmem:[%s4878_s2 + $0xd8] sm:$0xff] %vm372_vm1, %v3224_v24  ;;  %v3234_v28 = vmul.f32 %v2525_v26, %v2977_v11  ;;  %2538 = vrcp.f32 %v657_v50  ;;  %v840_v22 = vsel %vm372_vm1, %v3224_v24, -inf }
 0x230   :  { %v2527_v44 = vpop.eup %2526  ;;  %841 = vmax.xlane.f32.xlu1 %v840_v22  ;;  %v612_v32 = vpop.xlane.xlu0 %611 }
 0x231   :  { %5040 = vst [vmem:[#allocation27_spill] sm:$0xff] %v3234_v28  ;;  %735 = vst.msk [vmem:[%s4878_s2 + $0x50] sm:$0xff] %vm372_vm1, %v3234_v28  ;;  %v3244_v10 = vmul.f32 %v2527_v44, %v2972_v52  ;;  %2540 = vrcp.f32 %v612_v32  ;;  %v789_v11 = vsel %vm372_vm1, %v3234_v28, -inf }
 0x232   :  { %v2529_v37 = vpop.eup %2528  ;;  %v660_v31 = vpop.xlane.xlu1 %659  ;;  %790 = vmax.xlane.f32.xlu0 %v789_v11 }
 0x233   :  { %5041 = vst [vmem:[#allocation28_spill] sm:$0xff] %v3244_v10  ;;  %751 = vst.msk [vmem:[%s4878_s2 + $0xd0] sm:$0xff] %vm372_vm1, %v3244_v10  ;;  %v3254_v34 = vmul.f32 %v2529_v37, %v2985_v12  ;;  %2542 = vrcp.f32 %v660_v31  ;;  %v837_v52 = vsel %vm372_vm1, %v3244_v10, -inf }
 0x234   :  { %v2531_v33 = vpop.eup %2530  ;;  %838 = vmax.xlane.f32.xlu1 %v837_v52 }
 0x235   :  { %5042 = vst [vmem:[#allocation29_spill] sm:$0xff] %v3254_v34  ;;  %738 = vst.msk [vmem:[%s4878_s2 + $0x68] sm:$0xff] %vm372_vm1, %v3254_v34  ;;  %v3264_v25 = vmul.f32 %v2531_v33, %v2981_v41  ;;  %v798_v46 = vsel %vm372_vm1, %v3254_v34, -inf }
 0x236   :  { %v2533_v12 = vpop.eup %2532  ;;  %799 = vmax.xlane.f32.xlu0 %v798_v46 }
 0x237   :  { %5043 = vst [vmem:[#allocation30_spill] sm:$0xff] %v3264_v25  ;;  %754 = vst.msk [vmem:[%s4878_s2 + $0xe8] sm:$0xff] %vm372_vm1, %v3264_v25  ;;  %v3274_v54 = vmul.f32 %v2533_v12, %v2993_v56  ;;  %v846_v49 = vsel %vm372_vm1, %v3264_v25, -inf }
 0x238   :  { %v2535_v53 = vpop.eup %2534  ;;  %847 = vmax.xlane.f32.xlu1 %v846_v49 }
 0x239   :  { %5044 = vst [vmem:[#allocation31_spill] sm:$0xff] %v3274_v54  ;;  %737 = vst.msk [vmem:[%s4878_s2 + $0x60] sm:$0xff] %vm372_vm1, %v3274_v54  ;;  %v3284_v41 = vmul.f32 %v2535_v53, %v2989_v58  ;;  %v795_v48 = vsel %vm372_vm1, %v3274_v54, -inf }
 0x23a   :  { %v2537_v45 = vpop.eup %2536  ;;  %796 = vmax.xlane.f32.xlu0 %v795_v48 }
 0x23b   :  { %5045 = vst [vmem:[#allocation32_spill] sm:$0xff] %v3284_v41  ;;  %753 = vst.msk [vmem:[%s4878_s2 + $0xe0] sm:$0xff] %vm372_vm1, %v3284_v41  ;;  %v3294_v56 = vmul.f32 %v2537_v45, %v3001_v60  ;;  %v843_v17 = vsel %vm372_vm1, %v3284_v41, -inf }
 0x23c   :  { %v2539_v63 = vpop.eup %2538  ;;  %844 = vmax.xlane.f32.xlu1 %v843_v17 }
 0x23d   :  { %5046 = vst [vmem:[#allocation33_spill] sm:$0xff] %v3294_v56  ;;  %739 = vst.msk [vmem:[%s4878_s2 + $0x70] sm:$0xff] %vm372_vm1, %v3294_v56  ;;  %v3304_v58 = vmul.f32 %v2539_v63, %v2997_v59  ;;  %v801_v36 = vsel %vm372_vm1, %v3294_v56, -inf }
 0x23e   :  { %v2541_v5 = vpop.eup %2540  ;;  %802 = vmax.xlane.f32.xlu0 %v801_v36 }
 0x23f   :  { %5047 = vst [vmem:[#allocation34_spill] sm:$0xff] %v3304_v58  ;;  %755 = vst.msk [vmem:[%s4878_s2 + $0xf0] sm:$0xff] %vm372_vm1, %v3304_v58  ;;  %v3314_v60 = vmul.f32 %v2541_v5, %v3009_v39  ;;  %v849_v62 = vsel %vm372_vm1, %v3304_v58, -inf }
 0x240   :  { %v2543_v61 = vpop.eup %2542  ;;  %850 = vmax.xlane.f32.xlu1 %v849_v62 }
 0x241   :  { %5048 = vst [vmem:[#allocation35_spill] sm:$0xff] %v3314_v60  ;;  %740 = vst.msk [vmem:[%s4878_s2 + $0x78] sm:$0xff] %vm372_vm1, %v3314_v60  ;;  %v3324_v59 = vmul.f32 %v2543_v61, %v3005_v0  ;;  %v804_v20 = vsel %vm372_vm1, %v3314_v60, -inf }
 0x242   :  { %805 = vmax.xlane.f32.xlu0 %v804_v20 }
 0x243   :  { %5049 = vst [vmem:[#allocation36_spill] sm:$0xff] %v3324_v59  ;;  %756 = vst.msk [vmem:[%s4878_s2 + $0xf8] sm:$0xff] %vm372_vm1, %v3324_v59  ;;  %v852_v39 = vsel %vm372_vm1, %v3324_v59, -inf  ;;  %s2566_s2 = smov [#allocation2]  }
 0x244   :  { %853 = vmax.xlane.f32.xlu1 %v852_v39  ;;  %s2273_s5 = sshll.u32 %s2566_s2, 4  ;;  %s2274_s5 = int_to_ptr.vmem [resolvable:$true] %s2273_s5 }
 0x245   :  { %s2544_s6 = scalar_lea.vmem %s2274_s5, 256  ;;  %p2549_p1 = scmp.lt.s32.totalorder %s2274_s5, %s2274_s5 }
 0x246   :  { %p2545_p0 = scmp.ne.s32.totalorder %s2274_s5, %s2544_s6  ;;  %p2550_p2 = scmp.lt.s32.totalorder %s2544_s6, %s2544_s6 }
 0x248   :  { %p2551_p3 = por %p2550_p2, %p2549_p1 }
 0x24a   :  { %p2552_p4 = pnand %p2551_p3, %p2545_p0 }
 0x28d   :  { %v764_v14 = vpop.xlane.xlu0 %763 }
 0x28e   :  { %vm856_vm2 = vcmp.eq.f32.partialorder %v3016_v19, %v764_v14 }
 0x28f   :  { %v888_v0 = vsel %vm856_vm2, %v3335_v42, 8 }
 0x290   :  { %v3340_v38 = vsel %vm372_vm1, %v888_v0, 2147483647 }
 0x291   :  { %v812_v8 = vpop.xlane.xlu1 %811  ;;  %v936_v4 = vshra.s32 %v3340_v38, 16 }
 0x292   :  { %vm872_vm3 = vcmp.eq.f32.partialorder %v3026_v29, %v812_v8  ;;  %v761_v7 = vpop.xlane.xlu0 %760 }
 0x293   :  { %v904_v26 = vsel %vm872_vm3, %v3335_v42, 8  ;;  %vm855_vm4 = vcmp.eq.f32.partialorder %v3029_v43, %v761_v7  ;;  %v3346_v50 = vcvt.s32.f32 %v936_v4 }
 0x294   :  { %v887_v22 = vsel %vm855_vm4, %v3335_v42, 8  ;;  %v3350_v44 = vsel %vm372_vm1, %v904_v26, 2147483647 }
 0x295   :  { %v3353_v32 = vsel %vm372_vm1, %v887_v22, 2147483647  ;;  %v809_v11 = vpop.xlane.xlu1 %808  ;;  %939 = vmin.xlane.f32.xlu0 %v3346_v50  ;;  %v1176_v37 = vshra.s32 %v3350_v44, 16 }
 0x296   :  { %vm871_vm5 = vcmp.eq.f32.partialorder %v3046_v30, %v809_v11  ;;  %v921_v31 = vshra.s32 %v3353_v32, 16 }
 0x297   :  { %v903_v52 = vsel %vm871_vm5, %v3335_v42, 8  ;;  %v770_v33 = vpop.xlane.xlu0 %769  ;;  %v3360_v46 = vcvt.s32.f32 %v1176_v37 }
 0x298   :  { %v3363_v12 = vsel %vm372_vm1, %v903_v52, 2147483647  ;;  %vm858_vm6 = vcmp.eq.f32.partialorder %v3054_v40, %v770_v33  ;;  %v3366_v49 = vcvt.s32.f32 %v921_v31 }
 0x299   :  { %v890_v53 = vsel %vm858_vm6, %v3335_v42, 8  ;;  %1179 = vmin.xlane.f32.xlu1 %v3360_v46  ;;  %v818_v48 = vpop.xlane.xlu1 %817  ;;  %v1161_v45 = vshra.s32 %v3363_v12, 16 }
 0x29a   :  { %v3372_v17 = vsel %vm372_vm1, %v890_v53, 2147483647  ;;  %vm874_vm7 = vcmp.eq.f32.partialorder %v3064_v27, %v818_v48  ;;  %924 = vmin.xlane.f32.xlu0 %v3366_v49 }
 0x29b   :  { %v906_v63 = vsel %vm874_vm7, %v3335_v42, 8  ;;  %v767_v36 = vpop.xlane.xlu0 %766  ;;  %v3377_v5 = vcvt.s32.f32 %v1161_v45  ;;  %v966_v62 = vshra.s32 %v3372_v17, 16 }
 0x29c   :  { %v3381_v61 = vsel %vm372_vm1, %v906_v63, 2147483647  ;;  %vm857_vm8 = vcmp.eq.f32.partialorder %v3074_v57, %v767_v36 }
 0x29d   :  { %v889_v20 = vsel %vm857_vm8, %v3335_v42, 8  ;;  %1164 = vmin.xlane.f32.xlu1 %v3377_v5  ;;  %v815_v39 = vpop.xlane.xlu1 %814  ;;  %v3386_v3 = vcvt.s32.f32 %v966_v62  ;;  %v1206_v14 = vshra.s32 %v3381_v61, 16 }
 0x29e   :  { %v3390_v0 = vsel %vm372_vm1, %v889_v20, 2147483647  ;;  %vm873_vm9 = vcmp.eq.f32.partialorder %v3084_v18, %v815_v39 }
 0x29f   :  { %v905_v8 = vsel %vm873_vm9, %v3335_v42, 8  ;;  %969 = vmin.xlane.f32.xlu0 %v3386_v3  ;;  %v776_v4 = vpop.xlane.xlu0 %775  ;;  %v3395_v7 = vcvt.s32.f32 %v1206_v14  ;;  %v951_v26 = vshra.s32 %v3390_v0, 16 }
 0x2a0   :  { %v3399_v22 = vsel %vm372_vm1, %v905_v8, 2147483647  ;;  %vm860_vm10 = vcmp.eq.f32.partialorder %v3094_v2, %v776_v4 }
 0x2a1   :  { %v892_v11 = vsel %vm860_vm10, %v3335_v42, 8  ;;  %1209 = vmin.xlane.f32.xlu1 %v3395_v7  ;;  %v824_v37 = vpop.xlane.xlu1 %823  ;;  %v3404_v31 = vcvt.s32.f32 %v951_v26  ;;  %v1191_v52 = vshra.s32 %v3399_v22, 16 }
 0x2a2   :  { %v3408_v33 = vsel %vm372_vm1, %v892_v11, 2147483647  ;;  %vm876_vm11 = vcmp.eq.f32.partialorder %v3104_v13, %v824_v37 }
 0x2a3   :  { %v908_v53 = vsel %vm876_vm11, %v3335_v42, 8  ;;  %954 = vmin.xlane.f32.xlu0 %v3404_v31  ;;  %v773_v48 = vpop.xlane.xlu0 %772  ;;  %v3413_v45 = vcvt.s32.f32 %v1191_v52  ;;  %v996_v63 = vshra.s32 %v3408_v33, 16 }
 0x2a4   :  { %v3417_v36 = vsel %vm372_vm1, %v908_v53, 2147483647  ;;  %vm859_vm12 = vcmp.eq.f32.partialorder %v3114_v16, %v773_v48 }
 0x2a5   :  { %v891_v62 = vsel %vm859_vm12, %v3335_v42, 8  ;;  %1194 = vmin.xlane.f32.xlu1 %v3413_v45  ;;  %v821_v20 = vpop.xlane.xlu1 %820  ;;  %v3422_v39 = vcvt.s32.f32 %v996_v63  ;;  %v1236_v14 = vshra.s32 %v3417_v36, 16 }
 0x2a6   :  { %v3426_v8 = vsel %vm372_vm1, %v891_v62, 2147483647  ;;  %vm875_vm13 = vcmp.eq.f32.partialorder %v3124_v47, %v821_v20 }
 0x2a7   :  { %v907_v4 = vsel %vm875_vm13, %v3335_v42, 8  ;;  %999 = vmin.xlane.f32.xlu0 %v3422_v39  ;;  %v782_v26 = vpop.xlane.xlu0 %781  ;;  %v3431_v11 = vcvt.s32.f32 %v1236_v14  ;;  %v981_v37 = vshra.s32 %v3426_v8, 16 }
 0x2a8   :  { %v3435_v52 = vsel %vm372_vm1, %v907_v4, 2147483647  ;;  %vm862_vm14 = vcmp.eq.f32.partialorder %v3134_v51, %v782_v26 }
 0x2a9   :  { %v894_v53 = vsel %vm862_vm14, %v3335_v42, 8  ;;  %1239 = vmin.xlane.f32.xlu1 %v3431_v11  ;;  %v830_v48 = vpop.xlane.xlu1 %829  ;;  %v3440_v63 = vcvt.s32.f32 %v981_v37  ;;  %v1221_v62 = vshra.s32 %v3435_v52, 16 }
 0x2aa   :  { %v3444_v20 = vsel %vm372_vm1, %v894_v53, 2147483647  ;;  %vm878_vm15 = vcmp.eq.f32.partialorder %v3144_v23, %v830_v48 }
 0x2ab   :  { %v910_v14 = vsel %vm878_vm15, %v3335_v42, 8  ;;  %984 = vmin.xlane.f32.xlu0 %v3440_v63  ;;  %v779_v4 = vpop.xlane.xlu0 %778  ;;  %v3449_v26 = vcvt.s32.f32 %v1221_v62  ;;  %v1026_v51 = vshra.s32 %v3444_v20, 16 }
 0x2ac   :  { %v3453_v47 = vsel %vm372_vm1, %v910_v14, 2147483647  ;;  %vm861_vm0 = vcmp.eq.f32.partialorder %v3154_v55, %v779_v4 }
 0x2ad   :  { %v893_v37 = vsel %vm861_vm0, %v3335_v42, 8  ;;  %1224 = vmin.xlane.f32.xlu1 %v3449_v26  ;;  %v827_v53 = vpop.xlane.xlu1 %826  ;;  %v3458_v48 = vcvt.s32.f32 %v1026_v51  ;;  %v1266_v23 = vshra.s32 %v3453_v47, 16 }
 0x2ae   :  { %v3462_v16 = vsel %vm372_vm1, %v893_v37, 2147483647  ;;  %vm877_vm2 = vcmp.eq.f32.partialorder %v3164_v35, %v827_v53 }
 0x2af   :  { %v909_v62 = vsel %vm877_vm2, %v3335_v42, 8  ;;  %1029 = vmin.xlane.f32.xlu0 %v3458_v48  ;;  %v788_v14 = vpop.xlane.xlu0 %787  ;;  %v3467_v4 = vcvt.s32.f32 %v1266_v23  ;;  %v1011_v55 = vshra.s32 %v3462_v16, 16 }
 0x2b0   :  { %v3471_v13 = vsel %vm372_vm1, %v909_v62, 2147483647  ;;  %vm864_vm3 = vcmp.eq.f32.partialorder %v3174_v15, %v788_v14 }
 0x2b1   :  { %v896_v51 = vsel %vm864_vm3, %v3335_v42, 8  ;;  %1269 = vmin.xlane.f32.xlu1 %v3467_v4  ;;  %v836_v37 = vpop.xlane.xlu1 %835  ;;  %v3476_v53 = vcvt.s32.f32 %v1011_v55  ;;  %v1251_v35 = vshra.s32 %v3471_v13, 16 }
 0x2b2   :  { %v3480_v2 = vsel %vm372_vm1, %v896_v51, 2147483647  ;;  %vm880_vm4 = vcmp.eq.f32.partialorder %v3184_v1, %v836_v37 }
 0x2b3   :  { %v912_v23 = vsel %vm880_vm4, %v3335_v42, 8  ;;  %1014 = vmin.xlane.f32.xlu0 %v3476_v53  ;;  %v785_v62 = vpop.xlane.xlu0 %784  ;;  %v3485_v14 = vcvt.s32.f32 %v1251_v35  ;;  %v1056_v15 = vshra.s32 %v3480_v2, 16 }
 0x2b4   :  { %v3489_v18 = vsel %vm372_vm1, %v912_v23, 2147483647  ;;  %vm863_vm5 = vcmp.eq.f32.partialorder %v3194_v6, %v785_v62 }
 0x2b5   :  { %v895_v55 = vsel %vm863_vm5, %v3335_v42, 8  ;;  %1254 = vmin.xlane.f32.xlu1 %v3485_v14  ;;  %v833_v51 = vpop.xlane.xlu1 %832  ;;  %v3494_v37 = vcvt.s32.f32 %v1056_v15  ;;  %v1296_v1 = vshra.s32 %v3489_v18, 16 }
 0x2b6   :  { %v3498_v57 = vsel %vm372_vm1, %v895_v55, 2147483647  ;;  %vm879_vm6 = vcmp.eq.f32.partialorder %v3204_v9, %v833_v51 }
 0x2b7   :  { %v911_v35 = vsel %vm879_vm6, %v3335_v42, 8  ;;  %1059 = vmin.xlane.f32.xlu0 %v3494_v37  ;;  %v794_v23 = vpop.xlane.xlu0 %793  ;;  %v3503_v62 = vcvt.s32.f32 %v1296_v1  ;;  %v1041_v6 = vshra.s32 %v3498_v57, 16 }
 0x2b8   :  { %v3507_v27 = vsel %vm372_vm1, %v911_v35, 2147483647  ;;  %vm866_vm7 = vcmp.eq.f32.partialorder %v3214_v21, %v794_v23 }
 0x2b9   :  { %v898_v15 = vsel %vm866_vm7, %v3335_v42, 8  ;;  %1299 = vmin.xlane.f32.xlu1 %v3503_v62  ;;  %v842_v55 = vpop.xlane.xlu1 %841  ;;  %v3512_v51 = vcvt.s32.f32 %v1041_v6  ;;  %v1281_v9 = vshra.s32 %v3507_v27, 16 }
 0x2ba   :  { %v3516_v40 = vsel %vm372_vm1, %v898_v15, 2147483647  ;;  %vm882_vm8 = vcmp.eq.f32.partialorder %v3224_v24, %v842_v55 }
 0x2bb   :  { %v914_v1 = vsel %vm882_vm8, %v3335_v42, 8  ;;  %1044 = vmin.xlane.f32.xlu0 %v3512_v51  ;;  %v791_v35 = vpop.xlane.xlu0 %790  ;;  %v3521_v23 = vcvt.s32.f32 %v1281_v9  ;;  %v1086_v21 = vshra.s32 %v3516_v40, 16 }
 0x2bc   :  { %v3525_v30 = vsel %vm372_vm1, %v914_v1, 2147483647  ;;  %vm865_vm9 = vcmp.eq.f32.partialorder %v3234_v28, %v791_v35 }
 0x2bd   :  { %v897_v6 = vsel %vm865_vm9, %v3335_v42, 8  ;;  %1284 = vmin.xlane.f32.xlu1 %v3521_v23  ;;  %v839_v15 = vpop.xlane.xlu1 %838  ;;  %v3530_v55 = vcvt.s32.f32 %v1086_v21  ;;  %v1326_v24 = vshra.s32 %v3525_v30, 16 }
 0x2be   :  { %v3534_v43 = vsel %vm372_vm1, %v897_v6, 2147483647  ;;  %vm881_vm10 = vcmp.eq.f32.partialorder %v3244_v10, %v839_v15 }
 0x2bf   :  { %v913_v9 = vsel %vm881_vm10, %v3335_v42, 8  ;;  %1089 = vmin.xlane.f32.xlu0 %v3530_v55  ;;  %v800_v1 = vpop.xlane.xlu0 %799  ;;  %v3539_v35 = vcvt.s32.f32 %v1326_v24  ;;  %v1071_v28 = vshra.s32 %v3534_v43, 16 }
 0x2c0   :  { %v3543_v29 = vsel %vm372_vm1, %v913_v9, 2147483647  ;;  %vm868_vm11 = vcmp.eq.f32.partialorder %v3254_v34, %v800_v1 }
 0x2c1   :  { %5051 = vst [vmem:[#allocation38_spill] sm:$0xff] %v3539_v35  ;;  %v900_v21 = vsel %vm868_vm11, %v3335_v42, 8  ;;  %1329 = vmin.xlane.f32.xlu1 %v3539_v35  ;;  %v848_v6 = vpop.xlane.xlu1 %847  ;;  %v3548_v15 = vcvt.s32.f32 %v1071_v28  ;;  %v1311_v10 = vshra.s32 %v3543_v29, 16 }
 0x2c2   :  { %v3552_v19 = vsel %vm372_vm1, %v900_v21, 2147483647  ;;  %vm884_vm12 = vcmp.eq.f32.partialorder %v3264_v25, %v848_v6 }
 0x2c3   :  { %5052 = vst [vmem:[#allocation39_spill] sm:$0xff] %v3548_v15  ;;  %v916_v24 = vsel %vm884_vm12, %v3335_v42, 8  ;;  %1074 = vmin.xlane.f32.xlu0 %v3548_v15  ;;  %v797_v9 = vpop.xlane.xlu0 %796  ;;  %v3557_v1 = vcvt.s32.f32 %v1311_v10  ;;  %v1116_v34 = vshra.s32 %v3552_v19, 16 }
 0x2c4   :  { %v3561_v35 = vsel %vm372_vm1, %v916_v24, 2147483647  ;;  %vm867_vm13 = vcmp.eq.f32.partialorder %v3274_v54, %v797_v9 }
 0x2c5   :  { %5053 = vst [vmem:[#allocation40_spill] sm:$0xff] %v3557_v1  ;;  %v899_v28 = vsel %vm867_vm13, %v3335_v42, 8  ;;  %1314 = vmin.xlane.f32.xlu1 %v3557_v1  ;;  %v845_v21 = vpop.xlane.xlu1 %844  ;;  %v3566_v6 = vcvt.s32.f32 %v1116_v34  ;;  %v1356_v25 = vshra.s32 %v3561_v35, 16 }
 0x2c6   :  { %v3570_v15 = vsel %vm372_vm1, %v899_v28, 2147483647  ;;  %vm883_vm14 = vcmp.eq.f32.partialorder %v3284_v41, %v845_v21 }
 0x2c7   :  { %5054 = vst [vmem:[#allocation41_spill] sm:$0xff] %v3566_v6  ;;  %v915_v10 = vsel %vm883_vm14, %v3335_v42, 8  ;;  %1119 = vmin.xlane.f32.xlu0 %v3566_v6  ;;  %v803_v24 = vpop.xlane.xlu0 %802  ;;  %v3575_v9 = vcvt.s32.f32 %v1356_v25  ;;  %v1101_v54 = vshra.s32 %v3570_v15, 16 }
 0x2c8   :  { %v3579_v1 = vsel %vm372_vm1, %v915_v10, 2147483647  ;;  %vm869_vm15 = vcmp.eq.f32.partialorder %v3294_v56, %v803_v24 }
 0x2c9   :  { %5055 = vst [vmem:[#allocation42_spill] sm:$0xff] %v3575_v9  ;;  %v901_v34 = vsel %vm869_vm15, %v3335_v42, 8  ;;  %1359 = vmin.xlane.f32.xlu1 %v3575_v9  ;;  %v851_v28 = vpop.xlane.xlu1 %850  ;;  %v3584_v21 = vcvt.s32.f32 %v1101_v54  ;;  %v1341_v41 = vshra.s32 %v3579_v1, 16 }
 0x2ca   :  { %v3588_v6 = vsel %vm372_vm1, %v901_v34, 2147483647  ;;  %vm885_vm0 = vcmp.eq.f32.partialorder %v3304_v58, %v851_v28 }
 0x2cb   :  { %5056 = vst [vmem:[#allocation43_spill] sm:$0xff] %v3584_v21  ;;  %v917_v25 = vsel %vm885_vm0, %v3335_v42, 8  ;;  %1104 = vmin.xlane.f32.xlu0 %v3584_v21  ;;  %v806_v10 = vpop.xlane.xlu0 %805  ;;  %v3593_v24 = vcvt.s32.f32 %v1341_v41  ;;  %v1131_v56 = vshra.s32 %v3588_v6, 16 }
 0x2cc   :  { %v3597_v9 = vsel %vm372_vm1, %v917_v25, 2147483647  ;;  %vm870_vm2 = vcmp.eq.f32.partialorder %v3314_v60, %v806_v10 }
 0x2cd   :  { %v902_v54 = vsel %vm870_vm2, %v3335_v42, 8  ;;  %1344 = vmin.xlane.f32.xlu1 %v3593_v24  ;;  %v854_v34 = vpop.xlane.xlu1 %853  ;;  %v3602_v28 = vcvt.s32.f32 %v1131_v56  ;;  %v1371_v58 = vshra.s32 %v3597_v9, 16 }
 0x2ce   :  { %v3606_v21 = vsel %vm372_vm1, %v902_v54, 2147483647  ;;  %vm886_vm3 = vcmp.eq.f32.partialorder %v3324_v59, %v854_v34  ;;  %v1175_v59 = vand.u32 65535, %v3350_v44 }
 0x2cf   :  { %v918_v41 = vsel %vm886_vm3, %v3335_v42, 8  ;;  %1134 = vmin.xlane.f32.xlu0 %v3602_v28  ;;  %v3611_v25 = vcvt.s32.f32 %v1371_v58  ;;  %v1146_v10 = vshra.s32 %v3606_v21, 16  ;;  %v935_v58 = vand.u32 65535, %v3340_v38 }
 0x2d0   :  { %v3615_v60 = vsel %vm372_vm1, %v918_v41, 2147483647 }
 0x2d1   :  { %5057 = vst [vmem:[#allocation44_spill] sm:$0xff] %v3611_v25  ;;  %5058 = vst [vmem:[#allocation45_spill] sm:$0xff] %v3615_v60  ;;  %1374 = vmin.xlane.f32.xlu1 %v3611_v25  ;;  %v3618_v56 = vcvt.s32.f32 %v1146_v10  ;;  %v1386_v54 = vshra.s32 %v3615_v60, 16  ;;  %v937_v41 = vcvt.s32.f32 %v935_v58  ;;  %v920_v10 = vand.u32 65535, %v3353_v32 }
 0x2d3   :  { %5059 = vst [vmem:[#allocation46_spill] sm:$0xff] %v3618_v56  ;;  %1149 = vmin.xlane.f32.xlu0 %v3618_v56  ;;  %v3622_v34 = vcvt.s32.f32 %v1386_v54  ;;  %v1177_v54 = vcvt.s32.f32 %v1175_v59  ;;  %v1160_v56 = vand.u32 65535, %v3363_v12  ;;  %v922_v38 = vcvt.s32.f32 %v920_v10 }
 0x2d4   :  { %v1205_v12 = vand.u32 65535, %v3381_v61  ;;  %v950_v10 = vand.u32 65535, %v3390_v0  ;;  %v995_v0 = vand.u32 65535, %v3408_v33  ;;  %v980_v33 = vand.u32 65535, %v3426_v8 }
 0x2d5   :  { %5060 = vst [vmem:[#allocation47_spill] sm:$0xff] %v3622_v34  ;;  %1389 = vmin.xlane.f32.xlu1 %v3622_v34  ;;  %v1162_v59 = vcvt.s32.f32 %v1160_v56  ;;  %v1190_v56 = vand.u32 65535, %v3399_v22  ;;  %v1235_v22 = vand.u32 65535, %v3417_v36  ;;  %v1220_v36 = vand.u32 65535, %v3435_v52 }
 0x2d6   :  { %v1025_v8 = vand.u32 65535, %v3444_v20  ;;  %v1265_v52 = vand.u32 65535, %v3453_v47  ;;  %v1010_v20 = vand.u32 65535, %v3462_v16  ;;  %v1250_v47 = vand.u32 65535, %v3471_v13 }
 0x2d7   :  { %v1055_v16 = vand.u32 65535, %v3480_v2  ;;  %v1295_v13 = vand.u32 65535, %v3489_v18  ;;  %v1040_v2 = vand.u32 65535, %v3498_v57  ;;  %v1280_v18 = vand.u32 65535, %v3507_v27 }
 0x2d8   :  { %v1085_v57 = vand.u32 65535, %v3516_v40  ;;  %v1325_v27 = vand.u32 65535, %v3525_v30  ;;  %v1070_v40 = vand.u32 65535, %v3534_v43  ;;  %v1310_v30 = vand.u32 65535, %v3543_v29 }
 0x2d9   :  { %v1115_v43 = vand.u32 65535, %v3552_v19  ;;  %v1355_v29 = vand.u32 65535, %v3561_v35  ;;  %v1100_v19 = vand.u32 65535, %v3570_v15  ;;  %v1340_v35 = vand.u32 65535, %v3579_v1 }
 0x2da   :  { %v1130_v15 = vand.u32 65535, %v3588_v6  ;;  %v1370_v1 = vand.u32 65535, %v3597_v9  ;;  %v1145_v6 = vand.u32 65535, %v3606_v21  ;;  %v5069_v21 = vld [vmem:[#allocation46_spill] sm:$0xff] }
 0x31e   :  { %v3627_v42 = vpop.xlane.xlu0 %939 }
 0x31f   :  { %vm941_vm4 = vcmp.eq.f32.partialorder %v3346_v50, %v3627_v42  ;;  %v965_v50 = vand.u32 65535, %v3372_v17 }
 0x320   :  { %v942_v25 = vsel %vm941_vm4, %v937_v41, inf }
 0x321   :  { %943 = vmin.xlane.f32.xlu0 %v942_v25  ;;  %v967_v41 = vcvt.s32.f32 %v965_v50  ;;  %v1192_v50 = vcvt.s32.f32 %v1190_v56 }
 0x322   :  { %v3632_v60 = vpop.xlane.xlu1 %1179 }
 0x323   :  { %v3635_v34 = vpop.xlane.xlu0 %924  ;;  %vm1181_vm5 = vcmp.eq.f32.partialorder %v3360_v46, %v3632_v60 }
 0x324   :  { %v1182_v44 = vsel %vm1181_vm5, %v1177_v54, inf  ;;  %vm926_vm6 = vcmp.eq.f32.partialorder %v3366_v49, %v3635_v34  ;;  %v1207_v54 = vcvt.s32.f32 %v1205_v12 }
 0x325   :  { %1183 = vmin.xlane.f32.xlu1 %v1182_v44  ;;  %v927_v32 = vsel %vm926_vm6, %v922_v38, inf  ;;  %v952_v38 = vcvt.s32.f32 %v950_v10  ;;  %v982_v10 = vcvt.s32.f32 %v980_v33  ;;  %v1057_v33 = vcvt.s32.f32 %v1055_v16 }
 0x326   :  { %928 = vmin.xlane.f32.xlu0 %v927_v32  ;;  %v3642_v25 = vpop.xlane.xlu1 %1164 }
 0x327   :  { %vm1166_vm7 = vcmp.eq.f32.partialorder %v3377_v5, %v3642_v25 }
 0x328   :  { %v3647_v58 = vpop.xlane.xlu0 %969  ;;  %v1167_v46 = vsel %vm1166_vm7, %v1162_v59, inf  ;;  %v997_v59 = vcvt.s32.f32 %v995_v0  ;;  %v1267_v0 = vcvt.s32.f32 %v1265_v52 }
 0x329   :  { %1168 = vmin.xlane.f32.xlu1 %v1167_v46  ;;  %vm971_vm8 = vcmp.eq.f32.partialorder %v3386_v3, %v3647_v58  ;;  %v1237_v46 = vcvt.s32.f32 %v1235_v22 }
 0x32a   :  { %v3652_v49 = vpop.xlane.xlu1 %1209  ;;  %v972_v17 = vsel %vm971_vm8, %v967_v41, inf }
 0x32b   :  { %973 = vmin.xlane.f32.xlu0 %v972_v17  ;;  %vm1211_vm9 = vcmp.eq.f32.partialorder %v3395_v7, %v3652_v49 }
 0x32c   :  { %v3657_v5 = vpop.xlane.xlu0 %954  ;;  %v1212_v61 = vsel %vm1211_vm9, %v1207_v54, inf  ;;  %v1222_v54 = vcvt.s32.f32 %v1220_v36 }
 0x32d   :  { %1213 = vmin.xlane.f32.xlu1 %v1212_v61  ;;  %vm956_vm10 = vcmp.eq.f32.partialorder %v3404_v31, %v3657_v5  ;;  %v1027_v61 = vcvt.s32.f32 %v1025_v8  ;;  %v1282_v8 = vcvt.s32.f32 %v1280_v18 }
 0x32e   :  { %v3662_v3 = vpop.xlane.xlu1 %1194  ;;  %v957_v44 = vsel %vm956_vm10, %v952_v38, inf }
 0x32f   :  { %958 = vmin.xlane.f32.xlu0 %v957_v44  ;;  %vm1196_vm11 = vcmp.eq.f32.partialorder %v3413_v45, %v3662_v3 }
 0x330   :  { %v3667_v7 = vpop.xlane.xlu0 %999  ;;  %v1197_v32 = vsel %vm1196_vm11, %v1192_v50, inf  ;;  %v1012_v50 = vcvt.s32.f32 %v1010_v20 }
 0x331   :  { %1198 = vmin.xlane.f32.xlu1 %v1197_v32  ;;  %vm1001_vm12 = vcmp.eq.f32.partialorder %v3422_v39, %v3667_v7  ;;  %v1252_v32 = vcvt.s32.f32 %v1250_v47 }
 0x332   :  { %v3672_v31 = vpop.xlane.xlu1 %1239  ;;  %v1002_v12 = vsel %vm1001_vm12, %v997_v59, inf }
 0x333   :  { %1003 = vmin.xlane.f32.xlu0 %v1002_v12  ;;  %vm1241_vm13 = vcmp.eq.f32.partialorder %v3431_v11, %v3672_v31 }
 0x334   :  { %v3677_v45 = vpop.xlane.xlu0 %984  ;;  %v1242_v41 = vsel %vm1241_vm13, %v1237_v46, inf  ;;  %v1297_v46 = vcvt.s32.f32 %v1295_v13  ;;  %v5064_v13 = vld [vmem:[#allocation41_spill] sm:$0xff] }
 0x335   :  { %1243 = vmin.xlane.f32.xlu1 %v1242_v41  ;;  %vm986_vm14 = vcmp.eq.f32.partialorder %v3440_v63, %v3677_v45  ;;  %v1042_v41 = vcvt.s32.f32 %v1040_v2  ;;  %v1357_v2 = vcvt.s32.f32 %v1355_v29  ;;  %v946_v29 = vcvt.f32.s32 %v3627_v42 }
 0x336   :  { %v3682_v39 = vpop.xlane.xlu1 %1224  ;;  %v987_v17 = vsel %vm986_vm14, %v982_v10, inf  ;;  %v976_v42 = vcvt.f32.s32 %v3647_v58 }
 0x337   :  { %988 = vmin.xlane.f32.xlu0 %v987_v17  ;;  %vm1226_vm15 = vcmp.eq.f32.partialorder %v3449_v26, %v3682_v39 }
 0x338   :  { %v3687_v11 = vpop.xlane.xlu0 %1029  ;;  %v1227_v56 = vsel %vm1226_vm15, %v1222_v54, inf  ;;  %v1087_v54 = vcvt.s32.f32 %v1085_v57 }
 0x339   :  { %1228 = vmin.xlane.f32.xlu1 %v1227_v56  ;;  %vm1031_vm0 = vcmp.eq.f32.partialorder %v3458_v48, %v3687_v11  ;;  %v1327_v56 = vcvt.s32.f32 %v1325_v27 }
 0x33a   :  { %v3692_v63 = vpop.xlane.xlu1 %1269  ;;  %v1032_v38 = vsel %vm1031_vm0, %v1027_v61, inf  ;;  %v5061_v61 = vld [vmem:[#allocation38_spill] sm:$0xff] }
 0x33b   :  { %1033 = vmin.xlane.f32.xlu0 %v1032_v38  ;;  %vm1271_vm2 = vcmp.eq.f32.partialorder %v3467_v4, %v3692_v63  ;;  %v1072_v38 = vcvt.s32.f32 %v1070_v40 }
 0x33c   :  { %v3697_v26 = vpop.xlane.xlu0 %1014  ;;  %v1272_v44 = vsel %vm1271_vm2, %v1267_v0, inf  ;;  %v5062_v0 = vld [vmem:[#allocation39_spill] sm:$0xff] }
 0x33d   :  { %1273 = vmin.xlane.f32.xlu1 %v1272_v44  ;;  %vm1016_vm3 = vcmp.eq.f32.partialorder %v3476_v53, %v3697_v26  ;;  %v1312_v44 = vcvt.s32.f32 %v1310_v30  ;;  %v5067_v30 = vld [vmem:[#allocation45_spill] sm:$0xff] }
 0x33e   :  { %v3702_v48 = vpop.xlane.xlu1 %1254  ;;  %v1017_v22 = vsel %vm1016_vm3, %v1012_v50, inf  ;;  %v5063_v50 = vld [vmem:[#allocation40_spill] sm:$0xff]  ;;  %v1385_v9 = vand.u32 65535, %v5067_v30 }
 0x33f   :  { %1018 = vmin.xlane.f32.xlu0 %v1017_v22  ;;  %vm1256_vm4 = vcmp.eq.f32.partialorder %v3485_v14, %v3702_v48 }
 0x340   :  { %v3707_v4 = vpop.xlane.xlu0 %1059  ;;  %v1257_v59 = vsel %vm1256_vm4, %v1252_v32, inf  ;;  %v1117_v32 = vcvt.s32.f32 %v1115_v43 }
 0x341   :  { %1258 = vmin.xlane.f32.xlu1 %v1257_v59  ;;  %vm1061_vm5 = vcmp.eq.f32.partialorder %v3494_v37, %v3707_v4 }
 0x342   :  { %v3712_v53 = vpop.xlane.xlu1 %1299  ;;  %v1062_v12 = vsel %vm1061_vm5, %v1057_v33, inf }
 0x343   :  { %1063 = vmin.xlane.f32.xlu0 %v1062_v12  ;;  %vm1301_vm6 = vcmp.eq.f32.partialorder %v3503_v62, %v3712_v53  ;;  %v5065_v12 = vld [vmem:[#allocation42_spill] sm:$0xff] }
 0x344   :  { %v3717_v14 = vpop.xlane.xlu0 %1044  ;;  %v1302_v36 = vsel %vm1301_vm6, %v1297_v46, inf }
 0x345   :  { %1303 = vmin.xlane.f32.xlu1 %v1302_v36  ;;  %vm1046_vm7 = vcmp.eq.f32.partialorder %v3512_v51, %v3717_v14  ;;  %v1102_v36 = vcvt.s32.f32 %v1100_v19 }
 0x346   :  { %v3722_v37 = vpop.xlane.xlu1 %1284  ;;  %v1047_v10 = vsel %vm1046_vm7, %v1042_v41, inf  ;;  %v5066_v41 = vld [vmem:[#allocation43_spill] sm:$0xff] }
 0x347   :  { %1048 = vmin.xlane.f32.xlu0 %v1047_v10  ;;  %vm1286_vm8 = vcmp.eq.f32.partialorder %v3521_v23, %v3722_v37 }
 0x348   :  { %v3727_v62 = vpop.xlane.xlu0 %1089  ;;  %v1287_v17 = vsel %vm1286_vm8, %v1282_v8, inf  ;;  %v1342_v8 = vcvt.s32.f32 %v1340_v35 }
 0x349   :  { %1288 = vmin.xlane.f32.xlu1 %v1287_v17  ;;  %vm1091_vm9 = vcmp.eq.f32.partialorder %v3530_v55, %v3727_v62 }
 0x34a   :  { %v3732_v51 = vpop.xlane.xlu1 %1329  ;;  %v1092_v52 = vsel %vm1091_vm9, %v1087_v54, inf  ;;  %v1132_v54 = vcvt.s32.f32 %v1130_v15  ;;  %v5072_v15 = vld [vmem:[#allocation37_spill] sm:$0xff] }
 0x34b   :  { %1093 = vmin.xlane.f32.xlu0 %v1092_v52  ;;  %vm1331_vm10 = vcmp.eq.f32.partialorder %v5061_v61, %v3732_v51  ;;  %v5068_v61 = vld [vmem:[#allocation44_spill] sm:$0xff] }
 0x34c   :  { %v3737_v23 = vpop.xlane.xlu0 %1074  ;;  %v1332_v20 = vsel %vm1331_vm10, %v1327_v56, inf  ;;  %v1372_v56 = vcvt.s32.f32 %v1370_v1 }
 0x34d   :  { %1333 = vmin.xlane.f32.xlu1 %v1332_v20  ;;  %vm1076_vm11 = vcmp.eq.f32.partialorder %v5062_v0, %v3737_v23  ;;  %v1387_v0 = vcvt.s32.f32 %v1385_v9  ;;  %v5076_v9 = vld [vmem:[#allocation6_spill] sm:$0xff] }
 0x34e   :  { %v3742_v55 = vpop.xlane.xlu1 %1314  ;;  %v1077_v47 = vsel %vm1076_vm11, %v1072_v38, inf  ;;  %v1147_v38 = vcvt.s32.f32 %v1145_v6  ;;  %v1216_v6 = vcvt.f32.s32 %v3652_v49 }
 0x34f   :  { %1078 = vmin.xlane.f32.xlu0 %v1077_v47  ;;  %vm1316_vm12 = vcmp.eq.f32.partialorder %v5063_v50, %v3742_v55  ;;  %v5070_v47 = vld [vmem:[#allocation47_spill] sm:$0xff] }
 0x350   :  { %v3747_v16 = vpop.xlane.xlu0 %1119  ;;  %v1317_v22 = vsel %vm1316_vm12, %v1312_v44, inf }
 0x351   :  { %1318 = vmin.xlane.f32.xlu1 %v1317_v22  ;;  %vm1121_vm13 = vcmp.eq.f32.partialorder %v5064_v13, %v3747_v16  ;;  %v947_v22 = vshll.u32 %v946_v29, 16  ;;  %v931_v13 = vcvt.f32.s32 %v3635_v34 }
 0x352   :  { %v3752_v59 = vpop.xlane.xlu1 %1359  ;;  %v1122_v33 = vsel %vm1121_vm13, %v1117_v32, inf  ;;  %v1186_v32 = vcvt.f32.s32 %v3632_v60 }
 0x353   :  { %1123 = vmin.xlane.f32.xlu0 %v1122_v33  ;;  %vm1361_vm14 = vcmp.eq.f32.partialorder %v5065_v12, %v3752_v59  ;;  %v1171_v12 = vcvt.f32.s32 %v3642_v25 }
 0x354   :  { %v3757_v46 = vpop.xlane.xlu0 %1104  ;;  %v1362_v18 = vsel %vm1361_vm14, %v1357_v2, inf  ;;  %v1187_v35 = vshll.u32 %v1186_v32, 16  ;;  %v1006_v32 = vcvt.f32.s32 %v3667_v7 }
 0x355   :  { %1363 = vmin.xlane.f32.xlu1 %v1362_v18  ;;  %vm1106_vm15 = vcmp.eq.f32.partialorder %v5066_v41, %v3757_v46  ;;  %v932_v41 = vshll.u32 %v931_v13, 16  ;;  %v5080_v13 = vld [vmem:[#allocation8_spill] sm:$0xff] }
 0x356   :  { %v3762_v57 = vpop.xlane.xlu1 %1344  ;;  %v1107_v10 = vsel %vm1106_vm15, %v1102_v36, inf }
 0x357   :  { %1108 = vmin.xlane.f32.xlu0 %v1107_v10  ;;  %vm1346_vm0 = vcmp.eq.f32.partialorder %v3593_v24, %v3762_v57 }
 0x358   :  { %v3767_v27 = vpop.xlane.xlu0 %1134  ;;  %v1347_v17 = vsel %vm1346_vm0, %v1342_v8, inf  ;;  %v5073_v8 = vld [vmem:[#allocation5_spill] sm:$0xff] }
 0x359   :  { %1348 = vmin.xlane.f32.xlu1 %v1347_v17  ;;  %vm1136_vm2 = vcmp.eq.f32.partialorder %v3602_v28, %v3767_v27 }
 0x35a   :  { %v3772_v40 = vpop.xlane.xlu1 %1374  ;;  %v1137_v52 = vsel %vm1136_vm2, %v1132_v54, inf  ;;  %v1172_v54 = vshll.u32 %v1171_v12, 16 }
 0x35b   :  { %1138 = vmin.xlane.f32.xlu0 %v1137_v52  ;;  %vm1376_vm3 = vcmp.eq.f32.partialorder %v5068_v61, %v3772_v40  ;;  %v977_v52 = vshll.u32 %v976_v42, 16 }
 0x35c   :  { %v3777_v24 = vpop.xlane.xlu0 %1149  ;;  %v1377_v20 = vsel %vm1376_vm3, %v1372_v56, inf  ;;  %v961_v56 = vcvt.f32.s32 %v3657_v5 }
 0x35d   :  { %1378 = vmin.xlane.f32.xlu1 %v1377_v20  ;;  %vm1151_vm4 = vcmp.eq.f32.partialorder %v5069_v21, %v3777_v24  ;;  %v5078_v21 = vld [vmem:[#allocation7_spill] sm:$0xff] }
 0x35e   :  { %v3781_v43 = vpop.xlane.xlu1 %1389  ;;  %v1152_v28 = vsel %vm1151_vm4, %v1147_v38, inf }
 0x35f   :  { %1153 = vmin.xlane.f32.xlu0 %v1152_v28  ;;  %vm1391_vm5 = vcmp.eq.f32.partialorder %v5070_v47, %v3781_v43  ;;  %v1201_v28 = vcvt.f32.s32 %v3662_v3 }
 0x360   :  { %v1392_v44 = vsel %vm1391_vm5, %v1387_v0, inf }
 0x361   :  { %1393 = vmin.xlane.f32.xlu1 %v1392_v44  ;;  %v1217_v44 = vshll.u32 %v1216_v6, 16 }
 0x3aa   :  { %v944_v50 = vpop.xlane.xlu0 %943 }
 0x3ab   :  { %v945_v19 = vcvt.f32.s32 %v944_v50 }
 0x3ad   :  { %v3788_v33 = vadd.s32 %v947_v22, %v945_v19  ;;  %v962_v22 = vshll.u32 %v961_v56, 16 }
 0x3ae   :  { %v1184_v2 = vpop.xlane.xlu1 %1183 }
 0x3af   :  { %5071 = vst [vmem:[#allocation38_spill] sm:$0xff] %v3788_v33  ;;  %v1185_v18 = vcvt.f32.s32 %v1184_v2  ;;  %v929_v36 = vpop.xlane.xlu0 %928  ;;  %vm1400_vm6 = vcmp.eq.s32.totalorder %v5072_v15, %v3788_v33 }
 0x3b0   :  { %v930_v10 = vcvt.f32.s32 %v929_v36  ;;  %v3798_v60 = vsel %vm1400_vm6, -inf, %v5073_v8  ;;  %v1246_v36 = vcvt.f32.s32 %v3672_v31  ;;  %v991_v31 = vcvt.f32.s32 %v3677_v45 }
 0x3b1   :  { %v3800_v34 = vadd.s32 %v1187_v35, %v1185_v18  ;;  %v1498_v25 = vsel %vm372_vm1, %v3798_v60, -inf  ;;  %v1202_v18 = vshll.u32 %v1201_v28, 16  ;;  %v1231_v45 = vcvt.f32.s32 %v3682_v39 }
 0x3b2   :  { %v3804_v1 = vadd.s32 %v932_v41, %v930_v10  ;;  %v1169_v17 = vpop.xlane.xlu1 %1168  ;;  %1499 = vmax.xlane.f32.xlu0 %v1498_v25  ;;  %v5082_v41 = vld [vmem:[#allocation9_spill] sm:$0xff]  ;;  %v1036_v39 = vcvt.f32.s32 %v3687_v11  ;;  %v1276_v11 = vcvt.f32.s32 %v3692_v63  ;;  %v1021_v63 = vcvt.f32.s32 %v3697_v26 }
 0x3b3   :  { %5074 = vst [vmem:[#allocation39_spill] sm:$0xff] %v3800_v34  ;;  %v1170_v58 = vcvt.f32.s32 %v1169_v17  ;;  %vm1416_vm7 = vcmp.eq.s32.totalorder %v5072_v15, %v3800_v34  ;;  %v1261_v26 = vcvt.f32.s32 %v3702_v48  ;;  %v1066_v48 = vcvt.f32.s32 %v3707_v4 }
 0x3b4   :  { %5075 = vst [vmem:[#allocation40_spill] sm:$0xff] %v3804_v1  ;;  %v974_v30 = vpop.xlane.xlu0 %973  ;;  %v3814_v61 = vsel %vm1416_vm7, -inf, %v5076_v9  ;;  %vm1399_vm8 = vcmp.eq.s32.totalorder %v5072_v15, %v3804_v1  ;;  %v1306_v4 = vcvt.f32.s32 %v3712_v53  ;;  %v1051_v53 = vcvt.f32.s32 %v3717_v14 }
 0x3b5   :  { %v3818_v20 = vadd.s32 %v1172_v54, %v1170_v58  ;;  %v975_v49 = vcvt.f32.s32 %v974_v30  ;;  %v1546_v38 = vsel %vm372_vm1, %v3814_v61, -inf  ;;  %v3826_v5 = vsel %vm1399_vm8, -inf, %v5078_v21  ;;  %v5084_v58 = vld [vmem:[#allocation10_spill] sm:$0xff] }
 0x3b6   :  { %1547 = vmax.xlane.f32.xlu1 %v1546_v38  ;;  %v1214_v0 = vpop.xlane.xlu1 %1213  ;;  %v1495_v47 = vsel %vm372_vm1, %v3826_v5, -inf  ;;  %v1007_v54 = vshll.u32 %v1006_v32, 16  ;;  %v1247_v38 = vshll.u32 %v1246_v36, 16  ;;  %v992_v32 = vshll.u32 %v991_v31, 16 }
 0x3b7   :  { %5077 = vst [vmem:[#allocation41_spill] sm:$0xff] %v3818_v20  ;;  %v3831_v29 = vadd.s32 %v977_v52, %v975_v49  ;;  %v1215_v50 = vcvt.f32.s32 %v1214_v0  ;;  %1496 = vmax.xlane.f32.xlu0 %v1495_v47  ;;  %vm1415_vm9 = vcmp.eq.s32.totalorder %v5072_v15, %v3818_v20  ;;  %v5086_v0 = vld [vmem:[#allocation11_spill] sm:$0xff]  ;;  %v1291_v14 = vcvt.f32.s32 %v3722_v37 }
 0x3b8   :  { %v959_v19 = vpop.xlane.xlu0 %958  ;;  %v3840_v3 = vsel %vm1415_vm9, -inf, %v5080_v13  ;;  %v1096_v37 = vcvt.f32.s32 %v3727_v62  ;;  %v1336_v62 = vcvt.f32.s32 %v3732_v51  ;;  %v1081_v51 = vcvt.f32.s32 %v3737_v23 }
 0x3b9   :  { %5079 = vst [vmem:[#allocation42_spill] sm:$0xff] %v3831_v29  ;;  %v3842_v2 = vadd.s32 %v1217_v44, %v1215_v50  ;;  %v960_v35 = vcvt.f32.s32 %v959_v19  ;;  %v1543_v12 = vsel %vm372_vm1, %v3840_v3, -inf  ;;  %vm1402_vm10 = vcmp.eq.s32.totalorder %v5072_v15, %v3831_v29 }
 0x3ba   :  { %1544 = vmax.xlane.f32.xlu1 %v1543_v12  ;;  %v1199_v7 = vpop.xlane.xlu1 %1198  ;;  %v3853_v42 = vsel %vm1402_vm10, -inf, %v5082_v41  ;;  %v1321_v23 = vcvt.f32.s32 %v3742_v55  ;;  %v1126_v55 = vcvt.f32.s32 %v3747_v16  ;;  %v1366_v16 = vcvt.f32.s32 %v3752_v59 }
 0x3bb   :  { %5081 = vst [vmem:[#allocation43_spill] sm:$0xff] %v3842_v2  ;;  %v3855_v10 = vadd.s32 %v962_v22, %v960_v35  ;;  %v1200_v25 = vcvt.f32.s32 %v1199_v7  ;;  %v1504_v17 = vsel %vm372_vm1, %v3853_v42, -inf  ;;  %vm1418_vm11 = vcmp.eq.s32.totalorder %v5072_v15, %v3842_v2  ;;  %v5088_v35 = vld [vmem:[#allocation12_spill] sm:$0xff] }
 0x3bc   :  { %1505 = vmax.xlane.f32.xlu0 %v1504_v17  ;;  %v1004_v6 = vpop.xlane.xlu0 %1003  ;;  %v3866_v52 = vsel %vm1418_vm11, -inf, %v5084_v58  ;;  %v1111_v59 = vcvt.f32.s32 %v3757_v46  ;;  %v1351_v46 = vcvt.f32.s32 %v3762_v57 }
 0x3bd   :  { %5083 = vst [vmem:[#allocation45_spill] sm:$0xff] %v3855_v10  ;;  %v3868_v56 = vadd.s32 %v1202_v18, %v1200_v25  ;;  %v1005_v30 = vcvt.f32.s32 %v1004_v6  ;;  %v1552_v49 = vsel %vm372_vm1, %v3866_v52, -inf  ;;  %vm1401_vm12 = vcmp.eq.s32.totalorder %v5072_v15, %v3855_v10 }
 0x3be   :  { %1553 = vmax.xlane.f32.xlu1 %v1552_v49  ;;  %v1244_v28 = vpop.xlane.xlu1 %1243  ;;  %v3879_v47 = vsel %vm1401_vm12, -inf, %v5086_v0  ;;  %v1232_v25 = vshll.u32 %v1231_v45, 16 }
 0x3bf   :  { %5085 = vst [vmem:[#allocation44_spill] sm:$0xff] %v3868_v56  ;;  %v3881_v44 = vadd.s32 %v1007_v54, %v1005_v30  ;;  %v1245_v50 = vcvt.f32.s32 %v1244_v28  ;;  %v1501_v22 = vsel %vm372_vm1, %v3879_v47, -inf  ;;  %vm1417_vm13 = vcmp.eq.s32.totalorder %v5072_v15, %v3868_v56  ;;  %v5090_v54 = vld [vmem:[#allocation13_spill] sm:$0xff]  ;;  %v5092_v28 = vld [vmem:[#allocation14_spill] sm:$0xff] }
 0x3c0   :  { %1502 = vmax.xlane.f32.xlu0 %v1501_v22  ;;  %v989_v19 = vpop.xlane.xlu0 %988  ;;  %v3892_v12 = vsel %vm1417_vm13, -inf, %v5088_v35 }
 0x3c1   :  { %5087 = vst [vmem:[#allocation46_spill] sm:$0xff] %v3881_v44  ;;  %v3894_v18 = vadd.s32 %v1247_v38, %v1245_v50  ;;  %v990_v36 = vcvt.f32.s32 %v989_v19  ;;  %v1549_v7 = vsel %vm372_vm1, %v3892_v12, -inf  ;;  %vm1404_vm14 = vcmp.eq.s32.totalorder %v5072_v15, %v3881_v44 }
 0x3c2   :  { %1550 = vmax.xlane.f32.xlu1 %v1549_v7  ;;  %v1229_v17 = vpop.xlane.xlu1 %1228  ;;  %v3905_v31 = vsel %vm1404_vm14, -inf, %v5090_v54  ;;  %v1037_v38 = vshll.u32 %v1036_v39, 16  ;;  %v1277_v39 = vshll.u32 %v1276_v11, 16  ;;  %v5094_v7 = vld [vmem:[#allocation15_spill] sm:$0xff]  ;;  %v1022_v11 = vshll.u32 %v1021_v63, 16 }
 0x3c3   :  { %5089 = vst [vmem:[#allocation47_spill] sm:$0xff] %v3894_v18  ;;  %v3907_v6 = vadd.s32 %v992_v32, %v990_v36  ;;  %v1230_v30 = vcvt.f32.s32 %v1229_v17  ;;  %v1510_v49 = vsel %vm372_vm1, %v3905_v31, -inf  ;;  %vm1420_vm15 = vcmp.eq.s32.totalorder %v5072_v15, %v3894_v18 }
 0x3c4   :  { %1511 = vmax.xlane.f32.xlu0 %v1510_v49  ;;  %v1034_v45 = vpop.xlane.xlu0 %1033  ;;  %v3918_v50 = vsel %vm1420_vm15, -inf, %v5092_v28  ;;  %v1262_v63 = vshll.u32 %v1261_v26, 16  ;;  %v1067_v26 = vshll.u32 %v1066_v48, 16  ;;  %v1307_v48 = vshll.u32 %v1306_v4, 16 }
 0x3c5   :  { %5091 = vst [vmem:[#allocation48_spill] sm:$0xff] %v3907_v6  ;;  %v3920_v22 = vadd.s32 %v1232_v25, %v1230_v30  ;;  %v1035_v32 = vcvt.f32.s32 %v1034_v45  ;;  %v1558_v19 = vsel %vm372_vm1, %v3918_v50, -inf  ;;  %vm4991_vm0 = vcmp.eq.s32.totalorder %v5072_v15, %v3907_v6 }
 0x3c6   :  { %1559 = vmax.xlane.f32.xlu1 %v1558_v19  ;;  %v1274_v36 = vpop.xlane.xlu1 %1273  ;;  %v3931_v17 = vsel %vm4991_vm0, -inf, %v5094_v7  ;;  %v5096_v19 = vld [vmem:[#allocation16_spill] sm:$0xff]  ;;  %v5098_v7 = vld [vmem:[#allocation17_spill] sm:$0xff]  ;;  %v1052_v4 = vshll.u32 %v1051_v53, 16  ;;  %v1292_v53 = vshll.u32 %v1291_v14, 16  ;;  %v1097_v14 = vshll.u32 %v1096_v37, 16 }
 0x3c7   :  { %5093 = vst [vmem:[#allocation49_spill] sm:$0xff] %v3920_v22  ;;  %v3933_v25 = vadd.s32 %v1037_v38, %v1035_v32  ;;  %v1275_v30 = vcvt.f32.s32 %v1274_v36  ;;  %v1507_v49 = vsel %vm372_vm1, %v3931_v17, -inf  ;;  %vm1419_vm2 = vcmp.eq.s32.totalorder %v5072_v15, %v3920_v22 }
 0x3c8   :  { %1508 = vmax.xlane.f32.xlu0 %v1507_v49  ;;  %v1019_v45 = vpop.xlane.xlu0 %1018  ;;  %v3944_v6 = vsel %vm1419_vm2, -inf, %v5096_v19  ;;  %v5100_v19 = vld [vmem:[#allocation18_spill] sm:$0xff]  ;;  %v1337_v37 = vshll.u32 %v1336_v62, 16  ;;  %v1082_v62 = vshll.u32 %v1081_v51, 16  ;;  %v1322_v51 = vshll.u32 %v1321_v23, 16 }
 0x3c9   :  { %5095 = vst [vmem:[#allocation50_spill] sm:$0xff] %v3933_v25  ;;  %v3946_v38 = vadd.s32 %v1277_v39, %v1275_v30  ;;  %v1020_v32 = vcvt.f32.s32 %v1019_v45  ;;  %v1555_v36 = vsel %vm372_vm1, %v3944_v6, -inf  ;;  %vm4960_vm3 = vcmp.eq.s32.totalorder %v5072_v15, %v3933_v25 }
 0x3ca   :  { %1556 = vmax.xlane.f32.xlu1 %v1555_v36  ;;  %v1259_v49 = vpop.xlane.xlu1 %1258  ;;  %v3957_v22 = vsel %vm4960_vm3, -inf, %v5098_v7  ;;  %v5102_v7 = vld [vmem:[#allocation19_spill] sm:$0xff]  ;;  %v1127_v23 = vshll.u32 %v1126_v55, 16  ;;  %v1367_v55 = vshll.u32 %v1366_v16, 16  ;;  %v1112_v16 = vshll.u32 %v1111_v59, 16 }
 0x3cb   :  { %5097 = vst [vmem:[#allocation51_spill] sm:$0xff] %v3946_v38  ;;  %v3959_v39 = vadd.s32 %v1022_v11, %v1020_v32  ;;  %v1260_v30 = vcvt.f32.s32 %v1259_v49  ;;  %v1516_v45 = vsel %vm372_vm1, %v3957_v22, -inf  ;;  %vm4990_vm4 = vcmp.eq.s32.totalorder %v5072_v15, %v3946_v38 }
 0x3cc   :  { %1517 = vmax.xlane.f32.xlu0 %v1516_v45  ;;  %v1064_v36 = vpop.xlane.xlu0 %1063  ;;  %v3970_v25 = vsel %vm4990_vm4, -inf, %v5100_v19  ;;  %v5104_v19 = vld [vmem:[#allocation20_spill] sm:$0xff]  ;;  %v1141_v59 = vcvt.f32.s32 %v3767_v27  ;;  %v1156_v27 = vcvt.f32.s32 %v3777_v24 }
 0x3cd   :  { %5099 = vst [vmem:[#allocation52_spill] sm:$0xff] %v3959_v39  ;;  %v3972_v11 = vadd.s32 %v1262_v63, %v1260_v30  ;;  %v1065_v32 = vcvt.f32.s32 %v1064_v36  ;;  %v1564_v49 = vsel %vm372_vm1, %v3970_v25, -inf  ;;  %vm4962_vm5 = vcmp.eq.s32.totalorder %v5072_v15, %v3959_v39 }
 0x3ce   :  { %1565 = vmax.xlane.f32.xlu1 %v1564_v49  ;;  %v1304_v45 = vpop.xlane.xlu1 %1303  ;;  %v3983_v38 = vsel %vm4962_vm5, -inf, %v5102_v7  ;;  %v5106_v7 = vld [vmem:[#allocation21_spill] sm:$0xff] }
 0x3cf   :  { %5101 = vst [vmem:[#allocation53_spill] sm:$0xff] %v3972_v11  ;;  %v3985_v63 = vadd.s32 %v1067_v26, %v1065_v32  ;;  %v1305_v30 = vcvt.f32.s32 %v1304_v45  ;;  %v1513_v36 = vsel %vm372_vm1, %v3983_v38, -inf  ;;  %vm4964_vm3 = vcmp.eq.s32.totalorder %v5072_v15, %v3972_v11 }
 0x3d0   :  { %1514 = vmax.xlane.f32.xlu0 %v1513_v36  ;;  %v1049_v49 = vpop.xlane.xlu0 %1048  ;;  %v3996_v39 = vsel %vm4964_vm3, -inf, %v5104_v19  ;;  %v5108_v19 = vld [vmem:[#allocation22_spill] sm:$0xff] }
 0x3d1   :  { %5103 = vst [vmem:[#allocation54_spill] sm:$0xff] %v3985_v63  ;;  %v3998_v26 = vadd.s32 %v1307_v48, %v1305_v30  ;;  %v1050_v32 = vcvt.f32.s32 %v1049_v49  ;;  %v1561_v45 = vsel %vm372_vm1, %v3996_v39, -inf  ;;  %vm4966_vm5 = vcmp.eq.s32.totalorder %v5072_v15, %v3985_v63 }
 0x3d2   :  { %1562 = vmax.xlane.f32.xlu1 %v1561_v45  ;;  %v1289_v36 = vpop.xlane.xlu1 %1288  ;;  %v4009_v11 = vsel %vm4966_vm5, -inf, %v5106_v7  ;;  %v5110_v7 = vld [vmem:[#allocation23_spill] sm:$0xff] }
 0x3d3   :  { %5105 = vst [vmem:[#allocation55_spill] sm:$0xff] %v3998_v26  ;;  %v4011_v48 = vadd.s32 %v1052_v4, %v1050_v32  ;;  %v1290_v30 = vcvt.f32.s32 %v1289_v36  ;;  %v1522_v49 = vsel %vm372_vm1, %v4009_v11, -inf  ;;  %vm4968_vm3 = vcmp.eq.s32.totalorder %v5072_v15, %v3998_v26 }
 0x3d4   :  { %1523 = vmax.xlane.f32.xlu0 %v1522_v49  ;;  %v1094_v45 = vpop.xlane.xlu0 %1093  ;;  %v4022_v63 = vsel %vm4968_vm3, -inf, %v5108_v19  ;;  %v5112_v19 = vld [vmem:[#allocation24_spill] sm:$0xff] }
 0x3d5   :  { %5107 = vst [vmem:[#allocation56_spill] sm:$0xff] %v4011_v48  ;;  %v4024_v4 = vadd.s32 %v1292_v53, %v1290_v30  ;;  %v1095_v32 = vcvt.f32.s32 %v1094_v45  ;;  %v1570_v36 = vsel %vm372_vm1, %v4022_v63, -inf  ;;  %vm4970_vm5 = vcmp.eq.s32.totalorder %v5072_v15, %v4011_v48 }
 0x3d6   :  { %1571 = vmax.xlane.f32.xlu1 %v1570_v36  ;;  %v1334_v49 = vpop.xlane.xlu1 %1333  ;;  %v4035_v26 = vsel %vm4970_vm5, -inf, %v5110_v7  ;;  %v5114_v7 = vld [vmem:[#allocation25_spill] sm:$0xff] }
 0x3d7   :  { %5109 = vst [vmem:[#allocation57_spill] sm:$0xff] %v4024_v4  ;;  %v4037_v53 = vadd.s32 %v1097_v14, %v1095_v32  ;;  %v1335_v30 = vcvt.f32.s32 %v1334_v49  ;;  %v1519_v45 = vsel %vm372_vm1, %v4035_v26, -inf  ;;  %vm4972_vm3 = vcmp.eq.s32.totalorder %v5072_v15, %v4024_v4 }
 0x3d8   :  { %1520 = vmax.xlane.f32.xlu0 %v1519_v45  ;;  %v1079_v36 = vpop.xlane.xlu0 %1078  ;;  %v4048_v48 = vsel %vm4972_vm3, -inf, %v5112_v19  ;;  %v5116_v19 = vld [vmem:[#allocation26_spill] sm:$0xff] }
 0x3d9   :  { %5111 = vst [vmem:[#allocation58_spill] sm:$0xff] %v4037_v53  ;;  %v4050_v14 = vadd.s32 %v1337_v37, %v1335_v30  ;;  %v1080_v32 = vcvt.f32.s32 %v1079_v36  ;;  %v1567_v49 = vsel %vm372_vm1, %v4048_v48, -inf  ;;  %vm4974_vm5 = vcmp.eq.s32.totalorder %v5072_v15, %v4037_v53 }
 0x3da   :  { %1568 = vmax.xlane.f32.xlu1 %v1567_v49  ;;  %v1319_v45 = vpop.xlane.xlu1 %1318  ;;  %v4061_v4 = vsel %vm4974_vm5, -inf, %v5114_v7  ;;  %v5118_v7 = vld [vmem:[#allocation27_spill] sm:$0xff] }
 0x3db   :  { %5113 = vst [vmem:[#allocation59_spill] sm:$0xff] %v4050_v14  ;;  %v4063_v37 = vadd.s32 %v1082_v62, %v1080_v32  ;;  %v1320_v30 = vcvt.f32.s32 %v1319_v45  ;;  %v1528_v36 = vsel %vm372_vm1, %v4061_v4, -inf  ;;  %vm4976_vm3 = vcmp.eq.s32.totalorder %v5072_v15, %v4050_v14 }
 0x3dc   :  { %1529 = vmax.xlane.f32.xlu0 %v1528_v36  ;;  %v1124_v49 = vpop.xlane.xlu0 %1123  ;;  %v4074_v53 = vsel %vm4976_vm3, -inf, %v5116_v19 }
 0x3dd   :  { %5115 = vst [vmem:[#allocation60_spill] sm:$0xff] %v4063_v37  ;;  %v4076_v62 = vadd.s32 %v1322_v51, %v1320_v30  ;;  %v1125_v32 = vcvt.f32.s32 %v1124_v49  ;;  %v1576_v45 = vsel %vm372_vm1, %v4074_v53, -inf  ;;  %vm4978_vm5 = vcmp.eq.s32.totalorder %v5072_v15, %v4063_v37 }
 0x3de   :  { %1577 = vmax.xlane.f32.xlu1 %v1576_v45  ;;  %v1364_v36 = vpop.xlane.xlu1 %1363  ;;  %v4087_v14 = vsel %vm4978_vm5, -inf, %v5118_v7  ;;  %v5120_v45 = vld [vmem:[#allocation28_spill] sm:$0xff]  ;;  %v5122_v7 = vld [vmem:[#allocation29_spill] sm:$0xff] }
 0x3df   :  { %5117 = vst [vmem:[#allocation61_spill] sm:$0xff] %v4076_v62  ;;  %v4089_v51 = vadd.s32 %v1127_v23, %v1125_v32  ;;  %v1365_v30 = vcvt.f32.s32 %v1364_v36  ;;  %v1525_v49 = vsel %vm372_vm1, %v4087_v14, -inf  ;;  %vm4980_vm3 = vcmp.eq.s32.totalorder %v5072_v15, %v4076_v62 }
 0x3e0   :  { %1526 = vmax.xlane.f32.xlu0 %v1525_v49  ;;  %v1109_v57 = vpop.xlane.xlu0 %1108  ;;  %v4099_v19 = vsel %vm4980_vm3, -inf, %v5120_v45  ;;  %v1352_v36 = vshll.u32 %v1351_v46, 16  ;;  %v1381_v46 = vcvt.f32.s32 %v3772_v40  ;;  %v5124_v45 = vld [vmem:[#allocation30_spill] sm:$0xff]  ;;  %v1142_v40 = vshll.u32 %v1141_v59, 16 }
 0x3e1   :  { %5119 = vst [vmem:[#allocation62_spill] sm:$0xff] %v4089_v51  ;;  %v4101_v37 = vadd.s32 %v1367_v55, %v1365_v30  ;;  %v1110_v23 = vcvt.f32.s32 %v1109_v57  ;;  %v1573_v32 = vsel %vm372_vm1, %v4099_v19, -inf  ;;  %vm4982_vm5 = vcmp.eq.s32.totalorder %v5072_v15, %v4089_v51 }
 0x3e2   :  { %1574 = vmax.xlane.f32.xlu1 %v1573_v32  ;;  %v1349_v49 = vpop.xlane.xlu1 %1348  ;;  %v4112_v62 = vsel %vm4982_vm5, -inf, %v5122_v7 }
 0x3e3   :  { %5121 = vst [vmem:[#allocation63_spill] sm:$0xff] %v4101_v37  ;;  %v4114_v55 = vadd.s32 %v1112_v16, %v1110_v23  ;;  %v1350_v30 = vcvt.f32.s32 %v1349_v49  ;;  %v1534_v57 = vsel %vm372_vm1, %v4112_v62, -inf  ;;  %vm4984_vm3 = vcmp.eq.s32.totalorder %v5072_v15, %v4101_v37 }
 0x3e4   :  { %1535 = vmax.xlane.f32.xlu0 %v1534_v57  ;;  %v1139_v32 = vpop.xlane.xlu0 %1138  ;;  %v4126_v51 = vsel %vm4984_vm3, -inf, %v5124_v45  ;;  %v5126_v57 = vld [vmem:[#allocation31_spill] sm:$0xff]  ;;  %v1396_v37 = vcvt.f32.s32 %v3781_v43 }
 0x3e5   :  { %5123 = vst [vmem:[#allocation64_spill] sm:$0xff] %v4114_v55  ;;  %v4128_v16 = vadd.s32 %v1352_v36, %v1350_v30  ;;  %v1140_v23 = vcvt.f32.s32 %v1139_v32  ;;  %v1582_v49 = vsel %vm372_vm1, %v4126_v51, -inf  ;;  %vm4989_vm5 = vcmp.eq.s32.totalorder %v5072_v15, %v4114_v55 }
 0x3e6   :  { %1583 = vmax.xlane.f32.xlu1 %v1582_v49  ;;  %v1379_v24 = vpop.xlane.xlu1 %1378  ;;  %v4138_v7 = vsel %vm4989_vm5, -inf, %v5126_v57  ;;  %v1382_v32 = vshll.u32 %v1381_v46, 16  ;;  %v5127_v49 = vld [vmem:[#allocation32_spill] sm:$0xff]  ;;  %v1157_v55 = vshll.u32 %v1156_v27, 16  ;;  %v1397_v54 = vshll.u32 %v1396_v37, 16  ;;  %v5132_v27 = vld [vmem:[#allocation35_spill] sm:$0xff] }
 0x3e7   :  { %5125 = vst [vmem:[#allocation65_spill] sm:$0xff] %v4128_v16  ;;  %v1380_v36 = vcvt.f32.s32 %v1379_v24  ;;  %v1531_v30 = vsel %vm372_vm1, %v4138_v7, -inf  ;;  %vm4988_vm3 = vcmp.eq.s32.totalorder %v5072_v15, %v4128_v16  ;;  %v4151_v57 = vadd.s32 %v1142_v40, %v1140_v23 }
 0x3e8   :  { %1532 = vmax.xlane.f32.xlu0 %v1531_v30  ;;  %v1154_v59 = vpop.xlane.xlu0 %1153  ;;  %v4149_v45 = vsel %vm4988_vm3, -inf, %v5127_v49 }
 0x3e9   :  { %5128 = vst [vmem:[#allocation66_spill] sm:$0xff] %v4151_v57  ;;  %v1155_v43 = vcvt.f32.s32 %v1154_v59  ;;  %v1579_v24 = vsel %vm372_vm1, %v4149_v45, -inf  ;;  %v4155_v18 = vadd.s32 %v1382_v32, %v1380_v36  ;;  %vm4992_vm5 = vcmp.eq.s32.totalorder %v5072_v15, %v4151_v57  ;;  %v5135_v32 = vld [vmem:[#allocation34_spill] sm:$0xff] }
 0x3ea   :  { %1580 = vmax.xlane.f32.xlu1 %v1579_v24  ;;  %v1394_v44 = vpop.xlane.xlu1 %1393 }
 0x3eb   :  { %5129 = vst [vmem:[#allocation67_spill] sm:$0xff] %v4155_v18  ;;  %v4157_v46 = vadd.s32 %v1157_v55, %v1155_v43  ;;  %v1395_v30 = vcvt.f32.s32 %v1394_v44  ;;  %vm4994_vm0 = vcmp.eq.s32.totalorder %v5072_v15, %v4155_v18  ;;  %v5133_v44 = vld [vmem:[#allocation36_spill] sm:$0xff]  ;;  %v5134_v55 = vld [vmem:[#allocation33_spill] sm:$0xff] }
 0x3ec   :  { %v4187_v40 = vsel %vm4992_vm5, -inf, %v5134_v55  ;;  %v4195_v59 = vsel %vm4994_vm0, -inf, %v5135_v32 }
 0x3ed   :  { %5130 = vst [vmem:[#allocation68_spill] sm:$0xff] %v4157_v46  ;;  %v4159_v28 = vadd.s32 %v1397_v54, %v1395_v30  ;;  %vm1414_vm3 = vcmp.eq.s32.totalorder %v5072_v15, %v4157_v46  ;;  %v1537_v43 = vsel %vm372_vm1, %v4187_v40, -inf  ;;  %v1585_v24 = vsel %vm372_vm1, %v4195_v59, -inf }
 0x3ee   :  { %v4169_v23 = vsel %vm1414_vm3, -inf, %v5132_v27 }
 0x3ef   :  { %5131 = vst [vmem:[#allocation69_spill] sm:$0xff] %v4159_v28  ;;  %v1540_v37 = vsel %vm372_vm1, %v4169_v23, -inf  ;;  %vm4996_vm4 = vcmp.eq.s32.totalorder %v5072_v15, %v4159_v28 }
 0x3f0   :  { %1541 = vmax.xlane.f32.xlu0 %v1540_v37  ;;  %v4181_v54 = vsel %vm4996_vm4, -inf, %v5133_v44 }
 0x3f1   :  { %v1588_v36 = vsel %vm372_vm1, %v4181_v54, -inf }
 0x3f2   :  { %1589 = vmax.xlane.f32.xlu1 %v1588_v36 }
 0x3f4   :  { %1538 = vmax.xlane.f32.xlu0 %v1537_v43 }
 0x3f6   :  { %1586 = vmax.xlane.f32.xlu1 %v1585_v24 }
 0x43b   :  { %v1500_v30 = vpop.xlane.xlu0 %1499 }
 0x43c   :  { %vm1592_vm5 = vcmp.eq.f32.partialorder %v3798_v60, %v1500_v30 }
 0x43d   :  { %v1624_v37 = vsel %vm1592_vm5, %v5072_v15, 8 }
 0x43e   :  { %v4204_v36 = vsel %vm372_vm1, %v1624_v37, 2147483647 }
 0x43f   :  { %v1672_v18 = vshra.s32 %v4204_v36, 16  ;;  %v1548_v32 = vpop.xlane.xlu1 %1547 }
 0x440   :  { %vm1608_vm0 = vcmp.eq.f32.partialorder %v3814_v61, %v1548_v32  ;;  %v1497_v57 = vpop.xlane.xlu0 %1496 }
 0x441   :  { %v1640_v43 = vsel %vm1608_vm0, %v5072_v15, 8  ;;  %vm1591_vm4 = vcmp.eq.f32.partialorder %v3826_v5, %v1497_v57  ;;  %v4210_v55 = vcvt.s32.f32 %v1672_v18 }
 0x442   :  { %v4213_v24 = vsel %vm372_vm1, %v1640_v43, 2147483647  ;;  %v1623_v60 = vsel %vm1591_vm4, %v5072_v15, 8 }
 0x443   :  { %v1912_v30 = vshra.s32 %v4213_v24, 16  ;;  %v4218_v37 = vsel %vm372_vm1, %v1623_v60, 2147483647  ;;  %v1545_v28 = vpop.xlane.xlu1 %1544  ;;  %1675 = vmin.xlane.f32.xlu0 %v4210_v55 }
 0x444   :  { %v1657_v61 = vshra.s32 %v4218_v37, 16  ;;  %vm1607_vm0 = vcmp.eq.f32.partialorder %v3840_v3, %v1545_v28 }
 0x445   :  { %v1639_v5 = vsel %vm1607_vm0, %v5072_v15, 8  ;;  %v1506_v18 = vpop.xlane.xlu0 %1505  ;;  %v4224_v57 = vcvt.s32.f32 %v1912_v30 }
 0x446   :  { %v4227_v32 = vsel %vm372_vm1, %v1639_v5, 2147483647  ;;  %vm1594_vm4 = vcmp.eq.f32.partialorder %v3853_v42, %v1506_v18  ;;  %v4230_v43 = vcvt.s32.f32 %v1657_v61 }
 0x447   :  { %v1897_v60 = vshra.s32 %v4227_v32, 16  ;;  %v1626_v44 = vsel %vm1594_vm4, %v5072_v15, 8  ;;  %1915 = vmin.xlane.f32.xlu1 %v4224_v57  ;;  %v1554_v46 = vpop.xlane.xlu1 %1553 }
 0x448   :  { %v4236_v3 = vsel %vm372_vm1, %v1626_v44, 2147483647  ;;  %vm1610_vm5 = vcmp.eq.f32.partialorder %v3866_v52, %v1554_v46  ;;  %1660 = vmin.xlane.f32.xlu0 %v4230_v43 }
 0x449   :  { %v1702_v28 = vshra.s32 %v4236_v3, 16  ;;  %v1642_v42 = vsel %vm1610_vm5, %v5072_v15, 8  ;;  %v1503_v30 = vpop.xlane.xlu0 %1502  ;;  %v4242_v61 = vcvt.s32.f32 %v1897_v60 }
 0x44a   :  { %v4245_v5 = vsel %vm372_vm1, %v1642_v42, 2147483647  ;;  %vm1593_vm0 = vcmp.eq.f32.partialorder %v3879_v47, %v1503_v30 }
 0x44b   :  { %v1942_v18 = vshra.s32 %v4245_v5, 16  ;;  %v1625_v44 = vsel %vm1593_vm0, %v5072_v15, 8  ;;  %1900 = vmin.xlane.f32.xlu1 %v4242_v61  ;;  %v1551_v52 = vpop.xlane.xlu1 %1550  ;;  %v4251_v46 = vcvt.s32.f32 %v1702_v28 }
 0x44c   :  { %v4254_v27 = vsel %vm372_vm1, %v1625_v44, 2147483647  ;;  %vm1609_vm4 = vcmp.eq.f32.partialorder %v3892_v12, %v1551_v52 }
 0x44d   :  { %v1687_v60 = vshra.s32 %v4254_v27, 16  ;;  %v1641_v42 = vsel %vm1609_vm4, %v5072_v15, 8  ;;  %1705 = vmin.xlane.f32.xlu0 %v4251_v46  ;;  %v1512_v47 = vpop.xlane.xlu0 %1511  ;;  %v4260_v30 = vcvt.s32.f32 %v1942_v18 }
 0x44e   :  { %v4263_v16 = vsel %vm372_vm1, %v1641_v42, 2147483647  ;;  %vm1596_vm5 = vcmp.eq.f32.partialorder %v3905_v31, %v1512_v47 }
 0x44f   :  { %v1927_v28 = vshra.s32 %v4263_v16, 16  ;;  %v1628_v44 = vsel %vm1596_vm5, %v5072_v15, 8  ;;  %1945 = vmin.xlane.f32.xlu1 %v4260_v30  ;;  %v1560_v12 = vpop.xlane.xlu1 %1559  ;;  %v4269_v52 = vcvt.s32.f32 %v1687_v60 }
 0x450   :  { %v4272_v49 = vsel %vm372_vm1, %v1628_v44, 2147483647  ;;  %vm1612_vm0 = vcmp.eq.f32.partialorder %v3918_v50, %v1560_v12 }
 0x451   :  { %v1732_v18 = vshra.s32 %v4272_v49, 16  ;;  %v1644_v42 = vsel %vm1612_vm0, %v5072_v15, 8  ;;  %1690 = vmin.xlane.f32.xlu0 %v4269_v52  ;;  %v1509_v31 = vpop.xlane.xlu0 %1508  ;;  %v4278_v47 = vcvt.s32.f32 %v1927_v28 }
 0x452   :  { %v4281_v10 = vsel %vm372_vm1, %v1644_v42, 2147483647  ;;  %vm1595_vm4 = vcmp.eq.f32.partialorder %v3931_v17, %v1509_v31 }
 0x453   :  { %v1972_v60 = vshra.s32 %v4281_v10, 16  ;;  %v1627_v44 = vsel %vm1595_vm4, %v5072_v15, 8  ;;  %1930 = vmin.xlane.f32.xlu1 %v4278_v47  ;;  %v1557_v50 = vpop.xlane.xlu1 %1556  ;;  %v4287_v12 = vcvt.s32.f32 %v1732_v18 }
 0x454   :  { %v4290_v0 = vsel %vm372_vm1, %v1627_v44, 2147483647  ;;  %vm1611_vm5 = vcmp.eq.f32.partialorder %v3944_v6, %v1557_v50 }
 0x455   :  { %v1717_v28 = vshra.s32 %v4290_v0, 16  ;;  %v1643_v42 = vsel %vm1611_vm5, %v5072_v15, 8  ;;  %1735 = vmin.xlane.f32.xlu0 %v4287_v12  ;;  %v1518_v17 = vpop.xlane.xlu0 %1517  ;;  %v4296_v31 = vcvt.s32.f32 %v1972_v60 }
 0x456   :  { %v4299_v56 = vsel %vm372_vm1, %v1643_v42, 2147483647  ;;  %vm1598_vm0 = vcmp.eq.f32.partialorder %v3957_v22, %v1518_v17 }
 0x457   :  { %v1957_v18 = vshra.s32 %v4299_v56, 16  ;;  %v1630_v44 = vsel %vm1598_vm0, %v5072_v15, 8  ;;  %1975 = vmin.xlane.f32.xlu1 %v4296_v31  ;;  %v1566_v6 = vpop.xlane.xlu1 %1565  ;;  %v4305_v50 = vcvt.s32.f32 %v1717_v28 }
 0x458   :  { %v4308_v35 = vsel %vm372_vm1, %v1630_v44, 2147483647  ;;  %vm1614_vm4 = vcmp.eq.f32.partialorder %v3970_v25, %v1566_v6 }
 0x459   :  { %v1762_v60 = vshra.s32 %v4308_v35, 16  ;;  %v1646_v42 = vsel %vm1614_vm4, %v5072_v15, 8  ;;  %1720 = vmin.xlane.f32.xlu0 %v4305_v50  ;;  %v1515_v22 = vpop.xlane.xlu0 %1514  ;;  %v4314_v17 = vcvt.s32.f32 %v1957_v18 }
 0x45a   :  { %v4317_v29 = vsel %vm372_vm1, %v1646_v42, 2147483647  ;;  %vm1597_vm5 = vcmp.eq.f32.partialorder %v3983_v38, %v1515_v22 }
 0x45b   :  { %v2002_v28 = vshra.s32 %v4317_v29, 16  ;;  %v1629_v44 = vsel %vm1597_vm5, %v5072_v15, 8  ;;  %1960 = vmin.xlane.f32.xlu1 %v4314_v17  ;;  %v1563_v25 = vpop.xlane.xlu1 %1562  ;;  %v4323_v6 = vcvt.s32.f32 %v1762_v60 }
 0x45c   :  { %v4326_v41 = vsel %vm372_vm1, %v1629_v44, 2147483647  ;;  %vm1613_vm0 = vcmp.eq.f32.partialorder %v3996_v39, %v1563_v25 }
 0x45d   :  { %v1747_v18 = vshra.s32 %v4326_v41, 16  ;;  %v1645_v42 = vsel %vm1613_vm0, %v5072_v15, 8  ;;  %1765 = vmin.xlane.f32.xlu0 %v4323_v6  ;;  %v1524_v38 = vpop.xlane.xlu0 %1523  ;;  %v4332_v22 = vcvt.s32.f32 %v2002_v28 }
 0x45e   :  { %v4335_v2 = vsel %vm372_vm1, %v1645_v42, 2147483647  ;;  %vm1600_vm4 = vcmp.eq.f32.partialorder %v4009_v11, %v1524_v38 }
 0x45f   :  { %v1987_v60 = vshra.s32 %v4335_v2, 16  ;;  %v1632_v44 = vsel %vm1600_vm4, %v5072_v15, 8  ;;  %2005 = vmin.xlane.f32.xlu1 %v4332_v22  ;;  %v1572_v39 = vpop.xlane.xlu1 %1571  ;;  %v4341_v25 = vcvt.s32.f32 %v1747_v18 }
 0x460   :  { %v4344_v58 = vsel %vm372_vm1, %v1632_v44, 2147483647  ;;  %vm1616_vm5 = vcmp.eq.f32.partialorder %v4022_v63, %v1572_v39 }
 0x461   :  { %v1792_v28 = vshra.s32 %v4344_v58, 16  ;;  %v1648_v42 = vsel %vm1616_vm5, %v5072_v15, 8  ;;  %1750 = vmin.xlane.f32.xlu0 %v4341_v25  ;;  %v1521_v11 = vpop.xlane.xlu0 %1520  ;;  %v4350_v38 = vcvt.s32.f32 %v1987_v60 }
 0x462   :  { %v4353_v1 = vsel %vm372_vm1, %v1648_v42, 2147483647  ;;  %vm1599_vm0 = vcmp.eq.f32.partialorder %v4035_v26, %v1521_v11 }
 0x463   :  { %v2032_v18 = vshra.s32 %v4353_v1, 16  ;;  %v1631_v44 = vsel %vm1599_vm0, %v5072_v15, 8  ;;  %1990 = vmin.xlane.f32.xlu1 %v4350_v38  ;;  %v1569_v63 = vpop.xlane.xlu1 %1568  ;;  %v4359_v39 = vcvt.s32.f32 %v1792_v28 }
 0x464   :  { %v4362_v21 = vsel %vm372_vm1, %v1631_v44, 2147483647  ;;  %vm1615_vm4 = vcmp.eq.f32.partialorder %v4048_v48, %v1569_v63 }
 0x465   :  { %v1777_v60 = vshra.s32 %v4362_v21, 16  ;;  %v1647_v42 = vsel %vm1615_vm4, %v5072_v15, 8  ;;  %1795 = vmin.xlane.f32.xlu0 %v4359_v39  ;;  %v1530_v26 = vpop.xlane.xlu0 %1529  ;;  %v4368_v11 = vcvt.s32.f32 %v2032_v18 }
 0x466   :  { %v4371_v20 = vsel %vm372_vm1, %v1647_v42, 2147483647  ;;  %vm1602_vm5 = vcmp.eq.f32.partialorder %v4061_v4, %v1530_v26 }
 0x467   :  { %v2017_v28 = vshra.s32 %v4371_v20, 16  ;;  %v1634_v44 = vsel %vm1602_vm5, %v5072_v15, 8  ;;  %2035 = vmin.xlane.f32.xlu1 %v4368_v11  ;;  %v1578_v48 = vpop.xlane.xlu1 %1577  ;;  %v4377_v63 = vcvt.s32.f32 %v1777_v60 }
 0x468   :  { %v4380_v13 = vsel %vm372_vm1, %v1634_v44, 2147483647  ;;  %vm1618_vm0 = vcmp.eq.f32.partialorder %v4074_v53, %v1578_v48 }
 0x469   :  { %v1822_v18 = vshra.s32 %v4380_v13, 16  ;;  %v1650_v42 = vsel %vm1618_vm0, %v5072_v15, 8  ;;  %1780 = vmin.xlane.f32.xlu0 %v4377_v63  ;;  %v1527_v4 = vpop.xlane.xlu0 %1526  ;;  %v4386_v26 = vcvt.s32.f32 %v2017_v28 }
 0x46a   :  { %v4389_v34 = vsel %vm372_vm1, %v1650_v42, 2147483647  ;;  %vm1601_vm4 = vcmp.eq.f32.partialorder %v4087_v14, %v1527_v4 }
 0x46b   :  { %v2062_v60 = vshra.s32 %v4389_v34, 16  ;;  %v1633_v44 = vsel %vm1601_vm4, %v5072_v15, 8  ;;  %2020 = vmin.xlane.f32.xlu1 %v4386_v26  ;;  %v1575_v53 = vpop.xlane.xlu1 %1574  ;;  %v4395_v48 = vcvt.s32.f32 %v1822_v18 }
 0x46c   :  { %v4398_v9 = vsel %vm372_vm1, %v1633_v44, 2147483647  ;;  %vm1617_vm5 = vcmp.eq.f32.partialorder %v4099_v19, %v1575_v53 }
 0x46d   :  { %v1807_v28 = vshra.s32 %v4398_v9, 16  ;;  %v1649_v42 = vsel %vm1617_vm5, %v5072_v15, 8  ;;  %1825 = vmin.xlane.f32.xlu0 %v4395_v48  ;;  %v1536_v14 = vpop.xlane.xlu0 %1535  ;;  %v4404_v4 = vcvt.s32.f32 %v2062_v60 }
 0x46e   :  { %v4407_v33 = vsel %vm372_vm1, %v1649_v42, 2147483647  ;;  %vm1604_vm0 = vcmp.eq.f32.partialorder %v4112_v62, %v1536_v14 }
 0x46f   :  { %5136 = vst [vmem:[#allocation70_spill] sm:$0xff] %v4407_v33  ;;  %v2047_v18 = vshra.s32 %v4407_v33, 16  ;;  %v1636_v44 = vsel %vm1604_vm0, %v5072_v15, 8  ;;  %2065 = vmin.xlane.f32.xlu1 %v4404_v4  ;;  %v1584_v19 = vpop.xlane.xlu1 %1583  ;;  %v4413_v53 = vcvt.s32.f32 %v1807_v28 }
 0x470   :  { %v4416_v8 = vsel %vm372_vm1, %v1636_v44, 2147483647  ;;  %vm1620_vm4 = vcmp.eq.f32.partialorder %v4126_v51, %v1584_v19 }
 0x471   :  { %5137 = vst [vmem:[#allocation71_spill] sm:$0xff] %v4416_v8  ;;  %v1852_v60 = vshra.s32 %v4416_v8, 16  ;;  %v1652_v42 = vsel %vm1620_vm4, %v5072_v15, 8  ;;  %1810 = vmin.xlane.f32.xlu0 %v4413_v53  ;;  %v1533_v62 = vpop.xlane.xlu0 %1532  ;;  %v4422_v14 = vcvt.s32.f32 %v2047_v18 }
 0x472   :  { %v4425_v33 = vsel %vm372_vm1, %v1652_v42, 2147483647  ;;  %vm1603_vm5 = vcmp.eq.f32.partialorder %v4138_v7, %v1533_v62 }
 0x473   :  { %5138 = vst [vmem:[#allocation72_spill] sm:$0xff] %v4422_v14  ;;  %v2092_v28 = vshra.s32 %v4425_v33, 16  ;;  %v1635_v44 = vsel %vm1603_vm5, %v5072_v15, 8  ;;  %2050 = vmin.xlane.f32.xlu1 %v4422_v14  ;;  %v1581_v51 = vpop.xlane.xlu1 %1580  ;;  %v4431_v19 = vcvt.s32.f32 %v1852_v60 }
 0x474   :  { %v4434_v8 = vsel %vm372_vm1, %v1635_v44, 2147483647  ;;  %vm1619_vm0 = vcmp.eq.f32.partialorder %v4149_v45, %v1581_v51 }
 0x475   :  { %v1837_v18 = vshra.s32 %v4434_v8, 16  ;;  %v1651_v42 = vsel %vm1619_vm0, %v5072_v15, 8  ;;  %1855 = vmin.xlane.f32.xlu0 %v4431_v19  ;;  %v4440_v7 = vcvt.s32.f32 %v2092_v28 }
 0x476   :  { %v4443_v62 = vsel %vm372_vm1, %v1651_v42, 2147483647 }
 0x477   :  { %5139 = vst [vmem:[#allocation73_spill] sm:$0xff] %v4440_v7  ;;  %5140 = vst [vmem:[#allocation74_spill] sm:$0xff] %v4443_v62  ;;  %v2077_v14 = vshra.s32 %v4443_v62, 16  ;;  %2095 = vmin.xlane.f32.xlu1 %v4440_v7  ;;  %v4447_v60 = vcvt.s32.f32 %v1837_v18 }
 0x479   :  { %5141 = vst [vmem:[#allocation75_spill] sm:$0xff] %v4447_v60  ;;  %1840 = vmin.xlane.f32.xlu0 %v4447_v60  ;;  %v1542_v45 = vpop.xlane.xlu0 %1541  ;;  %v4450_v44 = vcvt.s32.f32 %v2077_v14 }
 0x47a   :  { %vm1606_vm4 = vcmp.eq.f32.partialorder %v4169_v23, %v1542_v45 }
 0x47b   :  { %5142 = vst [vmem:[#allocation76_spill] sm:$0xff] %v4450_v44  ;;  %v1638_v51 = vsel %vm1606_vm4, %v5072_v15, 8  ;;  %2080 = vmin.xlane.f32.xlu1 %v4450_v44  ;;  %v1590_v28 = vpop.xlane.xlu1 %1589 }
 0x47c   :  { %v4456_v42 = vsel %vm372_vm1, %v1638_v51, 2147483647  ;;  %vm1622_vm5 = vcmp.eq.f32.partialorder %v4181_v54, %v1590_v28 }
 0x47d   :  { %v1882_v18 = vshra.s32 %v4456_v42, 16  ;;  %v1654_v7 = vsel %vm1622_vm5, %v5072_v15, 8  ;;  %v1539_v60 = vpop.xlane.xlu0 %1538 }
 0x47e   :  { %v4462_v14 = vsel %vm372_vm1, %v1654_v7, 2147483647  ;;  %vm1605_vm0 = vcmp.eq.f32.partialorder %v4187_v40, %v1539_v60 }
 0x47f   :  { %v2122_v23 = vshra.s32 %v4462_v14, 16  ;;  %v1637_v45 = vsel %vm1605_vm0, %v5072_v15, 8  ;;  %v1587_v44 = vpop.xlane.xlu1 %1586  ;;  %v4467_v62 = vcvt.s32.f32 %v1882_v18 }
 0x480   :  { %v4470_v51 = vsel %vm372_vm1, %v1637_v45, 2147483647  ;;  %vm1621_vm4 = vcmp.eq.f32.partialorder %v4195_v59, %v1587_v44  ;;  %v1671_v44 = vand.u32 65535, %v4204_v36 }
 0x481   :  { %v1867_v54 = vshra.s32 %v4470_v51, 16  ;;  %v1653_v28 = vsel %vm1621_vm4, %v5072_v15, 8  ;;  %1885 = vmin.xlane.f32.xlu0 %v4467_v62  ;;  %v4476_v7 = vcvt.s32.f32 %v2122_v23  ;;  %v1911_v23 = vand.u32 65535, %v4213_v24 }
 0x482   :  { %v4479_v40 = vsel %vm372_vm1, %v1653_v28, 2147483647  ;;  %v1673_v28 = vcvt.s32.f32 %v1671_v44 }
 0x483   :  { %5143 = vst [vmem:[#allocation77_spill] sm:$0xff] %v4476_v7  ;;  %v2107_v60 = vshra.s32 %v4479_v40, 16  ;;  %2125 = vmin.xlane.f32.xlu1 %v4476_v7  ;;  %v4483_v18 = vcvt.s32.f32 %v1867_v54  ;;  %v1656_v54 = vand.u32 65535, %v4218_v37  ;;  %v1913_v7 = vcvt.s32.f32 %v1911_v23 }
 0x485   :  { %5144 = vst [vmem:[#allocation78_spill] sm:$0xff] %v4483_v18  ;;  %1870 = vmin.xlane.f32.xlu0 %v4483_v18  ;;  %v4486_v59 = vcvt.s32.f32 %v2107_v60  ;;  %v1896_v18 = vand.u32 65535, %v4227_v32  ;;  %v1658_v44 = vcvt.s32.f32 %v1656_v54 }
 0x487   :  { %2110 = vmin.xlane.f32.xlu1 %v4486_v59  ;;  %v1898_v32 = vcvt.s32.f32 %v1896_v18 }
 0x4cc   :  { %v4491_v45 = vpop.xlane.xlu0 %1675 }
 0x4cd   :  { %vm1677_vm1 = vcmp.eq.f32.partialorder %v4210_v55, %v4491_v45  ;;  %v1701_v55 = vand.u32 65535, %v4236_v3  ;;  %v1926_v3 = vand.u32 65535, %v4263_v16  ;;  %v1971_v16 = vand.u32 65535, %v4281_v10 }
 0x4ce   :  { %v1678_v15 = vsel %vm1677_vm1, %v1673_v28, inf  ;;  %v1956_v10 = vand.u32 65535, %v4299_v56  ;;  %v2001_v56 = vand.u32 65535, %v4317_v29  ;;  %v1986_v29 = vand.u32 65535, %v4335_v2 }
 0x4cf   :  { %1679 = vmin.xlane.f32.xlu1 %v1678_v15  ;;  %v1941_v15 = vand.u32 65535, %v4245_v5  ;;  %v1703_v18 = vcvt.s32.f32 %v1701_v55  ;;  %v2031_v2 = vand.u32 65535, %v4353_v1  ;;  %v2016_v1 = vand.u32 65535, %v4371_v20 }
 0x4d0   :  { %v4497_v60 = vpop.xlane.xlu1 %1915  ;;  %v2061_v20 = vand.u32 65535, %v4389_v34 }
 0x4d1   :  { %vm1917_vm5 = vcmp.eq.f32.partialorder %v4224_v57, %v4497_v60  ;;  %v4501_v36 = vpop.xlane.xlu0 %1660 }
 0x4d2   :  { %v1918_v24 = vsel %vm1917_vm5, %v1913_v7, inf  ;;  %vm1662_vm0 = vcmp.eq.f32.partialorder %v4230_v43, %v4501_v36  ;;  %v1686_v43 = vand.u32 65535, %v4254_v27  ;;  %v1943_v7 = vcvt.s32.f32 %v1941_v15 }
 0x4d3   :  { %1919 = vmin.xlane.f32.xlu0 %v1918_v24  ;;  %v1663_v28 = vsel %vm1662_vm0, %v1658_v44, inf  ;;  %v1731_v27 = vand.u32 65535, %v4272_v49  ;;  %v1928_v15 = vcvt.s32.f32 %v1926_v3  ;;  %v1716_v49 = vand.u32 65535, %v4290_v0 }
 0x4d4   :  { %v4507_v37 = vpop.xlane.xlu1 %1900  ;;  %v1688_v55 = vcvt.s32.f32 %v1686_v43  ;;  %v1761_v0 = vand.u32 65535, %v4308_v35  ;;  %v1746_v35 = vand.u32 65535, %v4326_v41  ;;  %v1791_v41 = vand.u32 65535, %v4344_v58 }
 0x4d5   :  { %vm1902_vm4 = vcmp.eq.f32.partialorder %v4242_v61, %v4507_v37  ;;  %v1776_v58 = vand.u32 65535, %v4362_v21  ;;  %v1821_v21 = vand.u32 65535, %v4380_v13  ;;  %v1806_v13 = vand.u32 65535, %v4398_v9 }
 0x4d6   :  { %v4511_v23 = vpop.xlane.xlu0 %1705  ;;  %v1903_v57 = vsel %vm1902_vm4, %v1898_v32, inf }
 0x4d7   :  { %vm1707_vm1 = vcmp.eq.f32.partialorder %v4251_v46, %v4511_v23  ;;  %1904 = vmin.xlane.f32.xlu1 %v1903_v57  ;;  %1664 = vmin.xlane.f32.xlu0 %v1663_v28  ;;  %v1973_v57 = vcvt.s32.f32 %v1971_v16  ;;  %v1733_v28 = vcvt.s32.f32 %v1731_v27  ;;  %v2003_v27 = vcvt.s32.f32 %v2001_v56 }
 0x4d8   :  { %v4517_v5 = vpop.xlane.xlu1 %1945  ;;  %v1708_v24 = vsel %vm1707_vm1, %v1703_v18, inf  ;;  %v1718_v18 = vcvt.s32.f32 %v1716_v49  ;;  %v1763_v16 = vcvt.s32.f32 %v1761_v0  ;;  %v2018_v0 = vcvt.s32.f32 %v2016_v1 }
 0x4d9   :  { %vm1947_vm5 = vcmp.eq.f32.partialorder %v4260_v30, %v4517_v5  ;;  %v1778_v56 = vcvt.s32.f32 %v1776_v58 }
 0x4da   :  { %v4521_v61 = vpop.xlane.xlu0 %1690  ;;  %v1948_v54 = vsel %vm1947_vm5, %v1943_v7, inf  ;;  %v1958_v7 = vcvt.s32.f32 %v1956_v10 }
 0x4db   :  { %vm1692_vm0 = vcmp.eq.f32.partialorder %v4269_v52, %v4521_v61  ;;  %1949 = vmin.xlane.f32.xlu0 %v1948_v54  ;;  %1709 = vmin.xlane.f32.xlu1 %v1708_v24 }
 0x4dc   :  { %v4527_v46 = vpop.xlane.xlu1 %1930  ;;  %v1693_v44 = vsel %vm1692_vm0, %v1688_v55, inf }
 0x4dd   :  { %vm1932_vm4 = vcmp.eq.f32.partialorder %v4278_v47, %v4527_v46 }
 0x4de   :  { %v4531_v30 = vpop.xlane.xlu0 %1735  ;;  %v1933_v32 = vsel %vm1932_vm4, %v1928_v15, inf }
 0x4df   :  { %vm1737_vm1 = vcmp.eq.f32.partialorder %v4287_v12, %v4531_v30  ;;  %1934 = vmin.xlane.f32.xlu1 %v1933_v32  ;;  %1694 = vmin.xlane.f32.xlu0 %v1693_v44  ;;  %v1988_v32 = vcvt.s32.f32 %v1986_v29  ;;  %v1748_v44 = vcvt.s32.f32 %v1746_v35  ;;  %v1823_v35 = vcvt.s32.f32 %v1821_v21  ;;  %v5150_v21 = vld [vmem:[#allocation75_spill] sm:$0xff] }
 0x4e0   :  { %v4537_v52 = vpop.xlane.xlu1 %1975  ;;  %v1738_v3 = vsel %vm1737_vm1, %v1733_v28, inf  ;;  %v1793_v28 = vcvt.s32.f32 %v1791_v41  ;;  %v1808_v41 = vcvt.s32.f32 %v1806_v13  ;;  %v2121_v13 = vand.u32 65535, %v4462_v14 }
 0x4e1   :  { %vm1977_vm5 = vcmp.eq.f32.partialorder %v4296_v31, %v4537_v52 }
 0x4e2   :  { %v4541_v47 = vpop.xlane.xlu0 %1720  ;;  %v1978_v43 = vsel %vm1977_vm5, %v1973_v57, inf  ;;  %v2033_v57 = vcvt.s32.f32 %v2031_v2  ;;  %v5147_v2 = vld [vmem:[#allocation72_spill] sm:$0xff] }
 0x4e3   :  { %vm1722_vm0 = vcmp.eq.f32.partialorder %v4305_v50, %v4541_v47  ;;  %1979 = vmin.xlane.f32.xlu1 %v1978_v43  ;;  %1739 = vmin.xlane.f32.xlu0 %v1738_v3 }
 0x4e4   :  { %v4547_v12 = vpop.xlane.xlu1 %1960  ;;  %v1723_v24 = vsel %vm1722_vm0, %v1718_v18, inf }
 0x4e5   :  { %vm1962_vm4 = vcmp.eq.f32.partialorder %v4314_v17, %v4547_v12 }
 0x4e6   :  { %v4551_v31 = vpop.xlane.xlu0 %1765  ;;  %v1963_v54 = vsel %vm1962_vm4, %v1958_v7, inf }
 0x4e7   :  { %vm1767_vm1 = vcmp.eq.f32.partialorder %v4323_v6, %v4551_v31  ;;  %1964 = vmin.xlane.f32.xlu1 %v1963_v54  ;;  %1724 = vmin.xlane.f32.xlu0 %v1723_v24  ;;  %v2063_v24 = vcvt.s32.f32 %v2061_v20 }
 0x4e8   :  { %v4557_v50 = vpop.xlane.xlu1 %2005  ;;  %v1768_v55 = vsel %vm1767_vm1, %v1763_v16, inf  ;;  %v2091_v16 = vand.u32 65535, %v4425_v33 }
 0x4e9   :  { %vm2007_vm5 = vcmp.eq.f32.partialorder %v4332_v22, %v4557_v50 }
 0x4ea   :  { %v4561_v17 = vpop.xlane.xlu0 %1750  ;;  %v2008_v15 = vsel %vm2007_vm5, %v2003_v27, inf  ;;  %v2093_v58 = vcvt.s32.f32 %v2091_v16  ;;  %v5153_v16 = vld [vmem:[#allocation78_spill] sm:$0xff] }
 0x4eb   :  { %vm1752_vm0 = vcmp.eq.f32.partialorder %v4341_v25, %v4561_v17  ;;  %2009 = vmin.xlane.f32.xlu1 %v2008_v15  ;;  %1769 = vmin.xlane.f32.xlu0 %v1768_v55 }
 0x4ec   :  { %v4567_v6 = vpop.xlane.xlu1 %1990  ;;  %v1753_v10 = vsel %vm1752_vm0, %v1748_v44, inf }
 0x4ed   :  { %vm1992_vm4 = vcmp.eq.f32.partialorder %v4350_v38, %v4567_v6 }
 0x4ee   :  { %v4571_v22 = vpop.xlane.xlu0 %1795  ;;  %v1993_v49 = vsel %vm1992_vm4, %v1988_v32, inf }
 0x4ef   :  { %vm1797_vm1 = vcmp.eq.f32.partialorder %v4359_v39, %v4571_v22  ;;  %1994 = vmin.xlane.f32.xlu1 %v1993_v49  ;;  %1754 = vmin.xlane.f32.xlu0 %v1753_v10  ;;  %v5148_v49 = vld [vmem:[#allocation74_spill] sm:$0xff] }
 0x4f0   :  { %v4577_v25 = vpop.xlane.xlu1 %2035  ;;  %v1798_v3 = vsel %vm1797_vm1, %v1793_v28, inf  ;;  %v2076_v33 = vand.u32 65535, %v5148_v49 }
 0x4f1   :  { %vm2037_vm5 = vcmp.eq.f32.partialorder %v4368_v11, %v4577_v25 }
 0x4f2   :  { %v4581_v38 = vpop.xlane.xlu0 %1780  ;;  %v2038_v43 = vsel %vm2037_vm5, %v2033_v57, inf  ;;  %v5149_v57 = vld [vmem:[#allocation73_spill] sm:$0xff] }
 0x4f3   :  { %vm1782_vm0 = vcmp.eq.f32.partialorder %v4377_v63, %v4581_v38  ;;  %2039 = vmin.xlane.f32.xlu1 %v2038_v43  ;;  %1799 = vmin.xlane.f32.xlu0 %v1798_v3  ;;  %v5145_v63 = vld [vmem:[#allocation70_spill] sm:$0xff] }
 0x4f4   :  { %v4587_v39 = vpop.xlane.xlu1 %2020  ;;  %v1783_v18 = vsel %vm1782_vm0, %v1778_v56, inf  ;;  %v2046_v34 = vand.u32 65535, %v5145_v63  ;;  %v1881_v56 = vand.u32 65535, %v4456_v42  ;;  %v1866_v63 = vand.u32 65535, %v4470_v51 }
 0x4f5   :  { %vm2022_vm4 = vcmp.eq.f32.partialorder %v4386_v26, %v4587_v39  ;;  %v2123_v42 = vcvt.s32.f32 %v2121_v13  ;;  %v5157_v13 = vld [vmem:[#allocation6_spill] sm:$0xff] }
 0x4f6   :  { %v4591_v11 = vpop.xlane.xlu0 %1825  ;;  %v2023_v7 = vsel %vm2022_vm4, %v2018_v0, inf  ;;  %v2048_v55 = vcvt.s32.f32 %v2046_v34  ;;  %v5151_v0 = vld [vmem:[#allocation76_spill] sm:$0xff]  ;;  %v1868_v51 = vcvt.s32.f32 %v1866_v63 }
 0x4f7   :  { %vm1827_vm1 = vcmp.eq.f32.partialorder %v4395_v48, %v4591_v11  ;;  %2024 = vmin.xlane.f32.xlu1 %v2023_v7  ;;  %1784 = vmin.xlane.f32.xlu0 %v1783_v18  ;;  %v5146_v48 = vld [vmem:[#allocation71_spill] sm:$0xff] }
 0x4f8   :  { %v4597_v54 = vpop.xlane.xlu1 %2065  ;;  %v1828_v27 = vsel %vm1827_vm1, %v1823_v35, inf  ;;  %v1851_v9 = vand.u32 65535, %v5146_v48  ;;  %v2106_v35 = vand.u32 65535, %v4479_v40  ;;  %v5152_v48 = vld [vmem:[#allocation77_spill] sm:$0xff] }
 0x4f9   :  { %vm2067_vm5 = vcmp.eq.f32.partialorder %v4404_v4, %v4597_v54 }
 0x4fa   :  { %v4601_v26 = vpop.xlane.xlu0 %1810  ;;  %v2068_v29 = vsel %vm2067_vm5, %v2063_v24, inf  ;;  %v1853_v1 = vcvt.s32.f32 %v1851_v9  ;;  %v1883_v24 = vcvt.s32.f32 %v1881_v56  ;;  %v2108_v40 = vcvt.s32.f32 %v2106_v35 }
 0x4fb   :  { %vm1812_vm0 = vcmp.eq.f32.partialorder %v4413_v53, %v4601_v26  ;;  %2069 = vmin.xlane.f32.xlu1 %v2068_v29  ;;  %1829 = vmin.xlane.f32.xlu0 %v1828_v27  ;;  %v1836_v53 = vand.u32 65535, %v4434_v8  ;;  %v2078_v8 = vcvt.s32.f32 %v2076_v33  ;;  %v1712_v56 = vcvt.f32.s32 %v4511_v23 }
 0x4fc   :  { %v4607_v15 = vpop.xlane.xlu1 %2050  ;;  %v1813_v44 = vsel %vm1812_vm0, %v1808_v41, inf }
 0x4fd   :  { %vm2052_vm4 = vcmp.eq.f32.partialorder %v5147_v2, %v4607_v15  ;;  %v1838_v20 = vcvt.s32.f32 %v1836_v53  ;;  %v1682_v2 = vcvt.f32.s32 %v4491_v45  ;;  %v1922_v53 = vcvt.f32.s32 %v4497_v60 }
 0x4fe   :  { %v4611_v4 = vpop.xlane.xlu0 %1855  ;;  %v2053_v32 = vsel %vm2052_vm4, %v2048_v55, inf }
 0x4ff   :  { %vm1857_vm1 = vcmp.eq.f32.partialorder %v4431_v19, %v4611_v4  ;;  %2054 = vmin.xlane.f32.xlu1 %v2053_v32  ;;  %1814 = vmin.xlane.f32.xlu0 %v1813_v44  ;;  %v1683_v44 = vshll.u32 %v1682_v2, 16 }
 0x500   :  { %v4617_v10 = vpop.xlane.xlu1 %2095  ;;  %v1858_v3 = vsel %vm1857_vm1, %v1853_v1, inf }
 0x501   :  { %vm2097_vm5 = vcmp.eq.f32.partialorder %v5149_v57, %v4617_v10  ;;  %v5154_v57 = vld [vmem:[#allocation5_spill] sm:$0xff] }
 0x502   :  { %v4621_v28 = vpop.xlane.xlu0 %1840  ;;  %v2098_v43 = vsel %vm2097_vm5, %v2093_v58, inf  ;;  %v1667_v58 = vcvt.f32.s32 %v4501_v36  ;;  %v1952_v36 = vcvt.f32.s32 %v4517_v5 }
 0x503   :  { %vm1842_vm0 = vcmp.eq.f32.partialorder %v5150_v21, %v4621_v28  ;;  %2099 = vmin.xlane.f32.xlu1 %v2098_v43  ;;  %1859 = vmin.xlane.f32.xlu0 %v1858_v3  ;;  %v5155_v43 = vld [vmem:[#allocation37_spill] sm:$0xff]  ;;  %v1432_v21 = vsel %vm1400_vm6, %v5154_v57, 0.0 }
 0x504   :  { %v4625_v19 = vpop.xlane.xlu1 %2080  ;;  %v1843_v18 = vsel %vm1842_vm0, %v1838_v20, inf  ;;  %v1668_v60 = vshll.u32 %v1667_v58, 16  ;;  %v1953_v2 = vshll.u32 %v1952_v36, 16  ;;  %v1742_v36 = vcvt.f32.s32 %v4531_v30 }
 0x505   :  { %vm2082_vm4 = vcmp.eq.f32.partialorder %v5151_v0, %v4625_v19  ;;  %v1757_v30 = vcvt.f32.s32 %v4561_v17  ;;  %v5181_v17 = vld [vmem:[#allocation51_spill] sm:$0xff] }
 0x506   :  { %v2083_v7 = vsel %vm2082_vm4, %v2078_v8, inf  ;;  %v1907_v8 = vcvt.f32.s32 %v4507_v37 }
 0x507   :  { %2084 = vmin.xlane.f32.xlu1 %v2083_v7  ;;  %1844 = vmin.xlane.f32.xlu0 %v1843_v18 }
 0x508   :  { %v1908_v35 = vshll.u32 %v1907_v8, 16  ;;  %v5165_v8 = vld [vmem:[#allocation9_spill] sm:$0xff] }
 0x50a   :  { %v4632_v34 = vpop.xlane.xlu0 %1885 }
 0x50b   :  { %vm1887_vm1 = vcmp.eq.f32.partialorder %v4467_v62, %v4632_v34 }
 0x50c   :  { %v4637_v29 = vpop.xlane.xlu1 %2125  ;;  %v1888_v27 = vsel %vm1887_vm1, %v1883_v24, inf  ;;  %v1448_v24 = vsel %vm1416_vm7, %v5157_v13, 0.0 }
 0x50d   :  { %vm2127_vm5 = vcmp.eq.f32.partialorder %v5152_v48, %v4637_v29  ;;  %1889 = vmin.xlane.f32.xlu0 %v1888_v27 }
 0x50e   :  { %v4641_v9 = vpop.xlane.xlu0 %1870  ;;  %v2128_v14 = vsel %vm2127_vm5, %v2123_v42, inf }
 0x50f   :  { %vm1872_vm0 = vcmp.eq.f32.partialorder %v5153_v16, %v4641_v9  ;;  %2129 = vmin.xlane.f32.xlu1 %v2128_v14  ;;  %v5161_v16 = vld [vmem:[#allocation7_spill] sm:$0xff] }
 0x510   :  { %v4645_v55 = vpop.xlane.xlu1 %2110  ;;  %v1873_v62 = vsel %vm1872_vm0, %v1868_v51, inf  ;;  %v5159_v51 = vld [vmem:[#allocation8_spill] sm:$0xff] }
 0x511   :  { %vm2112_vm4 = vcmp.eq.f32.partialorder %v4486_v59, %v4645_v55  ;;  %1874 = vmin.xlane.f32.xlu0 %v1873_v62  ;;  %v1923_v59 = vshll.u32 %v1922_v53, 16  ;;  %v1447_v5 = vsel %vm1415_vm9, %v5159_v51, 0.0 }
 0x512   :  { %v2113_v41 = vsel %vm2112_vm4, %v2108_v40, inf  ;;  %v1431_v40 = vsel %vm1399_vm8, %v5161_v16, 0.0 }
 0x513   :  { %2114 = vmin.xlane.f32.xlu1 %v2113_v41  ;;  %v1713_v41 = vshll.u32 %v1712_v56, 16 }
 0x558   :  { %v1680_v32 = vpop.xlane.xlu1 %1679 }
 0x559   :  { %v1681_v49 = vcvt.f32.s32 %v1680_v32  ;;  %v1697_v32 = vcvt.f32.s32 %v4521_v61  ;;  %v1772_v61 = vcvt.f32.s32 %v4551_v31 }
 0x55b   :  { %v1684_v33 = vadd.s32 %v1683_v44, %v1681_v49  ;;  %v1937_v44 = vcvt.f32.s32 %v4527_v46 }
 0x55c   :  { %v1920_v1 = vpop.xlane.xlu0 %1919 }
 0x55d   :  { %v1921_v20 = vcvt.f32.s32 %v1920_v1  ;;  %vm2136_vm1 = vcmp.eq.s32.totalorder %v5155_v43, %v1684_v33  ;;  %v1938_v56 = vshll.u32 %v1937_v44, 16 }
 0x55e   :  { %v2168_v45 = vsel %vm2136_vm1, %v5154_v57, %v1432_v21 }
 0x55f   :  { %v1924_v0 = vadd.s32 %v1923_v59, %v1921_v20  ;;  %v5163_v59 = vld [vmem:[#allocation10_spill] sm:$0xff] }
 0x560   :  { %v1905_v7 = vpop.xlane.xlu1 %1904  ;;  %v1665_v18 = vpop.xlane.xlu0 %1664  ;;  %v1450_v46 = vsel %vm1418_vm11, %v5163_v59, 0.0 }
 0x561   :  { %v1906_v37 = vcvt.f32.s32 %v1905_v7  ;;  %v1666_v27 = vcvt.f32.s32 %v1665_v18  ;;  %vm2152_vm6 = vcmp.eq.s32.totalorder %v5155_v43, %v1924_v0  ;;  %v1434_v0 = vsel %vm1402_vm10, %v5165_v8, 0.0 }
 0x562   :  { %v2184_v42 = vsel %vm2152_vm6, %v5157_v13, %v1448_v24  ;;  %v1982_v7 = vcvt.f32.s32 %v4537_v52 }
 0x563   :  { %v1909_v48 = vadd.s32 %v1908_v35, %v1906_v37  ;;  %v1669_v14 = vadd.s32 %v1668_v60, %v1666_v27  ;;  %v1698_v60 = vshll.u32 %v1697_v32, 16 }
 0x564   :  { %v1710_v53 = vpop.xlane.xlu1 %1709  ;;  %v1950_v49 = vpop.xlane.xlu0 %1949  ;;  %v1983_v62 = vshll.u32 %v1982_v7, 16 }
 0x565   :  { %v1711_v33 = vcvt.f32.s32 %v1710_v53  ;;  %v1951_v58 = vcvt.f32.s32 %v1950_v49  ;;  %vm2151_vm7 = vcmp.eq.s32.totalorder %v5155_v43, %v1909_v48  ;;  %vm2135_vm5 = vcmp.eq.s32.totalorder %v5155_v43, %v1669_v14  ;;  %v5167_v14 = vld [vmem:[#allocation12_spill] sm:$0xff] }
 0x566   :  { %v2183_v1 = vsel %vm2151_vm7, %v5159_v51, %v1447_v5  ;;  %v2167_v57 = vsel %vm2135_vm5, %v5161_v16, %v1431_v40  ;;  %v1449_v52 = vsel %vm1417_vm13, %v5167_v14, 0.0  ;;  %v5169_v51 = vld [vmem:[#allocation11_spill] sm:$0xff]  ;;  %v1743_v16 = vshll.u32 %v1742_v36, 16 }
 0x567   :  { %v1714_v3 = vadd.s32 %v1713_v41, %v1711_v33  ;;  %v1954_v21 = vadd.s32 %v1953_v2, %v1951_v58  ;;  %2231 = vxpose.xlu1.b32.start [1/16] (narrow) %v2183_v1, 8  ;;  %2199 = vxpose.xlu0.b32.start [1/16] (narrow) %v2167_v57, 8  ;;  %v1433_v5 = vsel %vm1401_vm12, %v5169_v51, 0.0  ;;  %v1727_v40 = vcvt.f32.s32 %v4541_v47  ;;  %v5171_v58 = vld [vmem:[#allocation14_spill] sm:$0xff]  ;;  %v5173_v1 = vld [vmem:[#allocation13_spill] sm:$0xff] }
 0x568   :  { %v1935_v18 = vpop.xlane.xlu1 %1934  ;;  %v1695_v13 = vpop.xlane.xlu0 %1694  ;;  %v1967_v41 = vcvt.f32.s32 %v4547_v12  ;;  %v1452_v12 = vsel %vm1420_vm15, %v5171_v58, 0.0 }
 0x569   :  { %v1936_v63 = vcvt.f32.s32 %v1935_v18  ;;  %v1696_v24 = vcvt.f32.s32 %v1695_v13  ;;  %vm2154_vm8 = vcmp.eq.s32.totalorder %v5155_v43, %v1954_v21  ;;  %vm2138_vm9 = vcmp.eq.s32.totalorder %v5155_v43, %v1714_v3  ;;  %v5175_v13 = vld [vmem:[#allocation16_spill] sm:$0xff] }
 0x56a   :  { %v2186_v35 = vsel %vm2154_vm8, %v5163_v59, %v1450_v46  ;;  %v2170_v37 = vsel %vm2138_vm9, %v5165_v8, %v1434_v0  ;;  %v1436_v3 = vsel %vm1404_vm14, %v5173_v1, 0.0  ;;  %v1728_v21 = vshll.u32 %v1727_v40, 16 }
 0x56b   :  { %v1939_v27 = vadd.s32 %v1938_v56, %v1936_v63  ;;  %v1699_v48 = vadd.s32 %v1698_v60, %v1696_v24  ;;  %2232 = vxpose.xlu1.b32.cont [2/16] (narrow) %v2184_v42, 8  ;;  %2200 = vxpose.xlu0.b32.cont [2/16] (narrow) %v2168_v45, 8  ;;  %v1968_v59 = vshll.u32 %v1967_v41, 16  ;;  %v2012_v46 = vcvt.f32.s32 %v4557_v50  ;;  %v5177_v63 = vld [vmem:[#allocation15_spill] sm:$0xff]  ;;  %v5178_v24 = vld [vmem:[#allocation48_spill] sm:$0xff]  ;;  %v5180_v41 = vld [vmem:[#allocation18_spill] sm:$0xff] }
 0x56c   :  { %v1980_v2 = vpop.xlane.xlu1 %1979  ;;  %v1740_v32 = vpop.xlane.xlu0 %1739  ;;  %v1451_v50 = vsel %vm1419_vm2, %v5175_v13, 0.0  ;;  %vm5179_vm14 = vcmp.eq.s32.totalorder %v5155_v43, %v5178_v24  ;;  %vm5182_vm2 = vcmp.eq.s32.totalorder %v5155_v43, %v5181_v17 }
 0x56d   :  { %v1981_v42 = vcvt.f32.s32 %v1980_v2  ;;  %v1741_v45 = vcvt.f32.s32 %v1740_v32  ;;  %vm2153_vm10 = vcmp.eq.s32.totalorder %v5155_v43, %v1939_v27  ;;  %vm2137_vm11 = vcmp.eq.s32.totalorder %v5155_v43, %v1699_v48  ;;  %v5183_v2 = vld [vmem:[#allocation17_spill] sm:$0xff]  ;;  %v5184_v32 = vld [vmem:[#allocation50_spill] sm:$0xff] }
 0x56e   :  { %v2185_v44 = vsel %vm2153_vm10, %v5167_v14, %v1449_v52  ;;  %v2169_v53 = vsel %vm2137_vm11, %v5169_v51, %v1433_v5  ;;  %v1435_v27 = vsel %vm5179_vm14, %v5177_v63, 0.0  ;;  %v1773_v48 = vshll.u32 %v1772_v61, 16  ;;  %v5189_v61 = vld [vmem:[#allocation19_spill] sm:$0xff] }
 0x56f   :  { %v1984_v49 = vadd.s32 %v1983_v62, %v1981_v42  ;;  %v1744_v33 = vadd.s32 %v1743_v16, %v1741_v45  ;;  %2233 = vxpose.xlu1.b32.cont [3/16] (narrow) %v2185_v44, 8  ;;  %2201 = vxpose.xlu0.b32.cont [3/16] (narrow) %v2169_v53, 8  ;;  %v2013_v14 = vshll.u32 %v2012_v46, 16  ;;  %v1997_v52 = vcvt.f32.s32 %v4567_v6  ;;  %v5190_v46 = vld [vmem:[#allocation52_spill] sm:$0xff] }
 0x570   :  { %v1965_v8 = vpop.xlane.xlu1 %1964  ;;  %v1725_v20 = vpop.xlane.xlu0 %1724  ;;  %v1454_v6 = vsel %vm5182_vm2, %v5180_v41, 0.0  ;;  %vm5185_vm4 = vcmp.eq.s32.totalorder %v5155_v43, %v5184_v32  ;;  %v1758_v45 = vshll.u32 %v1757_v30, 16  ;;  %v1802_v53 = vcvt.f32.s32 %v4571_v22  ;;  %v5187_v22 = vld [vmem:[#allocation53_spill] sm:$0xff]  ;;  %v5201_v32 = vld [vmem:[#allocation23_spill] sm:$0xff] }
 0x571   :  { %v1966_v0 = vcvt.f32.s32 %v1965_v8  ;;  %v1726_v60 = vcvt.f32.s32 %v1725_v20  ;;  %vm2156_vm12 = vcmp.eq.s32.totalorder %v5155_v43, %v1984_v49  ;;  %vm2140_vm13 = vcmp.eq.s32.totalorder %v5155_v43, %v1744_v33 }
 0x572   :  { %v2188_v56 = vsel %vm2156_vm12, %v5171_v58, %v1452_v12  ;;  %v2172_v36 = vsel %vm2140_vm13, %v5173_v1, %v1436_v3  ;;  %v1438_v42 = vsel %vm5185_vm4, %v5183_v2, 0.0  ;;  %v1998_v44 = vshll.u32 %v1997_v52, 16 }
 0x573   :  { %v1969_v7 = vadd.s32 %v1968_v59, %v1966_v0  ;;  %v1729_v18 = vadd.s32 %v1728_v21, %v1726_v60  ;;  %2234 = vxpose.xlu1.b32.cont [4/16] (narrow) %v2186_v35, 8  ;;  %2202 = vxpose.xlu0.b32.cont [4/16] (narrow) %v2170_v37, 8  ;;  %v2042_v49 = vcvt.f32.s32 %v4577_v25  ;;  %v5186_v59 = vld [vmem:[#allocation20_spill] sm:$0xff]  ;;  %vm5188_vm7 = vcmp.eq.s32.totalorder %v5155_v43, %v5187_v22  ;;  %v5204_v22 = vld [vmem:[#allocation26_spill] sm:$0xff] }
 0x574   :  { %v2010_v51 = vpop.xlane.xlu1 %2009  ;;  %v1770_v23 = vpop.xlane.xlu0 %1769  ;;  %v1453_v25 = vsel %vm5188_vm7, %v5186_v59, 0.0  ;;  %vm5191_vm5 = vcmp.eq.s32.totalorder %v5155_v43, %v5190_v46  ;;  %v1803_v20 = vshll.u32 %v1802_v53, 16  ;;  %v1787_v60 = vcvt.f32.s32 %v4581_v38  ;;  %v5193_v38 = vld [vmem:[#allocation55_spill] sm:$0xff] }
 0x575   :  { %v2011_v35 = vcvt.f32.s32 %v2010_v51  ;;  %v1771_v37 = vcvt.f32.s32 %v1770_v23  ;;  %vm2155_vm15 = vcmp.eq.s32.totalorder %v5155_v43, %v1969_v7  ;;  %vm2139_vm0 = vcmp.eq.s32.totalorder %v5155_v43, %v1729_v18 }
 0x576   :  { %v2187_v5 = vsel %vm2155_vm15, %v5175_v13, %v1451_v50  ;;  %v2171_v16 = vsel %vm2139_vm0, %v5177_v63, %v1435_v27  ;;  %v1437_v8 = vsel %vm5191_vm5, %v5189_v61, 0.0  ;;  %v2043_v0 = vshll.u32 %v2042_v49, 16  ;;  %v5192_v27 = vld [vmem:[#allocation22_spill] sm:$0xff] }
 0x577   :  { %v2014_v62 = vadd.s32 %v2013_v14, %v2011_v35  ;;  %v1774_v40 = vadd.s32 %v1773_v48, %v1771_v37  ;;  %2235 = vxpose.xlu1.b32.cont [5/16] (narrow) %v2187_v5, 8  ;;  %2203 = vxpose.xlu0.b32.cont [5/16] (narrow) %v2171_v16, 8  ;;  %v2027_v7 = vcvt.f32.s32 %v4587_v39  ;;  %vm5194_vm10 = vcmp.eq.s32.totalorder %v5155_v43, %v5193_v38  ;;  %v5195_v48 = vld [vmem:[#allocation21_spill] sm:$0xff]  ;;  %v5196_v14 = vld [vmem:[#allocation54_spill] sm:$0xff]  ;;  %v5214_v38 = vld [vmem:[#allocation60_spill] sm:$0xff] }
 0x578   :  { %v1995_v33 = vpop.xlane.xlu1 %1994  ;;  %v1755_v58 = vpop.xlane.xlu0 %1754  ;;  %v1456_v39 = vsel %vm5194_vm10, %v5192_v27, 0.0  ;;  %vm5197_vm11 = vcmp.eq.s32.totalorder %v5155_v43, %v5196_v14  ;;  %v1788_v52 = vshll.u32 %v1787_v60, 16  ;;  %v1832_v23 = vcvt.f32.s32 %v4591_v11  ;;  %v5199_v11 = vld [vmem:[#allocation57_spill] sm:$0xff] }
 0x579   :  { %v1996_v47 = vcvt.f32.s32 %v1995_v33  ;;  %v1756_v12 = vcvt.f32.s32 %v1755_v58  ;;  %vm2158_vm1 = vcmp.eq.s32.totalorder %v5155_v43, %v2014_v62  ;;  %vm2142_vm6 = vcmp.eq.s32.totalorder %v5155_v43, %v1774_v40 }
 0x57a   :  { %v2190_v1 = vsel %vm2158_vm1, %v5180_v41, %v1454_v6  ;;  %v2174_v57 = vsel %vm2142_vm6, %v5183_v2, %v1438_v42  ;;  %v1440_v30 = vsel %vm5197_vm11, %v5195_v48, 0.0  ;;  %v2028_v51 = vshll.u32 %v2027_v7, 16  ;;  %v5198_v2 = vld [vmem:[#allocation24_spill] sm:$0xff] }
 0x57b   :  { %v1999_v3 = vadd.s32 %v1998_v44, %v1996_v47  ;;  %v1759_v21 = vadd.s32 %v1758_v45, %v1756_v12  ;;  %2236 = vxpose.xlu1.b32.cont [6/16] (narrow) %v2188_v56, 8  ;;  %2204 = vxpose.xlu0.b32.cont [6/16] (narrow) %v2172_v36, 8  ;;  %v2072_v35 = vcvt.f32.s32 %v4597_v54  ;;  %vm5200_vm14 = vcmp.eq.s32.totalorder %v5155_v43, %v5199_v11  ;;  %v5202_v42 = vld [vmem:[#allocation56_spill] sm:$0xff] }
 0x57c   :  { %v2040_v18 = vpop.xlane.xlu1 %2039  ;;  %v1800_v13 = vpop.xlane.xlu0 %1799  ;;  %v1455_v54 = vsel %vm5200_vm14, %v5198_v2, 0.0  ;;  %vm5203_vm15 = vcmp.eq.s32.totalorder %v5155_v43, %v5202_v42  ;;  %v1833_v44 = vshll.u32 %v1832_v23, 16  ;;  %v1817_v49 = vcvt.f32.s32 %v4601_v26  ;;  %v5205_v26 = vld [vmem:[#allocation59_spill] sm:$0xff] }
 0x57d   :  { %v2041_v56 = vcvt.f32.s32 %v2040_v18  ;;  %v1801_v36 = vcvt.f32.s32 %v1800_v13  ;;  %vm2157_vm8 = vcmp.eq.s32.totalorder %v5155_v43, %v1999_v3  ;;  %vm2141_vm9 = vcmp.eq.s32.totalorder %v5155_v43, %v1759_v21 }
 0x57e   :  { %v2189_v31 = vsel %vm2157_vm8, %v5186_v59, %v1453_v25  ;;  %v2173_v50 = vsel %vm2141_vm9, %v5189_v61, %v1437_v8  ;;  %v1439_v45 = vsel %vm5203_vm15, %v5201_v32, 0.0  ;;  %v2073_v53 = vshll.u32 %v2072_v35, 16  ;;  %v5207_v25 = vld [vmem:[#allocation25_spill] sm:$0xff]  ;;  %v5208_v61 = vld [vmem:[#allocation58_spill] sm:$0xff] }
 0x57f   :  { %v2044_v63 = vadd.s32 %v2043_v0, %v2041_v56  ;;  %v1804_v24 = vadd.s32 %v1803_v20, %v1801_v36  ;;  %2237 = vxpose.xlu1.b32.cont [7/16] (narrow) %v2189_v31, 8  ;;  %2205 = vxpose.xlu0.b32.cont [7/16] (narrow) %v2173_v50, 8  ;;  %v2057_v33 = vcvt.f32.s32 %v4607_v15  ;;  %vm5206_vm4 = vcmp.eq.s32.totalorder %v5155_v43, %v5205_v26 }
 0x580   :  { %v2025_v37 = vpop.xlane.xlu1 %2024  ;;  %v1785_v5 = vpop.xlane.xlu0 %1784  ;;  %v1458_v15 = vsel %vm5206_vm4, %v5204_v22, 0.0  ;;  %vm5209_vm1 = vcmp.eq.s32.totalorder %v5155_v43, %v5208_v61  ;;  %v1818_v8 = vshll.u32 %v1817_v49, 16  ;;  %v1862_v0 = vcvt.f32.s32 %v4611_v4  ;;  %v5211_v4 = vld [vmem:[#allocation61_spill] sm:$0xff] }
 0x581   :  { %v2026_v16 = vcvt.f32.s32 %v2025_v37  ;;  %v1786_v62 = vcvt.f32.s32 %v1785_v5  ;;  %vm2160_vm12 = vcmp.eq.s32.totalorder %v5155_v43, %v2044_v63  ;;  %vm2144_vm13 = vcmp.eq.s32.totalorder %v5155_v43, %v1804_v24  ;;  %v5210_v24 = vld [vmem:[#allocation28_spill] sm:$0xff] }
 0x582   :  { %v2192_v40 = vsel %vm2160_vm12, %v5192_v27, %v1456_v39  ;;  %v2176_v41 = vsel %vm2144_vm13, %v5195_v48, %v1440_v30  ;;  %v1442_v46 = vsel %vm5209_vm1, %v5207_v25, 0.0  ;;  %v2058_v20 = vshll.u32 %v2057_v33, 16  ;;  %v5213_v27 = vld [vmem:[#allocation27_spill] sm:$0xff] }
 0x583   :  { %v2029_v17 = vadd.s32 %v2028_v51, %v2026_v16  ;;  %v1789_v6 = vadd.s32 %v1788_v52, %v1786_v62  ;;  %2238 = vxpose.xlu1.b32.cont [8/16] (narrow) %v2190_v1, 8  ;;  %2206 = vxpose.xlu0.b32.cont [8/16] (narrow) %v2174_v57, 8  ;;  %v2102_v60 = vcvt.f32.s32 %v4617_v10  ;;  %vm5212_vm5 = vcmp.eq.s32.totalorder %v5155_v43, %v5211_v4 }
 0x584   :  { %v2070_v58 = vpop.xlane.xlu1 %2069  ;;  %v1830_v47 = vpop.xlane.xlu0 %1829  ;;  %v1457_v10 = vsel %vm5212_vm5, %v5210_v24, 0.0  ;;  %vm5215_vm8 = vcmp.eq.s32.totalorder %v5155_v43, %v5214_v38  ;;  %v1863_v48 = vshll.u32 %v1862_v0, 16  ;;  %v1847_v30 = vcvt.f32.s32 %v4621_v28 }
 0x585   :  { %v2071_v12 = vcvt.f32.s32 %v2070_v58  ;;  %v1831_v1 = vcvt.f32.s32 %v1830_v47  ;;  %vm2159_vm0 = vcmp.eq.s32.totalorder %v5155_v43, %v2029_v17  ;;  %vm2143_vm2 = vcmp.eq.s32.totalorder %v5155_v43, %v1789_v6  ;;  %v5216_v6 = vld [vmem:[#allocation30_spill] sm:$0xff] }
 0x586   :  { %v2191_v57 = vsel %vm2159_vm0, %v5198_v2, %v1455_v54  ;;  %v2175_v3 = vsel %vm2143_vm2, %v5201_v32, %v1439_v45  ;;  %v1441_v39 = vsel %vm5215_vm8, %v5213_v27, 0.0  ;;  %v2103_v14 = vshll.u32 %v2102_v60, 16  ;;  %v5217_v2 = vld [vmem:[#allocation63_spill] sm:$0xff]  ;;  %v5219_v54 = vld [vmem:[#allocation29_spill] sm:$0xff]  ;;  %v5220_v32 = vld [vmem:[#allocation62_spill] sm:$0xff] }
 0x587   :  { %v2074_v21 = vadd.s32 %v2073_v53, %v2071_v12  ;;  %v1834_v59 = vadd.s32 %v1833_v44, %v1831_v1  ;;  %2239 = vxpose.xlu1.b32.cont [9/16] (narrow) %v2191_v57, 8  ;;  %2207 = vxpose.xlu0.b32.cont [9/16] (narrow) %v2175_v3, 8  ;;  %v2087_v52 = vcvt.f32.s32 %v4625_v19  ;;  %vm5218_vm11 = vcmp.eq.s32.totalorder %v5155_v43, %v5217_v2  ;;  %v5222_v12 = vld [vmem:[#allocation31_spill] sm:$0xff]  ;;  %v5223_v1 = vld [vmem:[#allocation64_spill] sm:$0xff] }
 0x588   :  { %v2055_v7 = vpop.xlane.xlu1 %2054  ;;  %v1815_v18 = vpop.xlane.xlu0 %1814  ;;  %v1460_v11 = vsel %vm5218_vm11, %v5216_v6, 0.0  ;;  %vm5221_vm12 = vcmp.eq.s32.totalorder %v5155_v43, %v5220_v32  ;;  %v1892_v33 = vcvt.f32.s32 %v4632_v34  ;;  %vm5224_vm15 = vcmp.eq.s32.totalorder %v5155_v43, %v5223_v1 }
 0x589   :  { %v2056_v13 = vcvt.f32.s32 %v2055_v7  ;;  %v1816_v56 = vcvt.f32.s32 %v1815_v18  ;;  %vm2162_vm6 = vcmp.eq.s32.totalorder %v5155_v43, %v2074_v21  ;;  %vm2146_vm7 = vcmp.eq.s32.totalorder %v5155_v43, %v1834_v59  ;;  %v5225_v21 = vld [vmem:[#allocation32_spill] sm:$0xff]  ;;  %v5226_v59 = vld [vmem:[#allocation65_spill] sm:$0xff]  ;;  %v5228_v18 = vld [vmem:[#allocation35_spill] sm:$0xff] }
 0x58a   :  { %v2194_v36 = vsel %vm2162_vm6, %v5204_v22, %v1458_v15  ;;  %v2178_v31 = vsel %vm2146_vm7, %v5207_v25, %v1442_v46  ;;  %v2088_v28 = vshll.u32 %v2087_v52, 16  ;;  %v1444_v42 = vsel %vm5221_vm12, %v5219_v54, 0.0 }
 0x58b   :  { %v2059_v50 = vadd.s32 %v2058_v20, %v2056_v13  ;;  %v1819_v63 = vadd.s32 %v1818_v8, %v1816_v56  ;;  %2240 = vxpose.xlu1.b32.cont [10/16] (narrow) %v2192_v40, 8  ;;  %2208 = vxpose.xlu0.b32.cont [10/16] (narrow) %v2176_v41, 8  ;;  %v1848_v41 = vshll.u32 %v1847_v30, 16  ;;  %v1443_v57 = vsel %vm5224_vm15, %v5222_v12, 0.0  ;;  %v5234_v30 = vld [vmem:[#allocation66_spill] sm:$0xff] }
 0x58c   :  { %v2100_v51 = vpop.xlane.xlu1 %2099  ;;  %v1860_v23 = vpop.xlane.xlu0 %1859  ;;  %v2132_v3 = vcvt.f32.s32 %v4637_v29  ;;  %vm5227_vm0 = vcmp.eq.s32.totalorder %v5155_v43, %v5226_v59  ;;  %v1893_v25 = vshll.u32 %v1892_v33, 16  ;;  %v1877_v61 = vcvt.f32.s32 %v4641_v9 }
 0x58d   :  { %v2101_v35 = vcvt.f32.s32 %v2100_v51  ;;  %v1861_v37 = vcvt.f32.s32 %v1860_v23  ;;  %vm2161_vm9 = vcmp.eq.s32.totalorder %v5155_v43, %v2059_v50  ;;  %vm2145_vm10 = vcmp.eq.s32.totalorder %v5155_v43, %v1819_v63  ;;  %v5236_v23 = vld [vmem:[#allocation34_spill] sm:$0xff] }
 0x58e   :  { %v2193_v5 = vsel %vm2161_vm9, %v5210_v24, %v1457_v10  ;;  %v2177_v16 = vsel %vm2145_vm10, %v5213_v27, %v1441_v39  ;;  %v1459_v22 = vsel %vm5227_vm0, %v5225_v21, 0.0  ;;  %v2133_v8 = vshll.u32 %v2132_v3, 16  ;;  %v5230_v24 = vld [vmem:[#allocation36_spill] sm:$0xff] }
 0x58f   :  { %v2104_v62 = vadd.s32 %v2103_v14, %v2101_v35  ;;  %v1864_v40 = vadd.s32 %v1863_v48, %v1861_v37  ;;  %2241 = vxpose.xlu1.b32.cont [11/16] (narrow) %v2193_v5, 8  ;;  %2209 = vxpose.xlu0.b32.cont [11/16] (narrow) %v2177_v16, 8  ;;  %v2117_v20 = vcvt.f32.s32 %v4645_v55  ;;  %v1446_v56 = vsel %vm1414_vm3, %v5228_v18, 0.0  ;;  %v5231_v55 = vld [vmem:[#allocation69_spill] sm:$0xff]  ;;  %v5237_v35 = vld [vmem:[#allocation67_spill] sm:$0xff] }
 0x590   :  { %v2085_v17 = vpop.xlane.xlu1 %2084  ;;  %v1845_v19 = vpop.xlane.xlu0 %1844  ;;  %vm5232_vm6 = vcmp.eq.s32.totalorder %v5155_v43, %v5231_v55  ;;  %v5233_v14 = vld [vmem:[#allocation33_spill] sm:$0xff]  ;;  %vm5235_vm7 = vcmp.eq.s32.totalorder %v5155_v43, %v5234_v30  ;;  %vm5238_vm8 = vcmp.eq.s32.totalorder %v5155_v43, %v5237_v35 }
 0x591   :  { %v2086_v45 = vcvt.f32.s32 %v2085_v17  ;;  %v1846_v44 = vcvt.f32.s32 %v1845_v19  ;;  %vm2164_vm13 = vcmp.eq.s32.totalorder %v5155_v43, %v2104_v62  ;;  %vm2148_vm14 = vcmp.eq.s32.totalorder %v5155_v43, %v1864_v40 }
 0x592   :  { %v2196_v53 = vsel %vm2164_vm13, %v5216_v6, %v1460_v11  ;;  %v2180_v49 = vsel %vm2148_vm14, %v5219_v54, %v1444_v42  ;;  %v1462_v4 = vsel %vm5232_vm6, %v5230_v24, 0.0  ;;  %v2118_v10 = vshll.u32 %v2117_v20, 16 }
 0x593   :  { %v2089_v58 = vadd.s32 %v2088_v28, %v2086_v45  ;;  %v1849_v47 = vadd.s32 %v1848_v41, %v1846_v44  ;;  %2242 = vxpose.xlu1.b32.cont [12/16] (narrow) %v2194_v36, 8  ;;  %2210 = vxpose.xlu0.b32.cont [12/16] (narrow) %v2178_v31, 8  ;;  %v1878_v36 = vshll.u32 %v1877_v61, 16  ;;  %v1445_v52 = vsel %vm5235_vm7, %v5233_v14, 0.0 }
 0x594   :  { %v1461_v37 = vsel %vm5238_vm8, %v5236_v23, 0.0 }
 0x595   :  { %vm2163_vm2 = vcmp.eq.s32.totalorder %v5155_v43, %v2089_v58  ;;  %vm2147_vm4 = vcmp.eq.s32.totalorder %v5155_v43, %v1849_v47 }
 0x596   :  { %v1890_v34 = vpop.xlane.xlu0 %1889  ;;  %v2195_v26 = vsel %vm2163_vm2, %v5225_v21, %v1459_v22  ;;  %v2179_v15 = vsel %vm2147_vm4, %v5222_v12, %v1443_v57 }
 0x597   :  { %v1891_v46 = vcvt.f32.s32 %v1890_v34  ;;  %2243 = vxpose.xlu1.b32.cont [13/16] (narrow) %v2195_v26, 8  ;;  %2211 = vxpose.xlu0.b32.cont [13/16] (narrow) %v2179_v15, 8 }
 0x598   :  { %v2130_v29 = vpop.xlane.xlu1 %2129 }
 0x599   :  { %v1894_v0 = vadd.s32 %v1893_v25, %v1891_v46  ;;  %v2131_v60 = vcvt.f32.s32 %v2130_v29 }
 0x59a   :  { %v1875_v7 = vpop.xlane.xlu0 %1874 }
 0x59b   :  { %v2134_v31 = vadd.s32 %v2133_v8, %v2131_v60  ;;  %v1876_v50 = vcvt.f32.s32 %v1875_v7  ;;  %2244 = vxpose.xlu1.b32.cont [14/16] (narrow) %v2196_v53, 8  ;;  %2212 = vxpose.xlu0.b32.cont [14/16] (narrow) %v2180_v49, 8  ;;  %vm2150_vm1 = vcmp.eq.s32.totalorder %v5155_v43, %v1894_v0 }
 0x59c   :  { %v2115_v9 = vpop.xlane.xlu1 %2114  ;;  %v2182_v63 = vsel %vm2150_vm1, %v5228_v18, %v1446_v56 }
 0x59d   :  { %v1879_v27 = vadd.s32 %v1878_v36, %v1876_v50  ;;  %v2116_v38 = vcvt.f32.s32 %v2115_v9  ;;  %vm2166_vm3 = vcmp.eq.s32.totalorder %v5155_v43, %v2134_v31 }
 0x59e   :  { %v2198_v39 = vsel %vm2166_vm3, %v5230_v24, %v1462_v4 }
 0x59f   :  { %v2119_v48 = vadd.s32 %v2118_v10, %v2116_v38  ;;  %vm2149_vm5 = vcmp.eq.s32.totalorder %v5155_v43, %v1879_v27 }
 0x5a0   :  { %v2181_v51 = vsel %vm2149_vm5, %v5233_v14, %v1445_v52 }
 0x5a1   :  { %2213 = vxpose.xlu0.b32.cont [15/16] (narrow) %v2181_v51, 8  ;;  %vm2165_vm9 = vcmp.eq.s32.totalorder %v5155_v43, %v2119_v48 }
 0x5a2   :  { %v2197_v5 = vsel %vm2165_vm9, %v5236_v23, %v1461_v37 }
 0x5a3   :  { %2245 = vxpose.xlu1.b32.cont [15/16] (narrow) %v2197_v5, 8 }
 0x5a5   :  { %2214 = vxpose.xlu0.b32.end [16/16] (narrow) %v2182_v63, 8 }
 0x5a7   :  { %2246 = vxpose.xlu1.b32.end [16/16] (narrow) %v2198_v39, 8 }
 0x5e5   :  { %v2215_v16 = vpop.trf.xlu0 }
 0x5e6   :  { %2263 = vst [vmem:[#allocation2] sm:$0xff] %v2215_v16 }
 0x5e7   :  { %v2247_v62 = vpop.trf.xlu1 }
 0x5e8   :  { %2264 = vst [vmem:[#allocation2 + $0x8] sm:$0xff] %v2247_v62 }
 0x5e9   :  { %2555 = shalt.err (!%p2552_p4)
}
 0x5ea   :  { %2276 = dma.vmem_to_hbm [thread:$0]  %s2274_s5, 256, %s4879_s3, [#allocation3]  }
 0x5eb   :  { %2564 = dma.done.wait [#allocation3], 256  }
 0x5ec   :  { %2565 = vsyncadd [#allocation3], 4294967040 }
 0x5ed   :  { %2282 = vsyncpa [#allocation3], 1 }

</bundles_post_ra>
